<compile_context>
chip_gen: v7x
topology: tpu7x:2x2x1
jax: 0.10.0
libtpu: 0.0.40
codegen_flags: <defaults>
</compile_context>

<pallas_src>
import jax
import jax.numpy as jnp
from jax import lax
from jax.experimental import pallas as pl
from jax.experimental.pallas import tpu as pltpu
import numpy as np


def _scale_pred_kernel(x_ref, w1_ref, shift_ref, w2_ref, b2_ref, out_ref,
                       xpad_ref, col_ref):
    """One batch element per grid step.

    x_ref    : (1, H, W, Cin)   bf16  un-padded NHWC activation block
    w1_ref   : (C1, 9*Cin)      bf16  3x3 weights, tap-major, BN scale folded in
    shift_ref: (C1, 1)          f32   folded BN shift = beta - mean * scale
    w2_ref   : (C2, C1)         bf16  1x1 conv weights (pre-transposed)
    b2_ref   : (C2, 1)          f32   1x1 conv bias
    out_ref  : (1, C2, H*W)     f32   spatial-on-lanes (lane-dense) output
    xpad_ref : (H+2, W+2, Cin)  bf16  scratch: zero-padded activation
    col_ref  : (H*W, 9*Cin)     bf16  scratch: im2col matrix
    """
    H = x_ref.shape[1]
    W = x_ref.shape[2]
    Cin = x_ref.shape[3]
    C2 = w2_ref.shape[0]
    HW = H * W

    # --- in-kernel zero padding (conv padding=1); no padded HBM round trip ---
    xpad_ref[...] = jnp.zeros_like(xpad_ref)
    xpad_ref[1:H + 1, 1:W + 1, :] = x_ref[0]

    # --- im2col: col[h*W+w, tap*Cin+c] = xpad[h+kh, w+kw, c], tap = kh*3+kw ---
    for kh in range(3):
        for kw in range(3):
            tap = kh * 3 + kw
            patch = xpad_ref[kh:kh + H, kw:kw + W, :].reshape(HW, Cin)
            col_ref[:, tap * Cin:(tap + 1) * Cin] = patch

    # --- 3x3 conv as ONE bf16 MXU matmul, contraction 9*Cin (scale folded).
    #     Result laid out (C1, H*W): channels on sublanes, spatial on lanes,
    #     so all downstream work is lane-dense despite tiny channel counts. ---
    acc = lax.dot_general(
        w1_ref[...], col_ref[...],
        dimension_numbers=(((1,), (1,)), ((), ())),
        preferred_element_type=jnp.float32)                      # (C1, HW) f32

    # --- folded BatchNorm shift + LeakyReLU(0.1) ---
    y = acc + shift_ref[...]
    y = jnp.where(y > 0, y, 0.1 * y)

    # --- 1x1 conv as a second MXU matmul + bias, still spatial-on-lanes ---
    z = jnp.dot(w2_ref[...], y.astype(w2_ref.dtype),
                preferred_element_type=jnp.float32) + b2_ref[...]  # (C2, HW)

    # Lane-dense, unmasked store: last dim H*W is a multiple of 128.
    out_ref[...] = z.reshape(1, C2, HW).astype(out_ref.dtype)


def scale_prediction(x_nchw, w1_hwio, bn_gamma, bn_beta, bn_mean, bn_var,
                     w2, b2, num_classes, eps=1e-5):
    """x_nchw: (B, Cin, H, W) float32. Returns (B, 3, H, W, num_classes+5)."""
    B, Cin, H, W = x_nchw.shape
    C1 = w1_hwio.shape[-1]            # 2 * Cin
    C2 = w2.shape[-1]                 # 3 * (num_classes + 5)
    HW = H * W

    # Fold BatchNorm (inference): scale goes into the 3x3 weights, shift stays.
    scale = bn_gamma / jnp.sqrt(bn_var + eps)
    shift = bn_beta - bn_mean * scale

    w1_t = jnp.transpose((w1_hwio * scale).reshape(9 * Cin, C1),
                         (1, 0)).astype(jnp.bfloat16)            # (C1, 9*Cin)
    w2_t = jnp.transpose(w2, (1, 0)).astype(jnp.bfloat16)        # (C2, C1)
    shift_col = shift.reshape(C1, 1).astype(jnp.float32)
    b2_col = b2.reshape(C2, 1).astype(jnp.float32)

    # NCHW -> NHWC in bf16 (halves activation DMA bytes; MXU is bf16-native).
    # TODO(synk): accept NHWC activations directly to skip this HBM relayout.
    x_nhwc = jnp.transpose(x_nchw, (0, 2, 3, 1)).astype(jnp.bfloat16)

    # TODO(synk): for real YOLO head sizes (Cin=512, H=W=52+) add an H-row-tile
    # grid axis (1-row halo) and single-buffer the weights to fit v7x's 64 MiB VMEM.
    out_flat = pl.pallas_call(
        _scale_pred_kernel,
        out_shape=jax.ShapeDtypeStruct((B, C2, HW), jnp.float32),
        grid_spec=pltpu.PrefetchScalarGridSpec(
            num_scalar_prefetch=0,
            grid=(B,),
            in_specs=[
                pl.BlockSpec((1, H, W, Cin), lambda b: (b, 0, 0, 0)),
                pl.BlockSpec((C1, 9 * Cin), lambda b: (0, 0)),
                pl.BlockSpec((C1, 1), lambda b: (0, 0)),
                pl.BlockSpec((C2, C1), lambda b: (0, 0)),
                pl.BlockSpec((C2, 1), lambda b: (0, 0)),
            ],
            out_specs=pl.BlockSpec((1, C2, HW), lambda b: (b, 0, 0)),
            scratch_shapes=[
                pltpu.VMEM((H + 2, W + 2, Cin), jnp.bfloat16),  # padded slab
                pltpu.VMEM((HW, 9 * Cin), jnp.bfloat16),        # im2col
            ],
        ),
        compiler_params=pltpu.CompilerParams(
            dimension_semantics=("parallel",),   # B>=2 feeds both v7x cores
            vmem_limit_bytes=32 * 1024 * 1024,
        ),
    )(x_nhwc, w1_t, shift_col, w2_t, b2_col)

    # (B, C2, H*W) -> (B, 3, NC+5, H, W) -> (B, 3, H, W, NC+5)
    out = out_flat.reshape(B, 3, num_classes + 5, H, W)
    return jnp.transpose(out, (0, 1, 3, 4, 2))


def _reference(x_nchw, w1_hwio, bn_gamma, bn_beta, bn_mean, bn_var,
               w2, b2, num_classes, eps=1e-5):
    """Pure-JAX f32 reference for correctness check."""
    B, Cin, H, W = x_nchw.shape
    x_nhwc = jnp.transpose(x_nchw, (0, 2, 3, 1))
    y = lax.conv_general_dilated(
        x_nhwc, w1_hwio, window_strides=(1, 1), padding="SAME",
        dimension_numbers=("NHWC", "HWIO", "NHWC"),
        precision=lax.Precision.HIGHEST)
    scale = bn_gamma / jnp.sqrt(bn_var + eps)
    shift = bn_beta - bn_mean * scale
    y = y * scale + shift
    y = jnp.where(y > 0, y, 0.1 * y)
    z = jnp.einsum("bhwc,cd->bhwd", y, w2,
                   precision=lax.Precision.HIGHEST) + b2
    out = z.reshape(B, H, W, 3, num_classes + 5)
    return jnp.transpose(out, (0, 3, 1, 2, 4))


if __name__ == "__main__":
    # Small shapes consistent with the module's forward.
    B, Cin, H, W = 2, 4, 16, 16
    num_classes = 3
    C1 = 2 * Cin                    # CNNBlock1 out channels
    C2 = 3 * (num_classes + 5)      # CNNBlock2 out channels

    key = jax.random.PRNGKey(0)
    k_x, k_w1, k_g, k_b, k_m, k_v, k_w2, k_b2 = jax.random.split(key, 8)

    x = jax.random.normal(k_x, (B, Cin, H, W), dtype=jnp.float32)

    # Deterministic synthetic parameters.
    w1 = 0.1 * jax.random.normal(k_w1, (3, 3, Cin, C1), dtype=jnp.float32)   # HWIO
    bn_gamma = 1.0 + 0.1 * jax.random.normal(k_g, (C1,), dtype=jnp.float32)
    bn_beta = 0.1 * jax.random.normal(k_b, (C1,), dtype=jnp.float32)
    bn_mean = 0.1 * jax.random.normal(k_m, (C1,), dtype=jnp.float32)
    bn_var = jnp.abs(1.0 + 0.1 * jax.random.normal(k_v, (C1,), dtype=jnp.float32))
    w2 = 0.1 * jax.random.normal(k_w2, (C1, C2), dtype=jnp.float32)
    b2 = 0.1 * jax.random.normal(k_b2, (C2,), dtype=jnp.float32)

    out = scale_prediction(x, w1, bn_gamma, bn_beta, bn_mean, bn_var,
                           w2, b2, num_classes)
    out = jax.block_until_ready(out)

    ref = _reference(x, w1, bn_gamma, bn_beta, bn_mean, bn_var,
                     w2, b2, num_classes)

    assert out.shape == (B, 3, H, W, num_classes + 5), out.shape
    # bf16 MXU inputs (f32 accumulation) -> compare at bf16-level tolerance.
    np.testing.assert_allclose(np.asarray(out), np.asarray(ref),
                               rtol=2e-2, atol=2e-2)
    print("KERNEL_OK")
</pallas_src>

<mosaic_0001>
module attributes {stable_mosaic.version = 11 : i64} {
  func.func @_scale_pred_kernel(%arg0: i32, %arg1: memref<1x16x16x4xbf16, #tpu.memory_space<vmem>>, %arg2: memref<8x36xbf16, #tpu.memory_space<vmem>>, %arg3: memref<8x1xf32, #tpu.memory_space<vmem>>, %arg4: memref<24x8xbf16, #tpu.memory_space<vmem>>, %arg5: memref<24x1xf32, #tpu.memory_space<vmem>>, %arg6: memref<1x24x256xf32, #tpu.memory_space<vmem>>, %arg7: memref<18x18x4xbf16, #tpu.memory_space<vmem>>, %arg8: memref<256x36xbf16, #tpu.memory_space<vmem>>) attributes {dimension_semantics = [#tpu.dimension_semantics<parallel>], iteration_bounds = array<i64: 2>, scalar_prefetch = 0 : i64, scratch_operands = 2 : i64, tpu.core_type = #tpu.core_type<tc>, window_params = [{transform_indices = @transform_0, window_bounds = array<i64: 1, 16, 16, 4>}, {pipeline_mode = #tpu.pipeline_mode<synchronous>, transform_indices = @transform_1, window_bounds = array<i64: 8, 36>}, {pipeline_mode = #tpu.pipeline_mode<synchronous>, transform_indices = @transform_2, window_bounds = array<i64: 8, 1>}, {pipeline_mode = #tpu.pipeline_mode<synchronous>, transform_indices = @transform_3, window_bounds = array<i64: 24, 8>}, {pipeline_mode = #tpu.pipeline_mode<synchronous>, transform_indices = @transform_4, window_bounds = array<i64: 24, 1>}, {transform_indices = @transform_5, window_bounds = array<i64: 1, 24, 256>}]} {
    %cst = arith.constant 0.000000e+00 : bf16
    %0 = vector.broadcast %cst : bf16 to vector<18x18x4xbf16>
    %c0 = arith.constant 0 : index
    %c0_0 = arith.constant 0 : index
    %c0_1 = arith.constant 0 : index
    %1 = vector.load %arg7[%c0, %c0_0, %c0_1] : memref<18x18x4xbf16, #tpu.memory_space<vmem>>, vector<18x18x4xbf16>
    tpu.vector_store %arg7[%c0, %c0_0, %c0_1], %0 {strides = array<i32>} : memref<18x18x4xbf16, #tpu.memory_space<vmem>>, vector<18x18x4xbf16>,
    %c0_2 = arith.constant 0 : index
    %c0_3 = arith.constant 0 : index
    %c0_4 = arith.constant 0 : index
    %c0_5 = arith.constant 0 : index
    %2 = vector.load %arg1[%c0_2, %c0_3, %c0_4, %c0_5] : memref<1x16x16x4xbf16, #tpu.memory_space<vmem>>, vector<1x16x16x4xbf16>
    %3 = vector.shape_cast %2 : vector<1x16x16x4xbf16> to vector<16x16x4xbf16>
    %c1 = arith.constant 1 : index
    %c1_6 = arith.constant 1 : index
    %c0_7 = arith.constant 0 : index
    %4 = vector.load %arg7[%c1, %c1_6, %c0_7] : memref<18x18x4xbf16, #tpu.memory_space<vmem>>, vector<16x16x4xbf16>
    tpu.vector_store %arg7[%c1, %c1_6, %c0_7], %3 {strides = array<i32>} : memref<18x18x4xbf16, #tpu.memory_space<vmem>>, vector<16x16x4xbf16>,
    %c0_8 = arith.constant 0 : index
    %c0_9 = arith.constant 0 : index
    %c0_10 = arith.constant 0 : index
    %5 = vector.load %arg7[%c0_8, %c0_9, %c0_10] : memref<18x18x4xbf16, #tpu.memory_space<vmem>>, vector<16x16x4xbf16>
    %6 = vector.shape_cast %5 : vector<16x16x4xbf16> to vector<256x4xbf16>
    %c0_11 = arith.constant 0 : index
    %c0_12 = arith.constant 0 : index
    %7 = vector.load %arg8[%c0_11, %c0_12] : memref<256x36xbf16, #tpu.memory_space<vmem>>, vector<256x4xbf16>
    tpu.vector_store %arg8[%c0_11, %c0_12], %6 {strides = array<i32>} : memref<256x36xbf16, #tpu.memory_space<vmem>>, vector<256x4xbf16>,
    %c0_13 = arith.constant 0 : index
    %c1_14 = arith.constant 1 : index
    %c0_15 = arith.constant 0 : index
    %8 = vector.load %arg7[%c0_13, %c1_14, %c0_15] : memref<18x18x4xbf16, #tpu.memory_space<vmem>>, vector<16x16x4xbf16>
    %9 = vector.shape_cast %8 : vector<16x16x4xbf16> to vector<256x4xbf16>
    %c0_16 = arith.constant 0 : index
    %c4 = arith.constant 4 : index
    %10 = vector.load %arg8[%c0_16, %c4] : memref<256x36xbf16, #tpu.memory_space<vmem>>, vector<256x4xbf16>
    tpu.vector_store %arg8[%c0_16, %c4], %9 {strides = array<i32>} : memref<256x36xbf16, #tpu.memory_space<vmem>>, vector<256x4xbf16>,
    %c0_17 = arith.constant 0 : index
    %c2 = arith.constant 2 : index
    %c0_18 = arith.constant 0 : index
    %11 = vector.load %arg7[%c0_17, %c2, %c0_18] : memref<18x18x4xbf16, #tpu.memory_space<vmem>>, vector<16x16x4xbf16>
    %12 = vector.shape_cast %11 : vector<16x16x4xbf16> to vector<256x4xbf16>
    %c0_19 = arith.constant 0 : index
    %c8 = arith.constant 8 : index
    %13 = vector.load %arg8[%c0_19, %c8] : memref<256x36xbf16, #tpu.memory_space<vmem>>, vector<256x4xbf16>
    tpu.vector_store %arg8[%c0_19, %c8], %12 {strides = array<i32>} : memref<256x36xbf16, #tpu.memory_space<vmem>>, vector<256x4xbf16>,
    %c1_20 = arith.constant 1 : index
    %c0_21 = arith.constant 0 : index
    %c0_22 = arith.constant 0 : index
    %14 = vector.load %arg7[%c1_20, %c0_21, %c0_22] : memref<18x18x4xbf16, #tpu.memory_space<vmem>>, vector<16x16x4xbf16>
    %15 = vector.shape_cast %14 : vector<16x16x4xbf16> to vector<256x4xbf16>
    %c0_23 = arith.constant 0 : index
    %c12 = arith.constant 12 : index
    %16 = vector.load %arg8[%c0_23, %c12] : memref<256x36xbf16, #tpu.memory_space<vmem>>, vector<256x4xbf16>
    tpu.vector_store %arg8[%c0_23, %c12], %15 {strides = array<i32>} : memref<256x36xbf16, #tpu.memory_space<vmem>>, vector<256x4xbf16>,
    %c1_24 = arith.constant 1 : index
    %c1_25 = arith.constant 1 : index
    %c0_26 = arith.constant 0 : index
    %17 = vector.load %arg7[%c1_24, %c1_25, %c0_26] : memref<18x18x4xbf16, #tpu.memory_space<vmem>>, vector<16x16x4xbf16>
    %18 = vector.shape_cast %17 : vector<16x16x4xbf16> to vector<256x4xbf16>
    %c0_27 = arith.constant 0 : index
    %c16 = arith.constant 16 : index
    %19 = vector.load %arg8[%c0_27, %c16] : memref<256x36xbf16, #tpu.memory_space<vmem>>, vector<256x4xbf16>
    tpu.vector_store %arg8[%c0_27, %c16], %18 {strides = array<i32>} : memref<256x36xbf16, #tpu.memory_space<vmem>>, vector<256x4xbf16>,
    %c1_28 = arith.constant 1 : index
    %c2_29 = arith.constant 2 : index
    %c0_30 = arith.constant 0 : index
    %20 = vector.load %arg7[%c1_28, %c2_29, %c0_30] : memref<18x18x4xbf16, #tpu.memory_space<vmem>>, vector<16x16x4xbf16>
    %21 = vector.shape_cast %20 : vector<16x16x4xbf16> to vector<256x4xbf16>
    %c0_31 = arith.constant 0 : index
    %c20 = arith.constant 20 : index
    %22 = vector.load %arg8[%c0_31, %c20] : memref<256x36xbf16, #tpu.memory_space<vmem>>, vector<256x4xbf16>
    tpu.vector_store %arg8[%c0_31, %c20], %21 {strides = array<i32>} : memref<256x36xbf16, #tpu.memory_space<vmem>>, vector<256x4xbf16>,
    %c2_32 = arith.constant 2 : index
    %c0_33 = arith.constant 0 : index
    %c0_34 = arith.constant 0 : index
    %23 = vector.load %arg7[%c2_32, %c0_33, %c0_34] : memref<18x18x4xbf16, #tpu.memory_space<vmem>>, vector<16x16x4xbf16>
    %24 = vector.shape_cast %23 : vector<16x16x4xbf16> to vector<256x4xbf16>
    %c0_35 = arith.constant 0 : index
    %c24 = arith.constant 24 : index
    %25 = vector.load %arg8[%c0_35, %c24] : memref<256x36xbf16, #tpu.memory_space<vmem>>, vector<256x4xbf16>
    tpu.vector_store %arg8[%c0_35, %c24], %24 {strides = array<i32>} : memref<256x36xbf16, #tpu.memory_space<vmem>>, vector<256x4xbf16>,
    %c2_36 = arith.constant 2 : index
    %c1_37 = arith.constant 1 : index
    %c0_38 = arith.constant 0 : index
    %26 = vector.load %arg7[%c2_36, %c1_37, %c0_38] : memref<18x18x4xbf16, #tpu.memory_space<vmem>>, vector<16x16x4xbf16>
    %27 = vector.shape_cast %26 : vector<16x16x4xbf16> to vector<256x4xbf16>
    %c0_39 = arith.constant 0 : index
    %c28 = arith.constant 28 : index
    %28 = vector.load %arg8[%c0_39, %c28] : memref<256x36xbf16, #tpu.memory_space<vmem>>, vector<256x4xbf16>
    tpu.vector_store %arg8[%c0_39, %c28], %27 {strides = array<i32>} : memref<256x36xbf16, #tpu.memory_space<vmem>>, vector<256x4xbf16>,
    %c2_40 = arith.constant 2 : index
    %c2_41 = arith.constant 2 : index
    %c0_42 = arith.constant 0 : index
    %29 = vector.load %arg7[%c2_40, %c2_41, %c0_42] : memref<18x18x4xbf16, #tpu.memory_space<vmem>>, vector<16x16x4xbf16>
    %30 = vector.shape_cast %29 : vector<16x16x4xbf16> to vector<256x4xbf16>
    %c0_43 = arith.constant 0 : index
    %c32 = arith.constant 32 : index
    %31 = vector.load %arg8[%c0_43, %c32] : memref<256x36xbf16, #tpu.memory_space<vmem>>, vector<256x4xbf16>
    tpu.vector_store %arg8[%c0_43, %c32], %30 {strides = array<i32>} : memref<256x36xbf16, #tpu.memory_space<vmem>>, vector<256x4xbf16>,
    %c0_44 = arith.constant 0 : index
    %c0_45 = arith.constant 0 : index
    %32 = vector.load %arg2[%c0_44, %c0_45] : memref<8x36xbf16, #tpu.memory_space<vmem>>, vector<8x36xbf16>
    %c0_46 = arith.constant 0 : index
    %c0_47 = arith.constant 0 : index
    %33 = vector.load %arg8[%c0_46, %c0_47] : memref<256x36xbf16, #tpu.memory_space<vmem>>, vector<256x36xbf16>
    %cst_48 = arith.constant dense<0.000000e+00> : vector<8x256xf32>
    %34 = tpu.matmul %32, %33, %cst_48 {dimension_numbers = #tpu.dot_dimension_numbers<[1], [1], [0], [0], [0, 0, 1, 0], [], []>} : vector<8x36xbf16>, vector<256x36xbf16>, vector<8x256xf32> -> vector<8x256xf32>
    %c0_49 = arith.constant 0 : index
    %c0_50 = arith.constant 0 : index
    %35 = vector.load %arg3[%c0_49, %c0_50] : memref<8x1xf32, #tpu.memory_space<vmem>>, vector<8x1xf32>
    %36 = vector.broadcast %35 : vector<8x1xf32> to vector<8x256xf32>
    %37 = arith.addf %34, %36 : vector<8x256xf32>
    %cst_51 = arith.constant 0.000000e+00 : f32
    %38 = vector.broadcast %cst_51 : f32 to vector<8x256xf32>
    %39 = arith.cmpf ogt, %37, %38 : vector<8x256xf32>
    %cst_52 = arith.constant 1.000000e-01 : f32
    %40 = vector.broadcast %cst_52 : f32 to vector<8x256xf32>
    %41 = arith.mulf %40, %37 : vector<8x256xf32>
    %42 = arith.select %39, %37, %41 : vector<8x256xi1>, vector<8x256xf32>
    %c0_53 = arith.constant 0 : index
    %c0_54 = arith.constant 0 : index
    %43 = vector.load %arg4[%c0_53, %c0_54] : memref<24x8xbf16, #tpu.memory_space<vmem>>, vector<24x8xbf16>
    %44 = arith.truncf %42 : vector<8x256xf32> to vector<8x256xbf16>
    %cst_55 = arith.constant dense<0.000000e+00> : vector<24x256xf32>
    %45 = tpu.matmul %43, %44, %cst_55 {dimension_numbers = #tpu.dot_dimension_numbers<[1], [0], [0], [1], [0, 0, 1, 1], [], []>} : vector<24x8xbf16>, vector<8x256xbf16>, vector<24x256xf32> -> vector<24x256xf32>
    %c0_56 = arith.constant 0 : index
    %c0_57 = arith.constant 0 : index
    %46 = vector.load %arg5[%c0_56, %c0_57] : memref<24x1xf32, #tpu.memory_space<vmem>>, vector<24x1xf32>
    %47 = vector.broadcast %46 : vector<24x1xf32> to vector<24x256xf32>
    %48 = arith.addf %45, %47 : vector<24x256xf32>
    %49 = vector.shape_cast %48 : vector<24x256xf32> to vector<1x24x256xf32>
    %c0_58 = arith.constant 0 : index
    %c0_59 = arith.constant 0 : index
    %c0_60 = arith.constant 0 : index
    %50 = vector.load %arg6[%c0_58, %c0_59, %c0_60] : memref<1x24x256xf32, #tpu.memory_space<vmem>>, vector<1x24x256xf32>
    tpu.vector_store %arg6[%c0_58, %c0_59, %c0_60], %49 {strides = array<i32>} : memref<1x24x256xf32, #tpu.memory_space<vmem>>, vector<1x24x256xf32>,
    return
  }
  func.func @transform_0(%arg0: i32) -> (i32, i32, i32, i32) {
    %c0_i32 = arith.constant 0 : i32
    %c0_i32_0 = arith.constant 0 : i32
    %c0_i32_1 = arith.constant 0 : i32
    %c0_i32_2 = arith.constant 0 : i32
    return %arg0, %c0_i32, %c0_i32_0, %c0_i32_1 : i32, i32, i32, i32
  }
  func.func @transform_1(%arg0: i32) -> (i32, i32) {
    %c0_i32 = arith.constant 0 : i32
    %c0_i32_0 = arith.constant 0 : i32
    %c0_i32_1 = arith.constant 0 : i32
    return %c0_i32, %c0_i32_0 : i32, i32
  }
  func.func @transform_2(%arg0: i32) -> (i32, i32) {
    %c0_i32 = arith.constant 0 : i32
    %c0_i32_0 = arith.constant 0 : i32
    %c0_i32_1 = arith.constant 0 : i32
    return %c0_i32, %c0_i32_0 : i32, i32
  }
  func.func @transform_3(%arg0: i32) -> (i32, i32) {
    %c0_i32 = arith.constant 0 : i32
    %c0_i32_0 = arith.constant 0 : i32
    %c0_i32_1 = arith.constant 0 : i32
    return %c0_i32, %c0_i32_0 : i32, i32
  }
  func.func @transform_4(%arg0: i32) -> (i32, i32) {
    %c0_i32 = arith.constant 0 : i32
    %c0_i32_0 = arith.constant 0 : i32
    %c0_i32_1 = arith.constant 0 : i32
    return %c0_i32, %c0_i32_0 : i32, i32
  }
  func.func @transform_5(%arg0: i32) -> (i32, i32, i32) {
    %c0_i32 = arith.constant 0 : i32
    %c0_i32_0 = arith.constant 0 : i32
    %c0_i32_1 = arith.constant 0 : i32
    return %arg0, %c0_i32, %c0_i32_0 : i32, i32, i32
  }
}

</mosaic_0001>

<bundles_post_ra>
// kernel: tpu_custom_call.1
= control target key start
LH: loop header
LB: loop body
LE: loop exit
PB: predicated region body
PF: predicated region fallthrough
CT: control target
= control target key end

     0   :  { %10 = vsyncpa [#allocation5], 0  ;;  %s5976_s0 = inlined_call_operand.vmem [shape: bf16[2,16,16,4], index: 0, kind: input, shape index: {}]   ;;  %s5977_s1 = inlined_call_operand.vmem [shape: bf16[8,36], index: 1, kind: input, shape index: {}]   ;;  %s5978_s2 = inlined_call_operand.vmem [shape: f32[8,1], index: 2, kind: input, shape index: {}]   ;;  %s5979_s3 = inlined_call_operand.vmem [shape: bf16[24,8], index: 3, kind: input, shape index: {}]   ;;  %s5980_s4 = inlined_call_operand.vmem [shape: f32[24,1], index: 4, kind: input, shape index: {}]   ;;  %s5981_s5 = inlined_call_operand.hbm [shape: f32[2,24,256], index: 5, kind: output, shape index: {}]  }
   0x1   :  { %12 = vsyncpa [#allocation5 + $0x1], 0  ;;  %s4599_s18 = smov 0   ;;  %s4601_s19 = smov 0  }
   0x2   :  { %s4603_s20 = smov 0   ;;  %s4605_s21 = smov 0  }
   0x3 LB: > { %s4620_s22 = sadd.s32 4294967295, %s4556_s21   ;;  %s4157_s23 = sadd.s32 4294967294, %s4556_s21   ;;  %s4556_s21 = sphi %s4605_s21, %s5997_s21   ;;  %s4552_s20 = sphi %s4603_s20, %s5996_s20   ;;  %s4548_s19 = sphi %s4601_s19, %s5995_s19   ;;  %s4544_s18 = sphi %s4599_s18, %s5994_s18  }
   0x4   : > { %s4624_s24 = sadd.s32 1, %s4556_s21   ;;  %s135_s25 = sadd.s32 1, %s4552_s20 }
   0x5   : > { %s132_s26 = ssub.s32 %s4556_s21, %s4624_s24  ;;  %p145_p0 = scmp.ne.s32.totalorder %s4552_s20, %s4548_s19 }
   0x6   : > { %p133_p1 = scmp.eq.s32.totalorder %s132_s26, 0  ;;  %p146_p2 = scmp.eq.s32.totalorder %s4620_s22, 1 }
   0x7   : > { %p151_p3 = scmp.ne.s32.totalorder %s4548_s19, %s4544_s18  ;;  %p152_p4 = scmp.eq.s32.totalorder %s4157_s23, 1 }
   0x8   : > { %s4635_s27 = scalar_select %p133_p1, %s4552_s20, %s135_s25  }
   0x9   : > { %p4637_p5 = por %p146_p2, %p145_p0  ;;  %p4641_p6 = por %p152_p4, %p151_p3 }
   0xa   : > { %p4160_p7 = scmp.ge.s32.totalorder %s4556_s21, 1  ;;  %p190_p8 = scmp.lt.s32.totalorder %s4556_s21, 3 }
   0xc   : > { %p191_p9 = pnand %p4160_p7, %p190_p8 }
   0xd   : > { %vm224_vm0 = vcmask (!%p191_p9), 27648   ;;  %vm227_vm1 = vcmask (!%p191_p9), 24576   ;;  %v4558_v0 = vmov (!%p191_p9), 0   ;;  %p218_p10 = scmp.lt.s32.totalorder (!%p191_p9), %s4620_s22, 1  ;;  %vm1542_vm2 = vcmask (!%p191_p9), 1042432   ;;  %s4559_s10 = smov (!%p191_p9), 8  }
   0xe   : > { %194 = sbr.rel (%p191_p9) target bundleno = 994 (0x3e2), region = 40  ;;  %225 = vst.msk [vmem:[#allocation2] sm:$0xf] (!%p191_p9), %vm224_vm0, %v4558_v0  ;;  %226 = vst.msk [vmem:[#allocation2 + $0x4] sm:$0xf] (!%p191_p9), %vm224_vm0, %v4558_v0  ;;  %4442 = vset.pattern.permute.xlu0 (!%p191_p9), %v4558_v0  ;;  %4056 = vmatprep.mubr.bf16.mxu1 (!%p191_p9), %v4558_v0  ;;  %vm1543_vm3 = vcmask (!%p191_p9), 1046532  }
   0xf   : > { %228 = vst.msk [vmem:[#allocation2 + $0x8] sm:$0x1] (!%p191_p9), %vm227_vm1, %v4558_v0  ;;  %231 = vst.msk [vmem:[#allocation2 + $0x14] sm:$0x1] (!%p191_p9), %vm227_vm1, %v4558_v0  ;;  %4443 = vset.pattern.permute.xlu1 (!%p191_p9), %v4558_v0  ;;  %vm946_vm4 = vsmask.f32 (!%p191_p9), 3328 }
  0x10   : > { %229 = vst.msk [vmem:[#allocation2 + $0xc] sm:$0xf] (!%p191_p9), %vm224_vm0, %v4558_v0  ;;  %230 = vst.msk [vmem:[#allocation2 + $0x10] sm:$0xf] (!%p191_p9), %vm224_vm0, %v4558_v0  ;;  %vm947_vm5 = vsmask.f32 (!%p191_p9), 7440 }
  0x11   : > { %232 = vst.msk [vmem:[#allocation2 + $0x18] sm:$0xf] (!%p191_p9), %vm224_vm0, %v4558_v0  ;;  %233 = vst.msk [vmem:[#allocation2 + $0x1c] sm:$0xf] (!%p191_p9), %vm224_vm0, %v4558_v0  ;;  %vm312_vm7 = vsmask.f32 (!%p191_p9), 256 }
  0x12   : > { %234 = vst.msk [vmem:[#allocation2 + $0x20] sm:$0x1] (!%p191_p9), %vm227_vm1, %v4558_v0  ;;  %237 = vst.msk [vmem:[#allocation2 + $0x2c] sm:$0x1] (!%p191_p9), %vm227_vm1, %v4558_v0  ;;  %vm313_vm8 = vsmask.f32 (!%p191_p9), 4368 }
  0x13   : > { %235 = vst.msk [vmem:[#allocation2 + $0x24] sm:$0xf] (!%p191_p9), %vm224_vm0, %v4558_v0  ;;  %236 = vst.msk [vmem:[#allocation2 + $0x28] sm:$0xf] (!%p191_p9), %vm224_vm0, %v4558_v0  ;;  %vm637_vm9 = vsmask.f32 (!%p191_p9), 7938 }
  0x14   : > { %238 = vst.msk [vmem:[#allocation2 + $0x30] sm:$0xf] (!%p191_p9), %vm224_vm0, %v4558_v0  ;;  %239 = vst.msk [vmem:[#allocation2 + $0x34] sm:$0xf] (!%p191_p9), %vm224_vm0, %v4558_v0  ;;  %s4560_s11 = smov (!%p191_p9), 4   ;;  %s4561_s12 = smov (!%p191_p9), 12  }
  0x15   : > { %240 = vst.msk [vmem:[#allocation2 + $0x38] sm:$0x1] %vm227_vm1, %v4558_v0  ;;  %243 = vst.msk [vmem:[#allocation2 + $0x44] sm:$0x1] %vm227_vm1, %v4558_v0  ;;  %s219_s30 = scalar_select %p218_p10, %s4620_s22, 1  ;;  %vm881_vm14 = vcmask 31744  }
  0x16   : > { %241 = vst.msk [vmem:[#allocation2 + $0x3c] sm:$0xf] %vm224_vm0, %v4558_v0  ;;  %242 = vst.msk [vmem:[#allocation2 + $0x40] sm:$0xf] %vm224_vm0, %v4558_v0  ;;  %v1446_v3 = vld [vmem:[#allocation2] sm:$0xe] }
  0x17   : > { %244 = vst.msk [vmem:[#allocation2 + $0x48] sm:$0xf] %vm224_vm0, %v4558_v0  ;;  %245 = vst.msk [vmem:[#allocation2 + $0x4c] sm:$0xf] %vm224_vm0, %v4558_v0  ;;  %s4364_s6 = sshll.u32 %s219_s30, 7  ;;  %v4195_v6 = vrot.slane %v1446_v3, 9 }
  0x18   : > { %246 = vst.msk [vmem:[#allocation2 + $0x50] sm:$0x1] %vm227_vm1, %v4558_v0  ;;  %249 = vst.msk [vmem:[#allocation2 + $0x5c] sm:$0x1] %vm227_vm1, %v4558_v0  ;;  %s4763_s9 = scalar_lea.vmem %s5976_s0, %s4364_s6  ;;  %v1447_v4 = vld [vmem:[#allocation2 + $0x4] sm:$0xf] }
  0x19   : > { %247 = vst.msk [vmem:[#allocation2 + $0x54] sm:$0xf] %vm224_vm0, %v4558_v0  ;;  %248 = vst.msk [vmem:[#allocation2 + $0x58] sm:$0xf] %vm224_vm0, %v4558_v0  ;;  %v296_v2 = vld [vmem:[%s4763_s9 + $0x40] sm:$0xf] }
  0x1a   : > { %250 = vst.msk [vmem:[#allocation2 + $0x60] sm:$0xf] %vm224_vm0, %v4558_v0  ;;  %251 = vst.msk [vmem:[#allocation2 + $0x64] sm:$0xf] %vm224_vm0, %v4558_v0  ;;  %v1448_v5 = vld [vmem:[#allocation2 + $0x8] sm:$0x1] }
  0x1b   : > { %252 = vst.msk [vmem:[#allocation2 + $0x68] sm:$0x1] %vm227_vm1, %v4558_v0  ;;  %255 = vst.msk [vmem:[#allocation2 + $0x74] sm:$0x1] %vm227_vm1, %v4558_v0  ;;  %v1547_v7 = vrot.slane %v1447_v4, 5  ;;  %v1550_v8 = vrot.slane %v1448_v5, 5 }
  0x1c   : > { %253 = vst.msk [vmem:[#allocation2 + $0x6c] sm:$0xf] %vm224_vm0, %v4558_v0  ;;  %254 = vst.msk [vmem:[#allocation2 + $0x70] sm:$0xf] %vm224_vm0, %v4558_v0  ;;  %v898_v9 = vld [vmem:[#allocation2] sm:$0xf] }
  0x1d   : > { %256 = vst.msk [vmem:[#allocation2 + $0x78] sm:$0xf] %vm224_vm0, %v4558_v0  ;;  %257 = vst.msk [vmem:[#allocation2 + $0x7c] sm:$0xf] %vm224_vm0, %v4558_v0  ;;  %v452_v10 = vshrl.u32 %v296_v2, 16  ;;  %v950_v13 = vshrl.u32 %v898_v9, 16 }
  0x1e   : > { %258 = vst.msk [vmem:[#allocation2 + $0x80] sm:$0x1] %vm227_vm1, %v4558_v0  ;;  %261 = vst.msk [vmem:[#allocation2 + $0x8c] sm:$0x1] %vm227_vm1, %v4558_v0  ;;  %v899_v11 = vld [vmem:[#allocation2 + $0x4] sm:$0xf] }
  0x1f   : > { %259 = vst.msk [vmem:[#allocation2 + $0x84] sm:$0xf] %vm224_vm0, %v4558_v0  ;;  %260 = vst.msk [vmem:[#allocation2 + $0x88] sm:$0xf] %vm224_vm0, %v4558_v0  ;;  %v900_v12 = vld [vmem:[#allocation2 + $0x8] sm:$0x1] }
  0x20   : > { %262 = vst.msk [vmem:[#allocation2 + $0x90] sm:$0xf] %vm224_vm0, %v4558_v0  ;;  %263 = vst.msk [vmem:[#allocation2 + $0x94] sm:$0xf] %vm224_vm0, %v4558_v0  ;;  %v953_v14 = vshll.u32 %v898_v9, 16  ;;  %v1549_v16 = vrot.slane %v1547_v7, 4 }
  0x21   : > { %264 = vst.msk [vmem:[#allocation2 + $0x98] sm:$0x1] %vm227_vm1, %v4558_v0  ;;  %267 = vst.msk [vmem:[#allocation2 + $0xa4] sm:$0x1] %vm227_vm1, %v4558_v0  ;;  %v959_v17 = vshll.u32 %v899_v11, 16  ;;  %v963_v18 = vshrl.u32 %v899_v11, 16 }
  0x22   : > { %265 = vst.msk [vmem:[#allocation2 + $0x9c] sm:$0xf] %vm224_vm0, %v4558_v0  ;;  %266 = vst.msk [vmem:[#allocation2 + $0xa0] sm:$0xf] %vm224_vm0, %v4558_v0  ;;  %v297_v19 = vld [vmem:[%s4763_s9 + $0x44] sm:$0xf] }
  0x23   : > { %268 = vst.msk [vmem:[#allocation2 + $0xa8] sm:$0xf] %vm224_vm0, %v4558_v0  ;;  %269 = vst.msk [vmem:[#allocation2 + $0xac] sm:$0xf] %vm224_vm0, %v4558_v0  ;;  %v952_v20 = vrot.slane %v950_v13, 4  ;;  %v955_v21 = vrot.slane %v953_v14, 5 }
  0x24   : > { %270 = vst.msk [vmem:[#allocation2 + $0xb0] sm:$0x1] %vm227_vm1, %v4558_v0  ;;  %273 = vst.msk [vmem:[#allocation2 + $0xbc] sm:$0x1] %vm227_vm1, %v4558_v0  ;;  %v969_v22 = vshll.u32 %v900_v12, 16  ;;  %v454_v23 = vrot.slane %v452_v10, 7 }
  0x25   : > { %271 = vst.msk [vmem:[#allocation2 + $0xb4] sm:$0xf] %vm224_vm0, %v4558_v0  ;;  %272 = vst.msk [vmem:[#allocation2 + $0xb8] sm:$0xf] %vm224_vm0, %v4558_v0  ;;  %v280_v24 = vld [vmem:[%s4763_s9] sm:$0xf]  ;;  %v956_v31 = vor.u32 %v955_v21, %v952_v20 }
  0x26   : > { %274 = vst.msk [vmem:[#allocation2 + $0xc0] sm:$0xf] %vm224_vm0, %v4558_v0  ;;  %275 = vst.msk [vmem:[#allocation2 + $0xc4] sm:$0xf] %vm224_vm0, %v4558_v0  ;;  %v961_v26 = vrot.slane %v959_v17, 5  ;;  %v965_v27 = vrot.slane %v963_v18, 4 }
  0x27   : > { %276 = vst.msk [vmem:[#allocation2 + $0xc8] sm:$0x1] %vm227_vm1, %v4558_v0  ;;  %279 = vst.msk [vmem:[#allocation2 + $0xd4] sm:$0x1] %vm227_vm1, %v4558_v0  ;;  %v455_v28 = vshll.u32 %v296_v2, 16  ;;  %v971_v32 = vrot.slane %v969_v22, 5 }
  0x28   : > { %277 = vst.msk [vmem:[#allocation2 + $0xcc] sm:$0xf] %vm224_vm0, %v4558_v0  ;;  %278 = vst.msk [vmem:[#allocation2 + $0xd0] sm:$0xf] %vm224_vm0, %v4558_v0  ;;  %v281_v29 = vld [vmem:[%s4763_s9 + $0x4] sm:$0xf]  ;;  %v966_v37 = vor.u32 %v965_v27, %v961_v26 }
  0x29   : > { %vm4765_vm6 = vmor %vm1542_vm2, %vm1543_vm3  ;;  %v458_v33 = vrot.slane %v454_v23, 4  ;;  %v697_v35 = vld [vmem:[#allocation2 + $0x6c] sm:$0xf]  ;;  %v457_v38 = vor.u32 %v455_v28, %v454_v23  ;;  %v460_v39 = vshrl.u32 %v297_v19, 16  ;;  %v463_v40 = vshll.u32 %v297_v19, 16  ;;  %s4562_s13 = smov 24  }
  0x2a   : > { %v1548_v15 = vsel %vm4765_vm6, %v4195_v6, %v1547_v7  ;;  %v1551_v25 = vsel %vm4765_vm6, %v1549_v16, %v1550_v8  ;;  %vm4779_vm10 = vmand %vm224_vm0, %vm637_vm9  ;;  %v298_v41 = vld [vmem:[%s4763_s9 + $0x48] sm:$0xf]  ;;  %v957_v42 = vrot.slane %v956_v31, 4  ;;  %v316_v43 = vshrl.u32 %v280_v24, 16  ;;  %v299_v54 = vld [vmem:[%s4763_s9 + $0x4c] sm:$0xf] }
  0x2b   : > { %v4211_v30 = vcombine.low %v1548_v15, %v1551_v25  ;;  %vm4785_vm11 = vmor %vm946_vm4, %vm947_vm5  ;;  %v319_v44 = vshll.u32 %v280_v24, 16  ;;  %v324_v45 = vshrl.u32 %v281_v29, 16  ;;  %v967_v46 = vrot.slane %v966_v37, 4  ;;  %v639_v59 = vld [vmem:[#allocation2 + $0xc] sm:$0xf]  ;;  %s4563_s14 = smov 20  }
  0x2c   : > { %v4791_v47 = vrot.slane %v460_v39, 7  ;;  %v698_v48 = vsel %vm4779_vm10, %v457_v38, %v697_v35  ;;  %v327_v49 = vshll.u32 %v281_v29, 16  ;;  %v962_v50 = vsel %vm4785_vm11, %v957_v42, %v961_v26  ;;  %vm4799_vm12 = vmor %vm312_vm7, %vm313_vm8  ;;  %v282_v61 = vld [vmem:[%s4763_s9 + $0x8] sm:$0xf]  ;;  %v283_v4 = vld [vmem:[%s4763_s9 + $0xc] sm:$0xf] }
  0x2d   : > { %1705 = vrot.lane.b32.xlu1 %v4211_v30, %s4559_s10  ;;  %699 = vst [vmem:[#allocation2 + $0x6c] sm:$0xf] %v698_v48  ;;  %v318_v52 = vrot.slane %v316_v43, 7  ;;  %v326_v53 = vrot.slane %v324_v45, 7  ;;  %v469_v55 = vshrl.u32 %v298_v41, 16  ;;  %v972_v56 = vsel %vm4785_vm11, %v967_v46, %v971_v32  ;;  %vm4823_vm13 = vmand %vm227_vm1, %vm312_vm7  ;;  %s4564_s15 = smov 32  }
  0x2e   : > { %v465_v57 = vor.u32 %v463_v40, %v4791_v47  ;;  %v467_v58 = vrot.slane %v4791_v47, 4  ;;  %v472_v60 = vshll.u32 %v298_v41, 16  ;;  %v4179_v62 = vcombine.low %v962_v50, %v972_v56  ;;  %v294_v9 = vld [vmem:[%s4763_s9 + $0x38] sm:$0xf]  ;;  %v295_v20 = vld [vmem:[%s4763_s9 + $0x3c] sm:$0xf] }
  0x2f   : > { %v321_v63 = vor.u32 %v319_v44, %v318_v52  ;;  %v322_v2 = vrot.slane %v318_v52, 4  ;;  %v329_v3 = vor.u32 %v327_v49, %v326_v53  ;;  %v331_v6 = vrot.slane %v326_v53, 4  ;;  %v704_v13 = vld [vmem:[#allocation2 + $0x78] sm:$0xf]  ;;  %v645_v26 = vld [vmem:[#allocation2 + $0x14] sm:$0x1] }
  0x30   : > { %v466_v5 = vsel %vm4799_vm12, %v458_v33, %v465_v57  ;;  %v471_v7 = vrot.slane %v469_v55, 7  ;;  %v477_v8 = vshrl.u32 %v299_v54, 16  ;;  %1381 = vrot.lane.b32.xlu0 %v4179_v62, %s4560_s11  ;;  %v480_v12 = vshll.u32 %v299_v54, 16  ;;  %v648_v19 = vld [vmem:[#allocation2 + $0x18] sm:$0xf]  ;;  %s4565_s16 = smov 16  }
  0x31   : > { %700 = vst.msk [vmem:[#allocation2 + $0x70] sm:$0xf] %vm224_vm0, %v466_v5  ;;  %v330_v10 = vsel %vm4799_vm12, %v322_v2, %v329_v3  ;;  %v640_v11 = vsel %vm4779_vm10, %v321_v63, %v639_v59  ;;  %v333_v14 = vshrl.u32 %v282_v61, 16  ;;  %v336_v18 = vshll.u32 %v282_v61, 16  ;;  %v690_v31 = vld [vmem:[#allocation2 + $0x60] sm:$0xf] }
  0x32   : > { %641 = vst [vmem:[#allocation2 + $0xc] sm:$0xf] %v640_v11  ;;  %642 = vst.msk [vmem:[#allocation2 + $0x10] sm:$0xf] %vm224_vm0, %v330_v10  ;;  %v474_v15 = vor.u32 %v472_v60, %v471_v7  ;;  %v475_v16 = vrot.slane %v471_v7, 4  ;;  %v479_v17 = vrot.slane %v477_v8, 7  ;;  %v646_v42 = vsel %vm4823_vm13, %v331_v6, %v645_v26 }
  0x33   : > { %v335_v22 = vrot.slane %v333_v14, 7  ;;  %v341_v23 = vshrl.u32 %v283_v4, 16  ;;  %v344_v24 = vshll.u32 %v283_v4, 16  ;;  %v435_v25 = vshrl.u32 %v294_v9, 16  ;;  %v701_v38 = vld [vmem:[#allocation2 + $0x74] sm:$0x1] }
  0x34   : > { %v482_v27 = vor.u32 %v480_v12, %v479_v17  ;;  %v484_v28 = vrot.slane %v479_v17, 4  ;;  %v705_v29 = vsel %vm4779_vm10, %v474_v15, %v704_v13  ;;  %v438_v30 = vshll.u32 %v294_v9, 16  ;;  %v652_v43 = vld [vmem:[#allocation2 + $0x20] sm:$0x1]  ;;  %v694_v50 = vld [vmem:[#allocation2 + $0x68] sm:$0x1] }
  0x35   : > { %706 = vst [vmem:[#allocation2 + $0x78] sm:$0xf] %v705_v29  ;;  %v338_v32 = vor.u32 %v336_v18, %v335_v22  ;;  %v339_v33 = vrot.slane %v335_v22, 4  ;;  %v343_v35 = vrot.slane %v341_v23, 7  ;;  %v437_v37 = vrot.slane %v435_v25, 7  ;;  %s4566_s17 = smov 28  }
  0x36   : > { %v483_v39 = vsel %vm4799_vm12, %v475_v16, %v482_v27  ;;  %v443_v40 = vshrl.u32 %v295_v20, 16  ;;  %v446_v41 = vshll.u32 %v295_v20, 16  ;;  %v708_v44 = vld [vmem:[#allocation2 + $0x80] sm:$0x1]  ;;  %647 = vst [vmem:[#allocation2 + $0x14] sm:$0x1] %v646_v42  ;;  %v702_v57 = vsel %vm4823_vm13, %v467_v58, %v701_v38 }
  0x37   : > { %707 = vst.msk [vmem:[#allocation2 + $0x7c] sm:$0xf] %vm224_vm0, %v483_v39  ;;  %v346_v45 = vor.u32 %v344_v24, %v343_v35  ;;  %v348_v46 = vrot.slane %v343_v35, 4  ;;  %v649_v48 = vsel %vm4779_vm10, %v338_v32, %v648_v19  ;;  %v440_v49 = vor.u32 %v438_v30, %v437_v37  ;;  %v2516_v52 = vld [vmem:[#allocation2 + $0x6c] sm:$0xe]  ;;  %s4392_s30 = smul.u32 768, %s4620_s22 }
  0x38   : > { %v1971_v53 = vld [vmem:[#allocation2 + $0x6c] sm:$0xf]  ;;  %650 = vst [vmem:[#allocation2 + $0x18] sm:$0xf] %v649_v48  ;;  %v441_v55 = vrot.slane %v437_v37, 4  ;;  %v445_v56 = vrot.slane %v443_v40, 7  ;;  %v709_v63 = vsel %vm4823_vm13, %v484_v28, %v708_v44 }
  0x39   : > { %v4444_v54 = vld [vmem:[#allocation2 + $0x6c] sm:$0xff]   ;;  %v347_v60 = vsel %vm4799_vm12, %v339_v33, %v346_v45  ;;  %v691_v61 = vsel %vm4779_vm10, %v440_v49, %v690_v31  ;;  %703 = vst [vmem:[#allocation2 + $0x74] sm:$0x1] %v702_v57  ;;  %v653_v62 = vsel %vm4823_vm13, %v348_v46, %v652_v43  ;;  %710 = vst [vmem:[#allocation2 + $0x80] sm:$0x1] %v709_v63  ;;  %v2188_v4 = vshrl.u32 %v1971_v53, 16  ;;  %s5930_s8 = scalar_lea.hbm %s5981_s5, %s4392_s30 }
  0x3a   : > { %v4445_v59 = vld [vmem:[#allocation2 + $0xc] sm:$0xff]   ;;  %1898 = vrot.lane.b32.xlu1 %v4444_v54, %s4561_s12  ;;  %651 = vst.msk [vmem:[#allocation2 + $0x1c] sm:$0xf] %vm224_vm0, %v347_v60  ;;  %v448_v47 = vor.u32 %v446_v41, %v445_v56  ;;  %v450_v58 = vrot.slane %v445_v56, 4  ;;  %692 = vst [vmem:[#allocation2 + $0x60] sm:$0xf] %v691_v61 }
  0x3b   : > { %v2492_v2 = vld [vmem:[#allocation2 + $0xc] sm:$0xe]  ;;  %v2493_v3 = vld [vmem:[#allocation2 + $0x10] sm:$0xf]  ;;  %654 = vst [vmem:[#allocation2 + $0x20] sm:$0x1] %v653_v62  ;;  %1882 = vrot.lane.b32.xlu0 %v4445_v59, %s4561_s12 }
  0x3c   : > { %v2590_v5 = vrot.slane %v2493_v3, 5  ;;  %v2517_v6 = vld [vmem:[#allocation2 + $0x70] sm:$0xf]  ;;  %v4267_v7 = vrot.slane %v2516_v52, 9  ;;  %v449_v8 = vsel %vm4799_vm12, %v441_v55, %v448_v47  ;;  %v695_v9 = vsel %vm4823_vm13, %v450_v58, %v694_v50  ;;  %v3560_v12 = vld [vmem:[#allocation2 + $0x78] sm:$0xe] }
  0x3d   : > { %v4259_v10 = vrot.slane %v2492_v2, 9  ;;  %v2646_v11 = vrot.slane %v2517_v6, 5  ;;  %693 = vst.msk [vmem:[#allocation2 + $0x64] sm:$0xf] %vm224_vm0, %v449_v8  ;;  %696 = vst [vmem:[#allocation2 + $0x68] sm:$0x1] %v695_v9 }
  0x3e   : > { %v2592_v13 = vrot.slane %v2590_v5, 4  ;;  %v4331_v14 = vrot.slane %v3560_v12, 9  ;;  %v4856_v15 = vld [vmem:[#allocation2 + $0x70] sm:$0xf]  ;;  %v4858_v16 = vrot.slane %v2188_v4, 4  ;;  %v2191_v17 = vshll.u32 %v1971_v53, 16 }
  0x3f   : > { %v4446_v18 = vld [vmem:[#allocation2 + $0x78] sm:$0xff]   ;;  %v2494_v19 = vld [vmem:[#allocation2 + $0x14] sm:$0x1]  ;;  %v2648_v20 = vrot.slane %v2646_v11, 4  ;;  %v2591_v25 = vsel %vm4765_vm6, %v4259_v10, %v2590_v5  ;;  %v2197_v29 = vshll.u32 %v4856_v15, 16  ;;  %v4868_v33 = vsel %vm4765_vm6, %v4267_v7, %v2646_v11 }
  0x40   : > { %v2593_v22 = vrot.slane %v2494_v19, 5  ;;  %v3536_v23 = vld [vmem:[#allocation2 + $0x18] sm:$0xe]  ;;  %v2193_v24 = vrot.slane %v2191_v17, 5  ;;  %2942 = vrot.lane.b32.xlu1 %v4446_v18, %s4562_s13  ;;  %v2518_v26 = vld [vmem:[#allocation2 + $0x74] sm:$0x1] }
  0x41   : > { %v4323_v27 = vrot.slane %v3536_v23, 9  ;;  %v3561_v28 = vld [vmem:[#allocation2 + $0x7c] sm:$0xf]  ;;  %v1470_v31 = vld [vmem:[#allocation2 + $0x60] sm:$0xe]  ;;  %v2649_v35 = vrot.slane %v2518_v26, 5 }
  0x42   : > { %v4447_v30 = vld [vmem:[#allocation2 + $0x18] sm:$0xff]   ;;  %v2594_v32 = vsel %vm4765_vm6, %v2592_v13, %v2593_v22  ;;  %v4203_v37 = vrot.slane %v1470_v31, 9  ;;  %v3538_v39 = vld [vmem:[#allocation2 + $0x20] sm:$0x1]  ;;  %v3690_v40 = vrot.slane %v3561_v28, 5  ;;  %v2194_v41 = vor.u32 %v2193_v24, %v4858_v16 }
  0x43   : > { %v3537_v38 = vld [vmem:[#allocation2 + $0x1c] sm:$0xf]  ;;  %2926 = vrot.lane.b32.xlu0 %v4447_v30, %s4562_s13  ;;  %v4275_v42 = vcombine.low %v2591_v25, %v2594_v32  ;;  %v4874_v43 = vsel %vm4765_vm6, %v2648_v20, %v2649_v35  ;;  %v3637_v45 = vrot.slane %v3538_v39, 5  ;;  %v3562_v46 = vld [vmem:[#allocation2 + $0x80] sm:$0x1]  ;;  %v2199_v20 = vrot.slane %v2197_v29, 5 }
  0x44   : > { %v3634_v44 = vrot.slane %v3537_v38, 5  ;;  %v922_v48 = vld [vmem:[#allocation2 + $0x60] sm:$0xf]  ;;  %v1471_v49 = vld [vmem:[#allocation2 + $0x64] sm:$0xf]  ;;  %v4283_v52 = vcombine.low %v4868_v33, %v4874_v43  ;;  %v4880_v53 = vsel %vm4765_vm6, %v4331_v14, %v3690_v40  ;;  %v3692_v54 = vrot.slane %v3690_v40, 4 }
  0x45   : > { %v1472_v50 = vld [vmem:[#allocation2 + $0x68] sm:$0x1]  ;;  %v3693_v55 = vrot.slane %v3562_v46, 5  ;;  %v1603_v56 = vrot.slane %v1471_v49, 5  ;;  %v923_v61 = vld [vmem:[#allocation2 + $0x64] sm:$0xf] }
  0x46   : > { %v1606_v57 = vrot.slane %v1472_v50, 5  ;;  %v3635_v59 = vsel %vm4765_vm6, %v4323_v27, %v3634_v44  ;;  %v3636_v60 = vrot.slane %v3634_v44, 4  ;;  %v924_v63 = vld [vmem:[#allocation2 + $0x68] sm:$0x1]  ;;  %v1142_v47 = vshrl.u32 %v922_v48, 16 }
  0x47   : > { %v4886_v62 = vsel %vm4765_vm6, %v3692_v54, %v3693_v55  ;;  %v1145_v58 = vshll.u32 %v922_v48, 16  ;;  %v1151_v2 = vshll.u32 %v923_v61, 16  ;;  %v1604_v3 = vsel %vm4765_vm6, %v4203_v37, %v1603_v56  ;;  %2748 = vrot.lane.b32.xlu0 %v4275_v42, %s4563_s14  ;;  %v1947_v7 = vld [vmem:[#allocation2 + $0xc] sm:$0xf]  ;;  %v1973_v12 = vld [vmem:[#allocation2 + $0x74] sm:$0x1] }
  0x48   : > { %v1605_v4 = vrot.slane %v1603_v56, 4  ;;  %v3638_v5 = vsel %vm4765_vm6, %v3636_v60, %v3637_v45  ;;  %v4347_v6 = vcombine.low %v4880_v53, %v4886_v62  ;;  %v1144_v9 = vrot.slane %v1142_v47, 4  ;;  %v1948_v23 = vld [vmem:[#allocation2 + $0x10] sm:$0xf]  ;;  %v1949_v27 = vld [vmem:[#allocation2 + $0x14] sm:$0x1] }
  0x49   : > { %v4339_v8 = vcombine.low %v3635_v59, %v3638_v5  ;;  %v1147_v10 = vrot.slane %v1145_v58, 5  ;;  %v1153_v11 = vrot.slane %v1151_v2, 5  ;;  %v1155_v14 = vshrl.u32 %v923_v61, 16  ;;  %v3015_v29 = vld [vmem:[#allocation2 + $0x78] sm:$0xf] }
  0x4a   : > { %v1607_v13 = vsel %vm4765_vm6, %v1605_v4, %v1606_v57  ;;  %v1161_v16 = vshll.u32 %v924_v63, 16  ;;  %v2195_v17 = vrot.slane %v2194_v41, 4  ;;  %v2201_v22 = vshrl.u32 %v4856_v15, 16  ;;  %v3016_v43 = vld [vmem:[#allocation2 + $0x7c] sm:$0xf] }
  0x4b   : > { %v4219_v18 = vcombine.low %v1604_v3, %v1607_v13  ;;  %v1148_v19 = vor.u32 %v1147_v10, %v1144_v9  ;;  %3792 = vrot.lane.b32.xlu0 %v4339_v8, %s4564_s15  ;;  %v1157_v24 = vrot.slane %v1155_v14, 4  ;;  %v2207_v26 = vshll.u32 %v1973_v12, 16  ;;  %v3017_v54 = vld [vmem:[#allocation2 + $0x80] sm:$0x1]  ;;  %v2991_v61 = vld [vmem:[#allocation2 + $0x18] sm:$0xf] }
  0x4c   : > { %v1163_v25 = vrot.slane %v1161_v16, 5  ;;  %v1996_v28 = vshrl.u32 %v1947_v7, 16  ;;  %v2200_v31 = vsel %vm4785_vm11, %v2195_v17, %v2199_v20  ;;  %v2203_v32 = vrot.slane %v2201_v22, 4  ;;  %v2992_v2 = vld [vmem:[#allocation2 + $0x1c] sm:$0xf] }
  0x4d   : > { %1721 = vrot.lane.b32.xlu1 %v4219_v18, %s4559_s10  ;;  %v1149_v30 = vrot.slane %v1148_v19, 4  ;;  %v1999_v33 = vshll.u32 %v1947_v7, 16  ;;  %v1158_v35 = vor.u32 %v1157_v24, %v1153_v11  ;;  %v2209_v15 = vrot.slane %v2207_v26, 5  ;;  %v925_v7 = vld [vmem:[#allocation2 + $0x6c] sm:$0xf] }
  0x4e   : > { %v1998_v37 = vrot.slane %v1996_v28, 4  ;;  %v2005_v38 = vshll.u32 %v1948_v23, 16  ;;  %v2204_v40 = vor.u32 %v2203_v32, %v2199_v20  ;;  %v2009_v42 = vshrl.u32 %v1948_v23, 16  ;;  %v926_v18 = vld [vmem:[#allocation2 + $0x70] sm:$0xf] }
  0x4f   : > { %v1154_v39 = vsel %vm4785_vm11, %v1149_v30, %v1153_v11  ;;  %v2001_v41 = vrot.slane %v1999_v33, 5  ;;  %v1159_v44 = vrot.slane %v1158_v35, 4  ;;  %v2015_v46 = vshll.u32 %v1949_v27, 16  ;;  %v2993_v11 = vld [vmem:[#allocation2 + $0x20] sm:$0x1] }
  0x50   : > { %v2007_v45 = vrot.slane %v2005_v38, 5  ;;  %v3232_v48 = vshrl.u32 %v3015_v29, 16  ;;  %v2205_v49 = vrot.slane %v2204_v40, 4  ;;  %v2011_v53 = vrot.slane %v2009_v42, 4  ;;  %v927_v35 = vld [vmem:[#allocation2 + $0x74] sm:$0x1] }
  0x51   : > { %2764 = vrot.lane.b32.xlu1 %v4283_v52, %s4563_s14  ;;  %v2002_v50 = vor.u32 %v2001_v41, %v1998_v37  ;;  %v3235_v55 = vshll.u32 %v3015_v29, 16  ;;  %v1164_v56 = vsel %vm4785_vm11, %v1159_v44, %v1163_v25  ;;  %v2017_v57 = vrot.slane %v2015_v46, 5  ;;  %v901_v41 = vld [vmem:[#allocation2 + $0xc] sm:$0xf]  ;;  %v902_v46 = vld [vmem:[#allocation2 + $0x10] sm:$0xf] }
  0x52   : > { %v3234_v59 = vrot.slane %v3232_v48, 4  ;;  %v3241_v60 = vshll.u32 %v3016_v43, 16  ;;  %v4187_v62 = vcombine.low %v1154_v39, %v1164_v56  ;;  %v2210_v63 = vsel %vm4785_vm11, %v2205_v49, %v2209_v15 }
  0x53   : > { %v2003_v47 = vrot.slane %v2002_v50, 4  ;;  %v2012_v58 = vor.u32 %v2011_v53, %v2007_v45  ;;  %v4251_v52 = vcombine.low %v2200_v31, %v2210_v63  ;;  %v3237_v3 = vrot.slane %v3235_v55, 5 }
  0x54   : > { %v3243_v4 = vrot.slane %v3241_v60, 5  ;;  %v3245_v5 = vshrl.u32 %v3016_v43, 16  ;;  %1397 = vrot.lane.b32.xlu0 %v4187_v62, %s4560_s11  ;;  %v3251_v10 = vshll.u32 %v3017_v54, 16  ;;  %v3040_v12 = vshrl.u32 %v2991_v61, 16  ;;  %v1473_v60 = vld [vmem:[#allocation2 + $0x6c] sm:$0xe] }
  0x55   : > { %3808 = vrot.lane.b32.xlu1 %v4347_v6, %s4564_s15  ;;  %v2008_v8 = vsel %vm4785_vm11, %v2003_v47, %v2007_v45  ;;  %v2013_v9 = vrot.slane %v2012_v58, 4  ;;  %v3238_v13 = vor.u32 %v3237_v3, %v3234_v59  ;;  %v3043_v16 = vshll.u32 %v2991_v61, 16  ;;  %v1474_v58 = vld [vmem:[#allocation2 + $0x70] sm:$0xf] }
  0x56   : > { %v3247_v14 = vrot.slane %v3245_v5, 4  ;;  %v3049_v17 = vshll.u32 %v2992_v2, 16  ;;  %v3253_v20 = vrot.slane %v3251_v10, 5  ;;  %v3042_v22 = vrot.slane %v3040_v12, 4  ;;  %v1475_v5 = vld [vmem:[#allocation2 + $0x74] sm:$0x1] }
  0x57   : > { %v2018_v19 = vsel %vm4785_vm11, %v2013_v9, %v2017_v57  ;;  %v3053_v6 = vshrl.u32 %v2992_v2, 16  ;;  %v3239_v24 = vrot.slane %v3238_v13, 4  ;;  %v3045_v26 = vrot.slane %v3043_v16, 5  ;;  %v903_v57 = vld [vmem:[#allocation2 + $0x14] sm:$0x1] }
  0x58   : > { %v4243_v23 = vcombine.low %v2008_v8, %v2018_v19  ;;  %v3248_v25 = vor.u32 %v3247_v14, %v3243_v4  ;;  %v3051_v27 = vrot.slane %v3049_v17, 5  ;;  %v3059_v30 = vshll.u32 %v2993_v11, 16  ;;  %v1450_v12 = vld [vmem:[#allocation2 + $0x10] sm:$0xf] }
  0x59   : > { %2443 = vrot.lane.b32.xlu1 %v4251_v52, %s4565_s16  ;;  %v3055_v28 = vrot.slane %v3053_v6, 4  ;;  %v1166_v31 = vshrl.u32 %v925_v7, 16  ;;  %v3244_v32 = vsel %vm4785_vm11, %v3239_v24, %v3243_v4  ;;  %v3046_v29 = vor.u32 %v3045_v26, %v3042_v22 }
  0x5a   : > { %2427 = vrot.lane.b32.xlu0 %v4243_v23, %s4565_s16  ;;  %v3249_v33 = vrot.slane %v3248_v25, 4  ;;  %v1169_v15 = vshll.u32 %v925_v7, 16  ;;  %v3061_v38 = vrot.slane %v3059_v30, 5  ;;  %v1175_v40 = vshll.u32 %v926_v18, 16  ;;  %v1449_v7 = vld [vmem:[#allocation2 + $0xc] sm:$0xe] }
  0x5b   : > { %v3056_v37 = vor.u32 %v3055_v28, %v3051_v27  ;;  %v1168_v39 = vrot.slane %v1166_v31, 4  ;;  %v3047_v43 = vrot.slane %v3046_v29, 4  ;;  %v1179_v45 = vshrl.u32 %v926_v18, 16  ;;  %v1451_v18 = vld [vmem:[#allocation2 + $0x14] sm:$0x1] }
  0x5c   : > { %v3254_v42 = vsel %vm4785_vm11, %v3249_v33, %v3253_v20  ;;  %v1171_v44 = vrot.slane %v1169_v15, 5  ;;  %v1177_v50 = vrot.slane %v1175_v40, 5  ;;  %v1185_v53 = vshll.u32 %v927_v35, 16  ;;  %v1974_v23 = vld [vmem:[#allocation2 + $0x78] sm:$0xf] }
  0x5d   : > { %v4315_v48 = vcombine.low %v3244_v32, %v3254_v42  ;;  %v3057_v49 = vrot.slane %v3056_v37, 4  ;;  %v3052_v54 = vsel %vm4785_vm11, %v3047_v43, %v3051_v27  ;;  %v1181_v56 = vrot.slane %v1179_v45, 4  ;;  %v1975_v33 = vld [vmem:[#allocation2 + $0x7c] sm:$0xf]  ;;  %v1976_v29 = vld [vmem:[#allocation2 + $0x80] sm:$0x1] }
  0x5e   : > { %v1172_v55 = vor.u32 %v1171_v44, %v1168_v39  ;;  %v974_v59 = vshrl.u32 %v901_v41, 16  ;;  %v1187_v62 = vrot.slane %v1185_v53, 5  ;;  %v977_v63 = vshll.u32 %v901_v41, 16  ;;  %v1950_v39 = vld [vmem:[#allocation2 + $0x18] sm:$0xf] }
  0x5f   : > { %3487 = vrot.lane.b32.xlu1 %v4315_v48, %s4566_s17  ;;  %v3062_v61 = vsel %vm4785_vm11, %v3057_v49, %v3061_v38  ;;  %v983_v47 = vshll.u32 %v902_v46, 16  ;;  %v1182_v3 = vor.u32 %v1181_v56, %v1177_v50  ;;  %v987_v10 = vshrl.u32 %v902_v46, 16  ;;  %v1951_v49 = vld [vmem:[#allocation2 + $0x1c] sm:$0xf] }
  0x60   : > { %v4307_v2 = vcombine.low %v3052_v54, %v3062_v61  ;;  %v1173_v52 = vrot.slane %v1172_v55, 4  ;;  %v976_v4 = vrot.slane %v974_v59, 4  ;;  %v979_v8 = vrot.slane %v977_v63, 5  ;;  %v1952_v55 = vld [vmem:[#allocation2 + $0x20] sm:$0x1] }
  0x61   : > { %v985_v9 = vrot.slane %v983_v47, 5  ;;  %v993_v11 = vshll.u32 %v903_v57, 16  ;;  %v1183_v14 = vrot.slane %v1182_v3, 4  ;;  %v4204_v16 = vrot.slane %v1473_v60, 9  ;;  %v2520_v63 = vld [vmem:[#allocation2 + $0x7c] sm:$0xf] }
  0x62   : > { %3471 = vrot.lane.b32.xlu0 %v4307_v2, %s4566_s17  ;;  %v1178_v13 = vsel %vm4785_vm11, %v1173_v52, %v1177_v50  ;;  %v1610_v17 = vrot.slane %v1474_v58, 5  ;;  %v980_v19 = vor.u32 %v979_v8, %v976_v4  ;;  %v989_v20 = vrot.slane %v987_v10, 4  ;;  %v4448_v58 = vld [vmem:[#allocation2 + $0x78] sm:$0xff]   ;;  %v2521_v4 = vld [vmem:[#allocation2 + $0x80] sm:$0x1] }
  0x63   : > { %v995_v22 = vrot.slane %v993_v11, 5  ;;  %v1613_v6 = vrot.slane %v1475_v5, 5  ;;  %v1188_v24 = vsel %vm4785_vm11, %v1183_v14, %v1187_v62  ;;  %v4196_v27 = vrot.slane %v1449_v7, 9  ;;  %v2519_v62 = vld [vmem:[#allocation2 + $0x78] sm:$0xe] }
  0x64   : > { %v1611_v25 = vsel %vm4765_vm6, %v4204_v16, %v1610_v17  ;;  %v1612_v26 = vrot.slane %v1610_v17, 4  ;;  %v4188_v28 = vcombine.low %v1178_v13, %v1188_v24  ;;  %v981_v30 = vrot.slane %v980_v19, 4  ;;  %v2495_v10 = vld [vmem:[#allocation2 + $0x18] sm:$0xe]  ;;  %v300_v11 = vld [vmem:[%s4763_s9 + $0x50] sm:$0xf] }
  0x65   : > { %v990_v31 = vor.u32 %v989_v20, %v985_v9  ;;  %v1554_v32 = vrot.slane %v1450_v12, 5  ;;  %v1557_v15 = vrot.slane %v1451_v18, 5  ;;  %v2212_v37 = vshrl.u32 %v1974_v23, 16  ;;  %v2496_v17 = vld [vmem:[#allocation2 + $0x1c] sm:$0xf] }
  0x66   : > { %v1614_v35 = vsel %vm4765_vm6, %v1612_v26, %v1613_v6  ;;  %v2215_v38 = vshll.u32 %v1974_v23, 16  ;;  %1399 = vrot.lane.b32.xlu1 %v4188_v28, %s4560_s11  ;;  %v986_v40 = vsel %vm4785_vm11, %v981_v30, %v985_v9  ;;  %v2221_v48 = vshll.u32 %v1975_v33, 16  ;;  %v2497_v6 = vld [vmem:[#allocation2 + $0x20] sm:$0x1] }
  0x67   : > { %v991_v41 = vrot.slane %v990_v31, 4  ;;  %v4220_v42 = vcombine.low %v1611_v25, %v1614_v35  ;;  %v1555_v43 = vsel %vm4765_vm6, %v4196_v27, %v1554_v32  ;;  %v1556_v44 = vrot.slane %v1554_v32, 4  ;;  %v4449_v27 = vld [vmem:[#allocation2 + $0x18] sm:$0xff]  }
  0x68   : > { %v2214_v45 = vrot.slane %v2212_v37, 4  ;;  %v2217_v46 = vrot.slane %v2215_v38, 5  ;;  %v2225_v53 = vshrl.u32 %v1975_v33, 16  ;;  %v2231_v54 = vshll.u32 %v1976_v29, 16 }
  0x69   : > { %v996_v50 = vsel %vm4785_vm11, %v991_v41, %v995_v22  ;;  %v2020_v56 = vshrl.u32 %v1950_v39, 16  ;;  %v1558_v59 = vsel %vm4765_vm6, %v1556_v44, %v1557_v15  ;;  %v2223_v61 = vrot.slane %v2221_v48, 5  ;;  %v301_v15 = vld [vmem:[%s4763_s9 + $0x54] sm:$0xf] }
  0x6a   : > { %v4180_v57 = vcombine.low %v986_v40, %v996_v50  ;;  %v2218_v60 = vor.u32 %v2217_v46, %v2214_v45  ;;  %1723 = vrot.lane.b32.xlu1 %v4220_v42, %s4559_s10  ;;  %v4212_v47 = vcombine.low %v1555_v43, %v1558_v59  ;;  %v2227_v2 = vrot.slane %v2225_v53, 4  ;;  %v284_v42 = vld [vmem:[%s4763_s9 + $0x10] sm:$0xf]  ;;  %v285_v48 = vld [vmem:[%s4763_s9 + $0x14] sm:$0xf] }
  0x6b   : > { %v2233_v52 = vrot.slane %v2231_v54, 5  ;;  %v2022_v3 = vrot.slane %v2020_v56, 4  ;;  %v2023_v7 = vshll.u32 %v1950_v39, 16  ;;  %v2029_v8 = vshll.u32 %v1951_v49, 16 }
  0x6c   : > { %1383 = vrot.lane.b32.xlu0 %v4180_v57, %s4560_s11  ;;  %v2219_v5 = vrot.slane %v2218_v60, 4  ;;  %v2033_v9 = vshrl.u32 %v1951_v49, 16  ;;  %v2228_v12 = vor.u32 %v2227_v2, %v2223_v61  ;;  %v2039_v13 = vshll.u32 %v1952_v55, 16  ;;  %v928_v49 = vld [vmem:[#allocation2 + $0x78] sm:$0xf] }
  0x6d   : > { %v4268_v14 = vrot.slane %v2519_v62, 9  ;;  %v2653_v16 = vrot.slane %v2520_v63, 5  ;;  %v2025_v19 = vrot.slane %v2023_v7, 5  ;;  %v2031_v20 = vrot.slane %v2029_v8, 5  ;;  %v929_v2 = vld [vmem:[#allocation2 + $0x7c] sm:$0xf] }
  0x6e   : > { %v2224_v18 = vsel %vm4785_vm11, %v2219_v5, %v2223_v61  ;;  %v2035_v22 = vrot.slane %v2033_v9, 4  ;;  %1900 = vrot.lane.b32.xlu1 %v4448_v58, %s4561_s12  ;;  %v2229_v23 = vrot.slane %v2228_v12, 4  ;;  %v2041_v24 = vrot.slane %v2039_v13, 5  ;;  %v711_v61 = vld [vmem:[#allocation2 + $0x84] sm:$0xf] }
  0x6f   : > { %v2654_v25 = vsel %vm4765_vm6, %v4268_v14, %v2653_v16  ;;  %v2655_v26 = vrot.slane %v2653_v16, 4  ;;  %v2026_v28 = vor.u32 %v2025_v19, %v2022_v3  ;;  %v2656_v31 = vrot.slane %v2521_v4, 5  ;;  %v655_v5 = vld [vmem:[#allocation2 + $0x24] sm:$0xf]  ;;  %v715_v7 = vld [vmem:[#allocation2 + $0x8c] sm:$0x1] }
  0x70   : > { %1707 = vrot.lane.b32.xlu0 %v4212_v47, %s4559_s10  ;;  %v2036_v30 = vor.u32 %v2035_v22, %v2031_v20  ;;  %v4260_v32 = vrot.slane %v2495_v10, 9  ;;  %v2234_v33 = vsel %vm4785_vm11, %v2229_v23, %v2233_v52  ;;  %v2597_v29 = vrot.slane %v2496_v17, 5  ;;  %v659_v13 = vld [vmem:[#allocation2 + $0x2c] sm:$0x1]  ;;  %v930_v14 = vld [vmem:[#allocation2 + $0x80] sm:$0x1] }
  0x71   : > { %v2600_v35 = vrot.slane %v2497_v6, 5  ;;  %v486_v37 = vshrl.u32 %v300_v11, 16  ;;  %v4252_v38 = vcombine.low %v2224_v18, %v2234_v33  ;;  %v2027_v39 = vrot.slane %v2026_v28, 4 }
  0x72   : > { %v2037_v40 = vrot.slane %v2036_v30, 4  ;;  %v2657_v41 = vsel %vm4765_vm6, %v2655_v26, %v2656_v31  ;;  %v2598_v44 = vsel %vm4765_vm6, %v4260_v32, %v2597_v29  ;;  %v2599_v45 = vrot.slane %v2597_v29, 4 }
  0x73   : > { %v4284_v43 = vcombine.low %v2654_v25, %v2657_v41  ;;  %v488_v46 = vrot.slane %v486_v37, 7  ;;  %2445 = vrot.lane.b32.xlu1 %v4252_v38, %s4565_s16  ;;  %v2032_v50 = vsel %vm4785_vm11, %v2027_v39, %v2031_v20  ;;  %v489_v54 = vshll.u32 %v300_v11, 16  ;;  %v904_v20 = vld [vmem:[#allocation2 + $0x18] sm:$0xf]  ;;  %v4978_v25 = vld [vmem:[#allocation2 + $0x1c] sm:$0xf] }
  0x74   : > { %1884 = vrot.lane.b32.xlu0 %v4449_v27, %s4561_s12  ;;  %v2042_v53 = vsel %vm4785_vm11, %v2037_v40, %v2041_v24  ;;  %v494_v55 = vshrl.u32 %v301_v15, 16  ;;  %v2601_v57 = vsel %vm4765_vm6, %v2599_v45, %v2600_v35  ;;  %v497_v60 = vshll.u32 %v301_v15, 16  ;;  %v4989_v41 = vld [vmem:[#allocation2 + $0x20] sm:$0x1] }
  0x75   : > { %v4244_v56 = vcombine.low %v2032_v50, %v2042_v53  ;;  %v492_v59 = vrot.slane %v488_v46, 4  ;;  %v4276_v62 = vcombine.low %v2598_v44, %v2601_v57  ;;  %v491_v63 = vor.u32 %v489_v54, %v488_v46 }
  0x76   : > { %v496_v47 = vrot.slane %v494_v55, 7  ;;  %v350_v58 = vshrl.u32 %v284_v42, 16  ;;  %v353_v52 = vshll.u32 %v284_v42, 16  ;;  %v358_v3 = vshrl.u32 %v285_v48, 16 }
  0x77   : > { %v361_v4 = vshll.u32 %v285_v48, 16  ;;  %v1190_v8 = vshrl.u32 %v928_v49, 16  ;;  %2766 = vrot.lane.b32.xlu1 %v4284_v43, %s4563_s14  ;;  %v712_v11 = vsel %vm4779_vm10, %v491_v63, %v711_v61  ;;  %v1193_v18 = vshll.u32 %v928_v49, 16 }
  0x78   : > { %2429 = vrot.lane.b32.xlu0 %v4244_v56, %s4565_s16  ;;  %v499_v9 = vor.u32 %v497_v60, %v496_v47  ;;  %v501_v10 = vrot.slane %v496_v47, 4  ;;  %v352_v12 = vrot.slane %v350_v58, 7  ;;  %713 = vst [vmem:[#allocation2 + $0x84] sm:$0xf] %v712_v11  ;;  %v360_v16 = vrot.slane %v358_v3, 7 }
  0x79   : > { %v1192_v17 = vrot.slane %v1190_v8, 4  ;;  %v1199_v19 = vshll.u32 %v929_v2, 16  ;;  %v1195_v28 = vrot.slane %v1193_v18, 5  ;;  %v1203_v32 = vshrl.u32 %v929_v2, 16 }
  0x7a   : > { %v500_v22 = vsel %vm4799_vm12, %v492_v59, %v499_v9  ;;  %v355_v6 = vor.u32 %v353_v52, %v352_v12  ;;  %v356_v23 = vrot.slane %v352_v12, 4  ;;  %v716_v24 = vsel %vm4823_vm13, %v501_v10, %v715_v7 }
  0x7b   : > { %714 = vst.msk [vmem:[#allocation2 + $0x88] sm:$0xf] %vm224_vm0, %v500_v22  ;;  %v363_v26 = vor.u32 %v361_v4, %v360_v16  ;;  %v365_v27 = vrot.slane %v360_v16, 4  ;;  %717 = vst [vmem:[#allocation2 + $0x8c] sm:$0x1] %v716_v24  ;;  %v1201_v30 = vrot.slane %v1199_v19, 5  ;;  %v1196_v37 = vor.u32 %v1195_v28, %v1192_v17 }
  0x7c   : > { %2750 = vrot.lane.b32.xlu0 %v4276_v62, %s4563_s14  ;;  %v656_v31 = vsel %vm4779_vm10, %v355_v6, %v655_v5  ;;  %v1209_v33 = vshll.u32 %v930_v14, 16  ;;  %v998_v29 = vshrl.u32 %v904_v20, 16  ;;  %v1001_v38 = vshll.u32 %v904_v20, 16 }
  0x7d   : > { %v364_v35 = vsel %vm4799_vm12, %v356_v23, %v363_v26  ;;  %657 = vst [vmem:[#allocation2 + $0x24] sm:$0xf] %v656_v31  ;;  %v660_v15 = vsel %vm4823_vm13, %v365_v27, %v659_v13  ;;  %v1205_v39 = vrot.slane %v1203_v32, 4  ;;  %v1197_v43 = vrot.slane %v1196_v37, 4 }
  0x7e   : > { %658 = vst.msk [vmem:[#allocation2 + $0x28] sm:$0xf] %vm224_vm0, %v364_v35  ;;  %661 = vst [vmem:[#allocation2 + $0x2c] sm:$0x1] %v660_v15  ;;  %v1211_v40 = vrot.slane %v1209_v33, 5  ;;  %v1000_v42 = vrot.slane %v998_v29, 4 }
  0x7f   : > { %v1003_v44 = vrot.slane %v1001_v38, 5  ;;  %v1007_v45 = vshll.u32 %v4978_v25, 16  ;;  %v1011_v46 = vshrl.u32 %v4978_v25, 16  ;;  %v3018_v48 = vld [vmem:[#allocation2 + $0x84] sm:$0xf]  ;;  %v1206_v50 = vor.u32 %v1205_v39, %v1201_v30 }
  0x80   : > { %v3563_v49 = vld [vmem:[#allocation2 + $0x84] sm:$0xe]  ;;  %v3256_v53 = vshrl.u32 %v3018_v48, 16  ;;  %v3259_v54 = vshll.u32 %v3018_v48, 16  ;;  %v1017_v56 = vshll.u32 %v4989_v41, 16  ;;  %v1202_v60 = vsel %vm4785_vm11, %v1197_v43, %v1201_v30 }
  0x81   : > { %v4332_v55 = vrot.slane %v3563_v49, 9  ;;  %v1207_v61 = vrot.slane %v1206_v50, 4  ;;  %v1004_v62 = vor.u32 %v1003_v44, %v1000_v42  ;;  %v1476_v43 = vld [vmem:[#allocation2 + $0x78] sm:$0xe]  ;;  %vm1429_vm15 = vcmask 64544  }
  0x82   : > { %v4450_v57 = vld [vmem:[#allocation2 + $0x84] sm:$0xff]   ;;  %v3020_v63 = vld [vmem:[#allocation2 + $0x8c] sm:$0x1]  ;;  %v3258_v47 = vrot.slane %v3256_v53, 4  ;;  %v3261_v58 = vrot.slane %v3259_v54, 5  ;;  %vm1753_vm1 = vcmask 97344  }
  0x83   : > { %v3019_v59 = vld [vmem:[#allocation2 + $0x88] sm:$0xf]  ;;  %2944 = vrot.lane.b32.xlu1 %v4450_v57, %s4562_s13  ;;  %v3275_v3 = vshll.u32 %v3020_v63, 16  ;;  %v1212_v5 = vsel %vm4785_vm11, %v1207_v61, %v1211_v40  ;;  %v4999_v7 = vrot.slane %v1004_v62, 4  ;;  %v3565_v28 = vld [vmem:[#allocation2 + $0x8c] sm:$0x1] }
  0x84   : > { %v3265_v2 = vshll.u32 %v3019_v59, 16  ;;  %v3269_v52 = vshrl.u32 %v3019_v59, 16  ;;  %v2994_v4 = vld [vmem:[#allocation2 + $0x24] sm:$0xf]  ;;  %v3262_v9 = vor.u32 %v3261_v58, %v3258_v47  ;;  %v5001_v18 = vcombine.low %v1202_v60, %v1212_v5  ;;  %v3564_v23 = vld [vmem:[#allocation2 + $0x88] sm:$0xf] }
  0x85   : > { %v4451_v8 = vld [vmem:[#allocation2 + $0x24] sm:$0xff]   ;;  %v3064_v12 = vshrl.u32 %v2994_v4, 16  ;;  %v3277_v13 = vrot.slane %v3275_v3, 5  ;;  %v2996_v16 = vld [vmem:[#allocation2 + $0x2c] sm:$0x1]  ;;  %v3067_v17 = vshll.u32 %v2994_v4, 16 }
  0x86   : > { %v3267_v10 = vrot.slane %v3265_v2, 5  ;;  %v3271_v11 = vrot.slane %v3269_v52, 4  ;;  %v2995_v14 = vld [vmem:[#allocation2 + $0x28] sm:$0xf]  ;;  %2928 = vrot.lane.b32.xlu0 %v4451_v8, %s4562_s13  ;;  %v3263_v19 = vrot.slane %v3262_v9, 4  ;;  %v3083_v27 = vshll.u32 %v2996_v16, 16 }
  0x87   : > { %v3066_v22 = vrot.slane %v3064_v12, 4  ;;  %v3073_v6 = vshll.u32 %v2995_v14, 16  ;;  %v3069_v24 = vrot.slane %v3067_v17, 5  ;;  %v3077_v26 = vshrl.u32 %v2995_v14, 16  ;;  %v3539_v35 = vld [vmem:[#allocation2 + $0x24] sm:$0xe] }
  0x88   : > { %v3272_v20 = vor.u32 %v3271_v11, %v3267_v10  ;;  %v3697_v30 = vrot.slane %v3564_v23, 5  ;;  %v3268_v31 = vsel %vm4785_vm11, %v3263_v19, %v3267_v10  ;;  %v3700_v29 = vrot.slane %v3565_v28, 5  ;;  %v3540_v40 = vld [vmem:[#allocation2 + $0x28] sm:$0xf]  ;;  %v3541_v42 = vld [vmem:[#allocation2 + $0x2c] sm:$0x1] }
  0x89   : > { %v3075_v33 = vrot.slane %v3073_v6, 5  ;;  %v3070_v15 = vor.u32 %v3069_v24, %v3066_v22  ;;  %v3079_v37 = vrot.slane %v3077_v26, 4  ;;  %v3085_v38 = vrot.slane %v3083_v27, 5  ;;  %v1477_v63 = vld [vmem:[#allocation2 + $0x7c] sm:$0xf] }
  0x8a   : > { %v3273_v32 = vrot.slane %v3272_v20, 4  ;;  %v3698_v39 = vsel %vm4765_vm6, %v4332_v55, %v3697_v30  ;;  %v3699_v48 = vrot.slane %v3697_v30, 4  ;;  %v4324_v49 = vrot.slane %v3539_v35, 9  ;;  %v1478_v47 = vld [vmem:[#allocation2 + $0x80] sm:$0x1] }
  0x8b   : > { %v3641_v50 = vrot.slane %v3540_v40, 5  ;;  %v3071_v54 = vrot.slane %v3070_v15, 4  ;;  %v3080_v57 = vor.u32 %v3079_v37, %v3075_v33  ;;  %v3644_v59 = vrot.slane %v3541_v42, 5  ;;  %v1452_v4 = vld [vmem:[#allocation2 + $0x18] sm:$0xe] }
  0x8c   : > { %v3278_v44 = vsel %vm4785_vm11, %v3273_v32, %v3277_v13  ;;  %v3701_v60 = vsel %vm4765_vm6, %v3699_v48, %v3700_v29  ;;  %v1009_v62 = vrot.slane %v1007_v45, 5  ;;  %v1013_v3 = vrot.slane %v1011_v46, 4  ;;  %v1453_v5 = vld [vmem:[#allocation2 + $0x1c] sm:$0xf]  ;;  %v1454_v11 = vld [vmem:[#allocation2 + $0x20] sm:$0x1] }
  0x8d   : > { %v4316_v53 = vcombine.low %v3268_v31, %v3278_v44  ;;  %v3642_v61 = vsel %vm4765_vm6, %v4324_v49, %v3641_v50  ;;  %v3643_v55 = vrot.slane %v3641_v50, 4  ;;  %v3076_v58 = vsel %vm4785_vm11, %v3071_v54, %v3075_v33  ;;  %v1977_v14 = vld [vmem:[#allocation2 + $0x84] sm:$0xf]  ;;  %v1978_v22 = vld [vmem:[#allocation2 + $0x88] sm:$0xf] }
  0x8e   : > { %v3081_v2 = vrot.slane %v3080_v57, 4  ;;  %v4348_v52 = vcombine.low %v3698_v39, %v3701_v60  ;;  %v1010_v45 = vsel %vm4785_vm11, %v4999_v7, %v1009_v62  ;;  %v1019_v9 = vrot.slane %v1017_v56, 5  ;;  %v1979_v26 = vld [vmem:[#allocation2 + $0x8c] sm:$0x1]  ;;  %v1953_v29 = vld [vmem:[#allocation2 + $0x24] sm:$0xf] }
  0x8f   : > { %3489 = vrot.lane.b32.xlu1 %v4316_v53, %s4566_s17  ;;  %v3645_v8 = vsel %vm4765_vm6, %v3643_v55, %v3644_v59  ;;  %v4205_v10 = vrot.slane %v1476_v43, 9  ;;  %v1014_v25 = vor.u32 %v1013_v3, %v1009_v62  ;;  %v1617_v46 = vrot.slane %v1477_v63, 5  ;;  %v1954_v35 = vld [vmem:[#allocation2 + $0x28] sm:$0xf]  ;;  %v1955_v40 = vld [vmem:[#allocation2 + $0x2c] sm:$0x1] }
  0x90   : > { %v3086_v12 = vsel %vm4785_vm11, %v3081_v2, %v3085_v38  ;;  %v4340_v13 = vcombine.low %v3642_v61, %v3645_v8  ;;  %v1620_v17 = vrot.slane %v1478_v47, 5  ;;  %v4197_v19 = vrot.slane %v1452_v4, 9  ;;  %v2522_v57 = vld [vmem:[#allocation2 + $0x84] sm:$0xe]  ;;  %v2523_v63 = vld [vmem:[#allocation2 + $0x88] sm:$0xf] }
  0x91   : > { %v4308_v16 = vcombine.low %v3076_v58, %v3086_v12  ;;  %v1561_v20 = vrot.slane %v1453_v5, 5  ;;  %v1015_v7 = vrot.slane %v1014_v25, 4  ;;  %v1618_v41 = vsel %vm4765_vm6, %v4205_v10, %v1617_v46  ;;  %v4452_v59 = vld [vmem:[#allocation2 + $0x84] sm:$0xff]   ;;  %v302_v4 = vld [vmem:[%s4763_s9 + $0x58] sm:$0xf] }
  0x92   : > { %v1619_v56 = vrot.slane %v1617_v46, 4  ;;  %v1564_v6 = vrot.slane %v1454_v11, 5  ;;  %v2236_v27 = vshrl.u32 %v1977_v14, 16  ;;  %v2239_v28 = vshll.u32 %v1977_v14, 16  ;;  %v2498_v3 = vld [vmem:[#allocation2 + $0x24] sm:$0xe] }
  0x93   : > { %3810 = vrot.lane.b32.xlu1 %v4348_v52, %s4564_s15  ;;  %3473 = vrot.lane.b32.xlu0 %v4308_v16, %s4566_s17  ;;  %v5036_v23 = vsel %vm4765_vm6, %v4197_v19, %v1561_v20  ;;  %v1563_v24 = vrot.slane %v1561_v20, 4  ;;  %v1020_v30 = vsel %vm4785_vm11, %v1015_v7, %v1019_v9  ;;  %v2245_v32 = vshll.u32 %v1978_v22, 16  ;;  %v2499_v10 = vld [vmem:[#allocation2 + $0x28] sm:$0xf]  ;;  %v2500_v46 = vld [vmem:[#allocation2 + $0x2c] sm:$0x1] }
  0x94   : > { %v1621_v31 = vsel %vm4765_vm6, %v1619_v56, %v1620_v17  ;;  %v2249_v33 = vshrl.u32 %v1978_v22, 16  ;;  %v4181_v15 = vcombine.low %v1010_v45, %v1020_v30  ;;  %v2238_v39 = vrot.slane %v2236_v27, 4  ;;  %v303_v20 = vld [vmem:[%s4763_s9 + $0x5c] sm:$0xf]  ;;  %v286_v27 = vld [vmem:[%s4763_s9 + $0x18] sm:$0xf] }
  0x95   : > { %v4221_v37 = vcombine.low %v1618_v41, %v1621_v31  ;;  %v1565_v38 = vsel %vm4765_vm6, %v1563_v24, %v1564_v6  ;;  %v2241_v43 = vrot.slane %v2239_v28, 5  ;;  %v2247_v44 = vrot.slane %v2245_v32, 5  ;;  %v4453_v28 = vld [vmem:[#allocation2 + $0x24] sm:$0xff]  }
  0x96   : > { %v4213_v42 = vcombine.low %v5036_v23, %v1565_v38  ;;  %v2251_v48 = vrot.slane %v2249_v33, 4  ;;  %v2255_v49 = vshll.u32 %v1979_v26, 16  ;;  %v2044_v50 = vshrl.u32 %v1953_v29, 16 }
  0x97   : > { %1401 = vrot.lane.b32.xlu1 %v5001_v18, %s4560_s11  ;;  %3794 = vrot.lane.b32.xlu0 %v4340_v13, %s4564_s15  ;;  %v2047_v53 = vshll.u32 %v1953_v29, 16  ;;  %v2053_v54 = vshll.u32 %v1954_v35, 16  ;;  %v2242_v60 = vor.u32 %v2241_v43, %v2238_v39  ;;  %v2057_v55 = vshrl.u32 %v1954_v35, 16  ;;  %v2524_v18 = vld [vmem:[#allocation2 + $0x8c] sm:$0x1] }
  0x98   : > { %v2252_v61 = vor.u32 %v2251_v48, %v2247_v44  ;;  %v2063_v62 = vshll.u32 %v1955_v40, 16  ;;  %v2257_v47 = vrot.slane %v2255_v49, 5  ;;  %v2046_v58 = vrot.slane %v2044_v50, 4  ;;  %v287_v29 = vld [vmem:[%s4763_s9 + $0x1c] sm:$0xf] }
  0x99   : > { %v2049_v2 = vrot.slane %v2047_v53, 5  ;;  %v2055_v52 = vrot.slane %v2053_v54, 5  ;;  %v2243_v5 = vrot.slane %v2242_v60, 4  ;;  %v2059_v45 = vrot.slane %v2057_v55, 4  ;;  %v718_v39 = vld [vmem:[#allocation2 + $0x90] sm:$0xf] }
  0x9a   : > { %v2253_v8 = vrot.slane %v2252_v61, 4  ;;  %v2065_v9 = vrot.slane %v2063_v62, 5  ;;  %v4269_v12 = vrot.slane %v2522_v57, 9  ;;  %v2660_v13 = vrot.slane %v2523_v63, 5  ;;  %v931_v40 = vld [vmem:[#allocation2 + $0x84] sm:$0xf] }
  0x9b   : > { %1725 = vrot.lane.b32.xlu1 %v4221_v37, %s4559_s10  ;;  %1385 = vrot.lane.b32.xlu0 %v4181_v15, %s4560_s11  ;;  %v2050_v11 = vor.u32 %v2049_v2, %v2046_v58  ;;  %v2663_v25 = vrot.slane %v2524_v18, 5  ;;  %v2248_v14 = vsel %vm4785_vm11, %v2243_v5, %v2247_v44  ;;  %v2060_v17 = vor.u32 %v2059_v45, %v2055_v52  ;;  %v722_v57 = vld [vmem:[#allocation2 + $0x98] sm:$0x1]  ;;  %v662_v62 = vld [vmem:[#allocation2 + $0x30] sm:$0xf] }
  0x9c   : > { %v2258_v16 = vsel %vm4785_vm11, %v2253_v8, %v2257_v47  ;;  %v4261_v19 = vrot.slane %v2498_v3, 9  ;;  %v2661_v41 = vsel %vm4765_vm6, %v4269_v12, %v2660_v13  ;;  %v2662_v56 = vrot.slane %v2660_v13, 4  ;;  %v666_v63 = vld [vmem:[#allocation2 + $0x38] sm:$0x1]  ;;  %v932_v18 = vld [vmem:[#allocation2 + $0x88] sm:$0xf] }
  0x9d   : > { %v4253_v22 = vcombine.low %v2248_v14, %v2258_v16  ;;  %v2051_v7 = vrot.slane %v2050_v11, 4  ;;  %v2061_v6 = vrot.slane %v2060_v17, 4  ;;  %v2604_v23 = vrot.slane %v2499_v10, 5  ;;  %v933_v3 = vld [vmem:[#allocation2 + $0x8c] sm:$0x1] }
  0x9e   : > { %v2607_v24 = vrot.slane %v2500_v46, 5  ;;  %v503_v26 = vshrl.u32 %v302_v4, 16  ;;  %v2664_v31 = vsel %vm4765_vm6, %v2662_v56, %v2663_v25  ;;  %v506_v32 = vshll.u32 %v302_v4, 16  ;;  %v907_v4 = vld [vmem:[#allocation2 + $0x24] sm:$0xf] }
  0x9f   : > { %1902 = vrot.lane.b32.xlu1 %v4452_v59, %s4561_s12  ;;  %1709 = vrot.lane.b32.xlu0 %v4213_v42, %s4559_s10  ;;  %v2056_v30 = vsel %vm4785_vm11, %v2051_v7, %v2055_v52  ;;  %v511_v33 = vshrl.u32 %v303_v20, 16  ;;  %v2066_v35 = vsel %vm4785_vm11, %v2061_v6, %v2065_v9  ;;  %v4285_v15 = vcombine.low %v2661_v41, %v2664_v31  ;;  %v908_v10 = vld [vmem:[#allocation2 + $0x28] sm:$0xf]  ;;  %v909_v46 = vld [vmem:[#allocation2 + $0x2c] sm:$0x1] }
  0xa0   : > { %v2605_v37 = vsel %vm4765_vm6, %v4261_v19, %v2604_v23  ;;  %v2606_v38 = vrot.slane %v2604_v23, 4  ;;  %v4245_v42 = vcombine.low %v2056_v30, %v2066_v35  ;;  %v505_v43 = vrot.slane %v503_v26, 7 }
  0xa1   : > { %v513_v44 = vrot.slane %v511_v33, 7  ;;  %v514_v48 = vshll.u32 %v303_v20, 16  ;;  %v367_v50 = vshrl.u32 %v286_v27, 16  ;;  %v370_v53 = vshll.u32 %v286_v27, 16 }
  0xa2   : > { %v2608_v49 = vsel %vm4765_vm6, %v2606_v38, %v2607_v24  ;;  %v375_v54 = vshrl.u32 %v287_v29, 16  ;;  %v508_v60 = vor.u32 %v506_v32, %v505_v43  ;;  %v509_v61 = vrot.slane %v505_v43, 4  ;;  %v5105_v38 = vpop.permute.xlu1 %1705 }
  0xa3   : > { %2447 = vrot.lane.b32.xlu1 %v4253_v22, %s4565_s16  ;;  %1886 = vrot.lane.b32.xlu0 %v4453_v28, %s4561_s12  ;;  %v4277_v59 = vcombine.low %v2605_v37, %v2608_v49  ;;  %v516_v55 = vor.u32 %v514_v48, %v513_v44  ;;  %v518_v47 = vrot.slane %v513_v44, 4  ;;  %v369_v58 = vrot.slane %v367_v50, 7 }
  0xa4   : > { %v377_v2 = vrot.slane %v375_v54, 7  ;;  %v378_v52 = vshll.u32 %v287_v29, 16  ;;  %v719_v8 = vsel %vm4779_vm10, %v508_v60, %v718_v39  ;;  %v1214_v45 = vshrl.u32 %v931_v40, 16  ;;  %v5107_v39 = vpop.permute.xlu0 %1381 }
  0xa5   : > { %v517_v5 = vsel %vm4799_vm12, %v509_v61, %v516_v55  ;;  %v1217_v9 = vshll.u32 %v931_v40, 16  ;;  %720 = vst [vmem:[#allocation2 + $0x90] sm:$0xf] %v719_v8  ;;  %v372_v11 = vor.u32 %v370_v53, %v369_v58  ;;  %v373_v12 = vrot.slane %v369_v58, 4 }
  0xa6   : > { %721 = vst.msk [vmem:[#allocation2 + $0x94] sm:$0xf] %vm224_vm0, %v517_v5  ;;  %v380_v13 = vor.u32 %v378_v52, %v377_v2  ;;  %v382_v25 = vrot.slane %v377_v2, 4  ;;  %v723_v14 = vsel %vm4823_vm13, %v518_v47, %v722_v57  ;;  %v1216_v16 = vrot.slane %v1214_v45, 4 }
  0xa7   : > { %2768 = vrot.lane.b32.xlu1 %v4285_v15, %s4563_s14  ;;  %2431 = vrot.lane.b32.xlu0 %v4245_v42, %s4565_s16  ;;  %v1219_v17 = vrot.slane %v1217_v9, 5  ;;  %v1223_v19 = vshll.u32 %v932_v18, 16  ;;  %v663_v22 = vsel %vm4779_vm10, %v372_v11, %v662_v62  ;;  %724 = vst [vmem:[#allocation2 + $0x98] sm:$0x1] %v723_v14  ;;  %v1227_v41 = vshrl.u32 %v932_v18, 16 }
  0xa8   : > { %v381_v20 = vsel %vm4799_vm12, %v373_v12, %v380_v13  ;;  %v667_v7 = vsel %vm4823_vm13, %v382_v25, %v666_v63  ;;  %664 = vst [vmem:[#allocation2 + $0x30] sm:$0xf] %v663_v22  ;;  %v1233_v6 = vshll.u32 %v933_v3, 16  ;;  %v1022_v23 = vshrl.u32 %v907_v4, 16 }
  0xa9   : > { %665 = vst.msk [vmem:[#allocation2 + $0x34] sm:$0xf] %vm224_vm0, %v381_v20  ;;  %668 = vst [vmem:[#allocation2 + $0x38] sm:$0x1] %v667_v7  ;;  %v1220_v56 = vor.u32 %v1219_v17, %v1216_v16  ;;  %v1025_v24 = vshll.u32 %v907_v4, 16  ;;  %v1031_v26 = vshll.u32 %v908_v10, 16 }
  0xaa   : > { %v1035_v27 = vshrl.u32 %v908_v10, 16  ;;  %v5091_v28 = vrot.slane %v1223_v19, 5  ;;  %v5093_v30 = vrot.slane %v1227_v41, 4  ;;  %v1041_v31 = vshll.u32 %v909_v46, 16 }
  0xab   : > { %2752 = vrot.lane.b32.xlu0 %v4277_v59, %s4563_s14  ;;  %v5095_v32 = vrot.slane %v1220_v56, 4  ;;  %v5097_v33 = vrot.slane %v1233_v6, 5  ;;  %v5099_v29 = vrot.slane %v1022_v23, 4  ;;  %v5101_v35 = vrot.slane %v1025_v24, 5 }
  0xac   : > { %v5103_v37 = vrot.slane %v1031_v26, 5  ;;  %v3021_v40 = vld [vmem:[#allocation2 + $0x90] sm:$0xf]  ;;  %v5109_v43 = vrot.slane %v1035_v27, 4  ;;  %v5111_v44 = vrot.slane %v1041_v31, 5  ;;  %v1230_v55 = vor.u32 %v5093_v30, %v5091_v28  ;;  %v5125_v25 = vpop.permute.xlu1 %1898 }
  0xad   : > { %v4454_v15 = vld [vmem:[#allocation2 + $0x90] sm:$0xff]   ;;  %v3280_v49 = vshrl.u32 %v3021_v40, 16  ;;  %v3283_v50 = vshll.u32 %v3021_v40, 16  ;;  %v1226_v61 = vsel %vm4785_vm11, %v5095_v32, %v5091_v28  ;;  %v1028_v5 = vor.u32 %v5101_v35, %v5099_v29  ;;  %v5127_v46 = vpop.permute.xlu0 %1882 }
  0xae   : > { %v3022_v42 = vld [vmem:[#allocation2 + $0x94] sm:$0xf]  ;;  %2946 = vrot.lane.b32.xlu1 %v4454_v15, %s4562_s13  ;;  %v3023_v48 = vld [vmem:[#allocation2 + $0x98] sm:$0x1]  ;;  %v3566_v57 = vld [vmem:[#allocation2 + $0x90] sm:$0xe]  ;;  %v1038_v8 = vor.u32 %v5109_v43, %v5103_v37 }
  0xaf   : > { %v3289_v53 = vshll.u32 %v3022_v42, 16  ;;  %v3293_v54 = vshrl.u32 %v3022_v42, 16  ;;  %v3299_v60 = vshll.u32 %v3023_v48, 16  ;;  %v3282_v62 = vrot.slane %v3280_v49, 4  ;;  %v2997_v58 = vld [vmem:[#allocation2 + $0x30] sm:$0xf] }
  0xb0   : > { %v4455_v59 = vld [vmem:[#allocation2 + $0x30] sm:$0xff]   ;;  %v3285_v63 = vrot.slane %v3283_v50, 5  ;;  %v2999_v3 = vld [vmem:[#allocation2 + $0x38] sm:$0x1]  ;;  %v3088_v4 = vshrl.u32 %v2997_v58, 16  ;;  %v3091_v10 = vshll.u32 %v2997_v58, 16 }
  0xb1   : > { %v3291_v18 = vrot.slane %v3289_v53, 5  ;;  %v3295_v47 = vrot.slane %v3293_v54, 4  ;;  %2930 = vrot.lane.b32.xlu0 %v4455_v59, %s4562_s13  ;;  %v3301_v2 = vrot.slane %v3299_v60, 5  ;;  %v2998_v52 = vld [vmem:[#allocation2 + $0x34] sm:$0xf]  ;;  %v3107_v17 = vshll.u32 %v2999_v3, 16 }
  0xb2   : > { %v3286_v45 = vor.u32 %v3285_v63, %v3282_v62  ;;  %v3097_v11 = vshll.u32 %v2998_v52, 16  ;;  %v3567_v12 = vld [vmem:[#allocation2 + $0x94] sm:$0xf]  ;;  %v3568_v13 = vld [vmem:[#allocation2 + $0x98] sm:$0x1]  ;;  %v3090_v14 = vrot.slane %v3088_v4, 4  ;;  %v5135_v59 = vpop.permute.xlu1 %2942 }
  0xb3   : > { %v3296_v9 = vor.u32 %v3295_v47, %v3291_v18  ;;  %v3101_v16 = vshrl.u32 %v2998_v52, 16  ;;  %v4333_v19 = vrot.slane %v3566_v57, 9  ;;  %v3542_v20 = vld [vmem:[#allocation2 + $0x30] sm:$0xe]  ;;  %v3093_v41 = vrot.slane %v3091_v10, 5 }
  0xb4   : > { %v3287_v22 = vrot.slane %v3286_v45, 4  ;;  %v3099_v56 = vrot.slane %v3097_v11, 5  ;;  %v3543_v6 = vld [vmem:[#allocation2 + $0x34] sm:$0xf]  ;;  %v3109_v24 = vrot.slane %v3107_v17, 5  ;;  %v3704_v26 = vrot.slane %v3567_v12, 5 }
  0xb5   : > { %v3297_v7 = vrot.slane %v3296_v9, 4  ;;  %v3103_v23 = vrot.slane %v3101_v16, 4  ;;  %v3707_v27 = vrot.slane %v3568_v13, 5  ;;  %v3544_v30 = vld [vmem:[#allocation2 + $0x38] sm:$0x1]  ;;  %v3094_v35 = vor.u32 %v3093_v41, %v3090_v14  ;;  %v5137_v60 = vpop.permute.xlu0 %2926 }
  0xb6   : > { %v3292_v31 = vsel %vm4785_vm11, %v3287_v22, %v3291_v18  ;;  %v4325_v15 = vrot.slane %v3542_v20, 9  ;;  %v3705_v43 = vsel %vm4765_vm6, %v4333_v19, %v3704_v26  ;;  %v3706_v48 = vrot.slane %v3704_v26, 4  ;;  %v1479_v57 = vld [vmem:[#allocation2 + $0x84] sm:$0xe]  ;;  %v1480_v58 = vld [vmem:[#allocation2 + $0x88] sm:$0xf] }
  0xb7   : > { %v3302_v29 = vsel %vm4785_vm11, %v3297_v7, %v3301_v2  ;;  %v3104_v42 = vor.u32 %v3103_v23, %v3099_v56  ;;  %v3095_v49 = vrot.slane %v3094_v35, 4  ;;  %v3648_v50 = vrot.slane %v3543_v6, 5  ;;  %v1481_v4 = vld [vmem:[#allocation2 + $0x8c] sm:$0x1]  ;;  %v1455_v45 = vld [vmem:[#allocation2 + $0x24] sm:$0xe] }
  0xb8   : > { %v4317_v40 = vcombine.low %v3292_v31, %v3302_v29  ;;  %v3651_v53 = vrot.slane %v3544_v30, 5  ;;  %v1231_v54 = vrot.slane %v1230_v55, 4  ;;  %v3708_v63 = vsel %vm4765_vm6, %v3706_v48, %v3707_v27  ;;  %v1456_v11 = vld [vmem:[#allocation2 + $0x28] sm:$0xf]  ;;  %v1457_v12 = vld [vmem:[#allocation2 + $0x2c] sm:$0x1] }
  0xb9   : > { %v3105_v62 = vrot.slane %v3104_v42, 4  ;;  %v1029_v18 = vrot.slane %v1028_v5, 4  ;;  %v1039_v47 = vrot.slane %v1038_v8, 4  ;;  %v3100_v2 = vsel %vm4785_vm11, %v3095_v49, %v3099_v56  ;;  %v1980_v13 = vld [vmem:[#allocation2 + $0x90] sm:$0xf]  ;;  %v5168_v26 = vpop.permute.xlu0 %2748 }
  0xba   : > { %3491 = vrot.lane.b32.xlu1 %v4317_v40, %s4566_s17  ;;  %v4349_v52 = vcombine.low %v3705_v43, %v3708_v63  ;;  %v3649_v55 = vsel %vm4765_vm6, %v4325_v15, %v3648_v50  ;;  %v3650_v3 = vrot.slane %v3648_v50, 4  ;;  %v1236_v10 = vsel %vm4785_vm11, %v1231_v54, %v5097_v33  ;;  %v1981_v19 = vld [vmem:[#allocation2 + $0x94] sm:$0xf]  ;;  %v1982_v6 = vld [vmem:[#allocation2 + $0x98] sm:$0x1] }
  0xbb   : > { %v3110_v9 = vsel %vm4785_vm11, %v3105_v62, %v3109_v24  ;;  %v1034_v5 = vsel %vm4785_vm11, %v1029_v18, %v5103_v37  ;;  %v1044_v8 = vsel %vm4785_vm11, %v1039_v47, %v5111_v44  ;;  %v4190_v33 = vcombine.low %v1226_v61, %v1236_v10  ;;  %v1956_v30 = vld [vmem:[#allocation2 + $0x30] sm:$0xf]  ;;  %v1957_v49 = vld [vmem:[#allocation2 + $0x34] sm:$0xf] }
  0xbc   : > { %v4309_v14 = vcombine.low %v3100_v2, %v3110_v9  ;;  %v3652_v16 = vsel %vm4765_vm6, %v3650_v3, %v3651_v53  ;;  %v4182_v17 = vcombine.low %v1034_v5, %v1044_v8  ;;  %v4206_v20 = vrot.slane %v1479_v57, 9  ;;  %v1958_v57 = vld [vmem:[#allocation2 + $0x38] sm:$0x1]  ;;  %v2525_v63 = vld [vmem:[#allocation2 + $0x90] sm:$0xe] }
  0xbd   : > { %v4341_v37 = vcombine.low %v3649_v55, %v3652_v16  ;;  %v1624_v44 = vrot.slane %v1480_v58, 5  ;;  %v1627_v22 = vrot.slane %v1481_v4, 5  ;;  %v4198_v7 = vrot.slane %v1455_v45, 9  ;;  %v2526_v55 = vld [vmem:[#allocation2 + $0x94] sm:$0xf]  ;;  %v5185_v8 = vpop.permute.xlu0 %3792 }
  0xbe   : > { %3812 = vrot.lane.b32.xlu1 %v4349_v52, %s4564_s15  ;;  %3475 = vrot.lane.b32.xlu0 %v4309_v14, %s4566_s17  ;;  %v1568_v41 = vrot.slane %v1456_v11, 5  ;;  %v1571_v56 = vrot.slane %v1457_v12, 5  ;;  %v2260_v23 = vshrl.u32 %v1980_v13, 16  ;;  %v2263_v61 = vshll.u32 %v1980_v13, 16  ;;  %v4456_v3 = vld [vmem:[#allocation2 + $0x90] sm:$0xff]  }
  0xbf   : > { %v5166_v24 = vpop.permute.xlu1 %1721  ;;  %v1625_v28 = vsel %vm4765_vm6, %v4206_v20, %v1624_v44  ;;  %v1626_v32 = vrot.slane %v1624_v44, 4  ;;  %v2269_v27 = vshll.u32 %v1981_v19, 16  ;;  %v2273_v15 = vshrl.u32 %v1981_v19, 16  ;;  %v2527_v5 = vld [vmem:[#allocation2 + $0x98] sm:$0x1]  ;;  %v4461_v19 = vld [vmem:[#allocation2 + $0x60] sm:$0xff]  }
  0xc0   : > { %v5174_v31 = vsel %vm4765_vm6, %v4198_v7, %v1568_v41  ;;  %v1570_v29 = vrot.slane %v1568_v41, 4  ;;  %v2262_v35 = vrot.slane %v2260_v23, 4  ;;  %v2265_v42 = vrot.slane %v2263_v61, 5  ;;  %v2501_v16 = vld [vmem:[#allocation2 + $0x30] sm:$0xe]  ;;  %890 = vst.msk [vmem:[#allocation3 + $0x40] sm:$0xff] %vm881_vm14, %v4461_v19 }
  0xc1   : > { %v1628_v40 = vsel %vm4765_vm6, %v1626_v32, %v1627_v22  ;;  %v2271_v43 = vrot.slane %v2269_v27, 5  ;;  %v2279_v48 = vshll.u32 %v1982_v6, 16  ;;  %v2275_v54 = vrot.slane %v2273_v15, 4  ;;  %v4465_v20 = vld [vmem:[#allocation2 + $0xc] sm:$0xff]   ;;  %v2503_v27 = vld [vmem:[#allocation2 + $0x38] sm:$0x1] }
  0xc2   : > { %1403 = vrot.lane.b32.xlu1 %v4190_v33, %s4560_s11  ;;  %3796 = vrot.lane.b32.xlu0 %v4341_v37, %s4564_s15  ;;  %v4222_v50 = vcombine.low %v1625_v28, %v1628_v40  ;;  %v1572_v53 = vsel %vm4765_vm6, %v1570_v29, %v1571_v56  ;;  %v2068_v62 = vshrl.u32 %v1956_v30, 16  ;;  %v2266_v58 = vor.u32 %v2265_v42, %v2262_v35  ;;  %v4458_v33 = vld [vmem:[#allocation2] sm:$0xff]   ;;  %v4464_v37 = vld [vmem:[#allocation2 + $0x6c] sm:$0xff]   ;;  %v2502_v56 = vld [vmem:[#allocation2 + $0x34] sm:$0xf] }
  0xc3   : > { %v5182_v18 = vpop.permute.xlu1 %2764  ;;  %v4214_v47 = vcombine.low %v5174_v31, %v1572_v53  ;;  %v2281_v2 = vrot.slane %v2279_v48, 5  ;;  %v2071_v52 = vshll.u32 %v1956_v30, 16  ;;  %v2276_v4 = vor.u32 %v2275_v54, %v2271_v43  ;;  %v4470_v30 = vld [vmem:[#allocation2 + $0x78] sm:$0xff]   ;;  %v304_v40 = vld [vmem:[%s4763_s9 + $0x60] sm:$0xf]  ;;  %v4457_v53 = vld [vmem:[#allocation2 + $0x30] sm:$0xff]  }
  0xc4   : > { %v2070_v45 = vrot.slane %v2068_v62, 4  ;;  %v2077_v9 = vshll.u32 %v1957_v49, 16  ;;  %v2081_v10 = vshrl.u32 %v1957_v49, 16  ;;  %v2267_v11 = vrot.slane %v2266_v58, 4  ;;  %v4471_v31 = vld [vmem:[#allocation2 + $0x18] sm:$0xff]   ;;  %882 = vst.msk [vmem:[#allocation3] sm:$0xff] %vm881_vm14, %v4458_v33 }
  0xc5   : > { %v2073_v12 = vrot.slane %v2071_v52, 5  ;;  %v2087_v13 = vshll.u32 %v1958_v57, 16  ;;  %v4270_v14 = vrot.slane %v2525_v63, 9  ;;  %v2277_v44 = vrot.slane %v2276_v4, 4  ;;  %v288_v63 = vld [vmem:[%s4763_s9 + $0x20] sm:$0xf] }
  0xc6   : > { %1727 = vrot.lane.b32.xlu1 %v4222_v50, %s4559_s10  ;;  %1387 = vrot.lane.b32.xlu0 %v4182_v17, %s4560_s11  ;;  %v2079_v22 = vrot.slane %v2077_v9, 5  ;;  %v2083_v7 = vrot.slane %v2081_v10, 4  ;;  %v2667_v41 = vrot.slane %v2526_v55, 5  ;;  %v2272_v23 = vsel %vm4785_vm11, %v2267_v11, %v2271_v43  ;;  %v305_v50 = vld [vmem:[%s4763_s9 + $0x64] sm:$0xf]  ;;  %v1398_v58 = vpop.permute.xlu0 %1397  ;;  %891 = vst.msk [vmem:[#allocation3 + $0x48] sm:$0xff] %vm881_vm14, %v4464_v37 }
  0xc7   : > { %v5189_v6 = vpop.permute.xlu1 %3808  ;;  %v2074_v28 = vor.u32 %v2073_v12, %v2070_v45  ;;  %v2089_v32 = vrot.slane %v2087_v13, 5  ;;  %v2670_v61 = vrot.slane %v2527_v5, 5  ;;  %v2282_v17 = vsel %vm4785_vm11, %v2277_v44, %v2281_v2  ;;  %883 = vst.msk [vmem:[#allocation3 + $0x8] sm:$0xff] %vm881_vm14, %v4465_v20  ;;  %892 = vst.msk [vmem:[#allocation3 + $0x50] sm:$0xff] %vm881_vm14, %v4470_v30  ;;  %v289_v9 = vld [vmem:[%s4763_s9 + $0x24] sm:$0xf] }
  0xc8   : > { %v2084_v29 = vor.u32 %v2083_v7, %v2079_v22  ;;  %v2668_v35 = vsel %vm4765_vm6, %v4270_v14, %v2667_v41  ;;  %v2669_v15 = vrot.slane %v2667_v41, 4  ;;  %v4254_v42 = vcombine.low %v2272_v23, %v2282_v17  ;;  %884 = vst.msk [vmem:[#allocation3 + $0x10] sm:$0xff] %vm881_vm14, %v4471_v31  ;;  %v725_v14 = vld [vmem:[#allocation2 + $0x9c] sm:$0xf]  ;;  %v729_v44 = vld [vmem:[#allocation2 + $0xa4] sm:$0x1] }
  0xc9   : > { %v2075_v43 = vrot.slane %v2074_v28, 4  ;;  %v4262_v48 = vrot.slane %v2501_v16, 9  ;;  %v2611_v49 = vrot.slane %v2502_v56, 5  ;;  %v2614_v62 = vrot.slane %v2503_v27, 5  ;;  %1430 = vst.msk [vmem:[#allocation3] sm:$0xff] %vm1429_vm15, %v5107_v39  ;;  %1438 = vst.msk [vmem:[#allocation3 + $0x40] sm:$0xff] %vm1429_vm15, %v1398_v58 }
  0xca   : > { %1904 = vrot.lane.b32.xlu1 %v4456_v3, %s4561_s12  ;;  %1711 = vrot.lane.b32.xlu0 %v4214_v47, %s4559_s10  ;;  %v2085_v54 = vrot.slane %v2084_v29, 4  ;;  %v2671_v57 = vsel %vm4765_vm6, %v2669_v15, %v2670_v61  ;;  %v520_v4 = vshrl.u32 %v304_v40, 16  ;;  %v523_v45 = vshll.u32 %v304_v40, 16  ;;  %v934_v16 = vld [vmem:[#allocation2 + $0x90] sm:$0xf]  ;;  %1754 = vst.msk [vmem:[#allocation3] sm:$0xff] %vm1753_vm1, %v5105_v38 }
  0xcb   : > { %v2080_v2 = vsel %vm4785_vm11, %v2075_v43, %v2079_v22  ;;  %v4286_v52 = vcombine.low %v2668_v35, %v2671_v57  ;;  %v5208_v55 = vsel %vm4765_vm6, %v4262_v48, %v2611_v49  ;;  %v2613_v3 = vrot.slane %v2611_v49, 4  ;;  %v5219_v10 = vpop.permute.xlu1 %2443  ;;  %v669_v56 = vld [vmem:[#allocation2 + $0x3c] sm:$0xf]  ;;  %v935_v39 = vld [vmem:[#allocation2 + $0x94] sm:$0xf]  ;;  %1762 = vst.msk [vmem:[#allocation3 + $0x40] sm:$0xff] %vm1753_vm1, %v5166_v24 }
  0xcc   : > { %v2090_v47 = vsel %vm4785_vm11, %v2085_v54, %v2089_v32  ;;  %v528_v12 = vshrl.u32 %v305_v50, 16  ;;  %v531_v13 = vshll.u32 %v305_v50, 16  ;;  %v522_v19 = vrot.slane %v520_v4, 7  ;;  %v5238_v17 = vpop.permute.xlu0 %2427  ;;  %v673_v35 = vld [vmem:[#allocation2 + $0x44] sm:$0x1] }
  0xcd   : > { %v4246_v5 = vcombine.low %v2080_v2, %v2090_v47  ;;  %v2615_v11 = vsel %vm4765_vm6, %v2613_v3, %v2614_v62  ;;  %v384_v37 = vshrl.u32 %v288_v63, 16  ;;  %v387_v20 = vshll.u32 %v288_v63, 16  ;;  %v936_v15 = vld [vmem:[#allocation2 + $0x98] sm:$0x1]  ;;  %v910_v49 = vld [vmem:[#allocation2 + $0x30] sm:$0xf] }
  0xce   : > { %2449 = vrot.lane.b32.xlu1 %v4254_v42, %s4565_s16  ;;  %1888 = vrot.lane.b32.xlu0 %v4457_v53, %s4561_s12  ;;  %v4278_v33 = vcombine.low %v5208_v55, %v2615_v11  ;;  %v530_v22 = vrot.slane %v528_v12, 7  ;;  %v392_v7 = vshrl.u32 %v289_v9, 16  ;;  %v395_v41 = vshll.u32 %v289_v9, 16  ;;  %v911_v62 = vld [vmem:[#allocation2 + $0x34] sm:$0xf] }
  0xcf   : > { %v525_v23 = vor.u32 %v523_v45, %v522_v19  ;;  %v526_v28 = vrot.slane %v522_v19, 4  ;;  %v386_v32 = vrot.slane %v384_v37, 7  ;;  %vm1930_vm2 = vcmask 130144   ;;  %v5258_v3 = vld [vmem:[#allocation2 + $0x38] sm:$0x1] }
  0xd0   : > { %v533_v61 = vor.u32 %v531_v13, %v530_v22  ;;  %v535_v27 = vrot.slane %v530_v22, 4  ;;  %v394_v30 = vrot.slane %v392_v7, 7  ;;  %1931 = vst.msk [vmem:[#allocation3] sm:$0xff] %vm1930_vm2, %v5127_v46  ;;  %v1238_v31 = vshrl.u32 %v934_v16, 16  ;;  %1939 = vst.msk [vmem:[#allocation3 + $0x40] sm:$0xff] %vm1930_vm2, %v5125_v25 }
  0xd1   : > { %v726_v38 = vsel %vm4779_vm10, %v525_v23, %v725_v14  ;;  %v389_v24 = vor.u32 %v387_v20, %v386_v32  ;;  %v390_v29 = vrot.slane %v386_v32, 4  ;;  %v1241_v40 = vshll.u32 %v934_v16, 16  ;;  %v5243_v42 = vpop.permute.xlu1 %3487 }
  0xd2   : > { %2770 = vrot.lane.b32.xlu1 %v4286_v52, %s4563_s14  ;;  %2433 = vrot.lane.b32.xlu0 %v4246_v5, %s4565_s16  ;;  %v534_v46 = vsel %vm4799_vm12, %v526_v28, %v533_v61  ;;  %727 = vst [vmem:[#allocation2 + $0x9c] sm:$0xf] %v726_v38  ;;  %v397_v43 = vor.u32 %v395_v41, %v394_v30  ;;  %v399_v25 = vrot.slane %v394_v30, 4  ;;  %v1240_v53 = vrot.slane %v1238_v31, 4  ;;  %v5260_v5 = vld [vmem:[#allocation2 + $0x90] sm:$0xe] }
  0xd3   : > { %v730_v48 = vsel %vm4823_vm13, %v535_v27, %v729_v44  ;;  %728 = vst.msk [vmem:[#allocation2 + $0xa0] sm:$0xf] %vm224_vm0, %v534_v46  ;;  %v670_v50 = vsel %vm4779_vm10, %v389_v24, %v669_v56  ;;  %v1243_v54 = vrot.slane %v1241_v40, 5  ;;  %v1247_v57 = vshll.u32 %v935_v39, 16 }
  0xd4   : > { %731 = vst [vmem:[#allocation2 + $0xa4] sm:$0x1] %v730_v48  ;;  %v398_v63 = vsel %vm4799_vm12, %v390_v29, %v397_v43  ;;  %671 = vst [vmem:[#allocation2 + $0x3c] sm:$0xf] %v670_v50  ;;  %v674_v58 = vsel %vm4823_vm13, %v399_v25, %v673_v35  ;;  %v1251_v2 = vshrl.u32 %v935_v39, 16  ;;  %v1257_v52 = vshll.u32 %v936_v15, 16  ;;  %v5262_v11 = vpop.permute.xlu0 %3471 }
  0xd5   : > { %672 = vst.msk [vmem:[#allocation2 + $0x40] sm:$0xf] %vm224_vm0, %v398_v63  ;;  %675 = vst [vmem:[#allocation2 + $0x44] sm:$0x1] %v674_v58  ;;  %v1244_v55 = vor.u32 %v1243_v54, %v1240_v53  ;;  %v1046_v47 = vshrl.u32 %v910_v49, 16  ;;  %v1049_v4 = vshll.u32 %v910_v49, 16 }
  0xd6   : > { %2754 = vrot.lane.b32.xlu0 %v4278_v33, %s4563_s14  ;;  %v1055_v45 = vshll.u32 %v911_v62, 16  ;;  %v1059_v9 = vshrl.u32 %v911_v62, 16  ;;  %v5266_v13 = vrot.slane %v1247_v57, 5  ;;  %v5268_v14 = vrot.slane %v1251_v2, 4 }
  0xd7   : > { %v5264_v12 = vrot.slane %v1244_v55, 4  ;;  %v5270_v16 = vrot.slane %v1257_v52, 5  ;;  %v5272_v19 = vrot.slane %v1046_v47, 4  ;;  %v5274_v37 = vrot.slane %v1049_v4, 5 }
  0xd8   : > { %v1400_v33 = vpop.permute.xlu1 %1399  ;;  %v5276_v20 = vrot.slane %v1055_v45, 5  ;;  %v1065_v44 = vshll.u32 %v5258_v3, 16  ;;  %v5280_v7 = vrot.slane %v1059_v9, 4  ;;  %v4207_v41 = vrot.slane %v5260_v5, 9 }
  0xd9   : > { %1439 = vst.msk [vmem:[#allocation3 + $0x48] sm:$0xff] %vm1429_vm15, %v1400_v33  ;;  %v3024_v22 = vld [vmem:[#allocation2 + $0x9c] sm:$0xf]  ;;  %v1254_v30 = vor.u32 %v5268_v14, %v5266_v13  ;;  %v1250_v15 = vsel %vm4785_vm11, %v5264_v12, %v5266_v13  ;;  %v1052_v49 = vor.u32 %v5274_v37, %v5272_v19  ;;  %vm2475_vm3 = vcmask 162944  }
  0xda   : > { %v4459_v56 = vld [vmem:[#allocation2 + $0x9c] sm:$0xff]   ;;  %v3304_v23 = vshrl.u32 %v3024_v22, 16  ;;  %v3307_v32 = vshll.u32 %v3024_v22, 16  ;;  %v1062_v50 = vor.u32 %v5280_v7, %v5276_v20  ;;  %vm2796_vm4 = vcmask 195744   ;;  %2484 = vst.msk [vmem:[#allocation3 + $0x40] sm:$0xff] %vm2475_vm3, %v5219_v10  ;;  %2476 = vst.msk [vmem:[#allocation3] sm:$0xff] %vm2475_vm3, %v5238_v17 }
  0xdb   : > { %v3025_v39 = vld [vmem:[#allocation2 + $0xa0] sm:$0xf]  ;;  %v3026_v28 = vld [vmem:[#allocation2 + $0xa4] sm:$0x1]  ;;  %v3569_v27 = vld [vmem:[#allocation2 + $0x9c] sm:$0xe]  ;;  %2948 = vrot.lane.b32.xlu1 %v4459_v56, %s4562_s13 }
  0xdc   : > { %v3313_v61 = vshll.u32 %v3025_v39, 16  ;;  %v1724_v31 = vpop.permute.xlu1 %1723  ;;  %v4460_v38 = vld [vmem:[#allocation2 + $0x3c] sm:$0xff]   ;;  %v3306_v24 = vrot.slane %v3304_v23, 4  ;;  %v3317_v29 = vshrl.u32 %v3025_v39, 16  ;;  %v3323_v35 = vshll.u32 %v3026_v28, 16  ;;  %2805 = vst.msk [vmem:[#allocation3 + $0x40] sm:$0xff] %vm2796_vm4, %v5182_v18 }
  0xdd   : > { %1763 = vst.msk [vmem:[#allocation3 + $0x48] sm:$0xff] %vm1753_vm1, %v1724_v31  ;;  %v3309_v46 = vrot.slane %v3307_v32, 5  ;;  %v3000_v25 = vld [vmem:[#allocation2 + $0x3c] sm:$0xf]  ;;  %v3001_v48 = vld [vmem:[#allocation2 + $0x40] sm:$0xf]  ;;  %2932 = vrot.lane.b32.xlu0 %v4460_v38, %s4562_s13 }
  0xde   : > { %v1384_v40 = vpop.permute.xlu0 %1383  ;;  %v3315_v43 = vrot.slane %v3313_v61, 5  ;;  %v3319_v53 = vrot.slane %v3317_v29, 4  ;;  %v3325_v54 = vrot.slane %v3323_v35, 5  ;;  %v3002_v57 = vld [vmem:[#allocation2 + $0x44] sm:$0x1]  ;;  %v3112_v62 = vshrl.u32 %v3000_v25, 16 }
  0xdf   : > { %1431 = vst.msk [vmem:[#allocation3 + $0x8] sm:$0xff] %vm1429_vm15, %v1384_v40  ;;  %v3115_v63 = vshll.u32 %v3000_v25, 16  ;;  %v3310_v58 = vor.u32 %v3309_v46, %v3306_v24  ;;  %v3121_v2 = vshll.u32 %v3001_v48, 16  ;;  %v3125_v52 = vshrl.u32 %v3001_v48, 16  ;;  %v3570_v47 = vld [vmem:[#allocation2 + $0xa0] sm:$0xf] }
  0xe0   : > { %v3131_v55 = vshll.u32 %v3002_v57, 16  ;;  %v1901_v4 = vpop.permute.xlu1 %1900  ;;  %v3320_v45 = vor.u32 %v3319_v53, %v3315_v43  ;;  %v3114_v9 = vrot.slane %v3112_v62, 4  ;;  %v3571_v19 = vld [vmem:[#allocation2 + $0xa4] sm:$0x1]  ;;  %v4334_v37 = vrot.slane %v3569_v27, 9  ;;  %2797 = vst.msk [vmem:[#allocation3] sm:$0xff] %vm2796_vm4, %v5168_v26 }
  0xe1   : > { %v3117_v33 = vrot.slane %v3115_v63, 5  ;;  %1940 = vst.msk [vmem:[#allocation3 + $0x48] sm:$0xff] %vm1930_vm2, %v1901_v4  ;;  %v3311_v7 = vrot.slane %v3310_v58, 4  ;;  %v3123_v56 = vrot.slane %v3121_v2, 5  ;;  %v3127_v39 = vrot.slane %v3125_v52, 4  ;;  %v4476_v29 = vld [vmem:[#allocation2 + $0x84] sm:$0xff]  }
  0xe2   : > { %v1708_v22 = vpop.permute.xlu0 %1707  ;;  %v3133_v23 = vrot.slane %v3131_v55, 5  ;;  %v3545_v28 = vld [vmem:[#allocation2 + $0x3c] sm:$0xe]  ;;  %v3321_v32 = vrot.slane %v3320_v45, 4  ;;  %v3711_v31 = vrot.slane %v3570_v47, 5  ;;  %v3714_v38 = vrot.slane %v3571_v19, 5 }
  0xe3   : > { %1755 = vst.msk [vmem:[#allocation3 + $0x8] sm:$0xff] %vm1753_vm1, %v1708_v22  ;;  %v3118_v61 = vor.u32 %v3117_v33, %v3114_v9  ;;  %v3546_v24 = vld [vmem:[#allocation2 + $0x40] sm:$0xf]  ;;  %v3316_v35 = vsel %vm4785_vm11, %v3311_v7, %v3315_v43  ;;  %v3128_v27 = vor.u32 %v3127_v39, %v3123_v56  ;;  %v3547_v40 = vld [vmem:[#allocation2 + $0x44] sm:$0x1]  ;;  %v4326_v46 = vrot.slane %v3545_v28, 9 }
  0xe4   : > { %v3655_v25 = vrot.slane %v3546_v24, 5  ;;  %v3326_v48 = vsel %vm4785_vm11, %v3321_v32, %v3325_v54  ;;  %v3712_v57 = vsel %vm4765_vm6, %v4334_v37, %v3711_v31  ;;  %v3713_v62 = vrot.slane %v3711_v31, 4  ;;  %893 = vst.msk [vmem:[#allocation3 + $0x58] sm:$0xff] %vm881_vm14, %v4476_v29  ;;  %v1483_v9 = vld [vmem:[#allocation2 + $0x94] sm:$0xf] }
  0xe5   : > { %v3119_v53 = vrot.slane %v3118_v61, 4  ;;  %v4318_v58 = vcombine.low %v3316_v35, %v3326_v48  ;;  %v3129_v2 = vrot.slane %v3128_v27, 4  ;;  %v2446_v55 = vpop.permute.xlu1 %2445  ;;  %v3658_v4 = vrot.slane %v3547_v40, 5  ;;  %v1484_v33 = vld [vmem:[#allocation2 + $0x98] sm:$0x1] }
  0xe6   : > { %v1885_v63 = vpop.permute.xlu0 %1884  ;;  %v3656_v43 = vsel %vm4765_vm6, %v4326_v46, %v3655_v25  ;;  %v3657_v52 = vrot.slane %v3655_v25, 4  ;;  %v3715_v47 = vsel %vm4765_vm6, %v3713_v62, %v3714_v38  ;;  %v1255_v45 = vrot.slane %v1254_v30, 4  ;;  %v1458_v39 = vld [vmem:[#allocation2 + $0x30] sm:$0xe]  ;;  %v1460_v61 = vld [vmem:[#allocation2 + $0x38] sm:$0x1] }
  0xe7   : > { %1932 = vst.msk [vmem:[#allocation3 + $0x8] sm:$0xff] %vm1930_vm2, %v1885_v63  ;;  %v3124_v54 = vsel %vm4785_vm11, %v3119_v53, %v3123_v56  ;;  %3493 = vrot.lane.b32.xlu1 %v4318_v58, %s4566_s17  ;;  %v3134_v19 = vsel %vm4785_vm11, %v3129_v2, %v3133_v23  ;;  %v4350_v37 = vcombine.low %v3712_v57, %v3715_v47  ;;  %v1053_v22 = vrot.slane %v1052_v49, 4  ;;  %v1459_v56 = vld [vmem:[#allocation2 + $0x34] sm:$0xf]  ;;  %v4477_v38 = vld [vmem:[#allocation2 + $0x24] sm:$0xff]  }
  0xe8   : > { %v1063_v7 = vrot.slane %v1062_v50, 4  ;;  %v4310_v28 = vcombine.low %v3124_v54, %v3134_v19  ;;  %v3659_v32 = vsel %vm4765_vm6, %v3657_v52, %v3658_v4  ;;  %v1260_v14 = vsel %vm4785_vm11, %v1255_v45, %v5270_v16  ;;  %v1983_v29 = vld [vmem:[#allocation2 + $0x9c] sm:$0xf]  ;;  %v1984_v27 = vld [vmem:[#allocation2 + $0xa0] sm:$0xf]  ;;  %885 = vst.msk [vmem:[#allocation3 + $0x18] sm:$0xff] %vm881_vm14, %v4477_v38 }
  0xe9   : > { %v1067_v30 = vrot.slane %v1065_v44, 5  ;;  %v4342_v23 = vcombine.low %v3656_v43, %v3659_v32  ;;  %v4191_v49 = vcombine.low %v1250_v15, %v1260_v14  ;;  %v1058_v50 = vsel %vm4785_vm11, %v1053_v22, %v5276_v20  ;;  %v1985_v40 = vld [vmem:[#allocation2 + $0xa4] sm:$0x1]  ;;  %v2767_v46 = vpop.permute.xlu1 %2766  ;;  %v1959_v63 = vld [vmem:[#allocation2 + $0x3c] sm:$0xf]  ;;  %2485 = vst.msk [vmem:[#allocation3 + $0x48] sm:$0xff] %vm2475_vm3, %v2446_v55 }
  0xea   : > { %v2430_v31 = vpop.permute.xlu0 %2429  ;;  %v1631_v24 = vrot.slane %v1483_v9, 5  ;;  %3477 = vrot.lane.b32.xlu0 %v4310_v28, %s4566_s17  ;;  %v1634_v16 = vrot.slane %v1484_v33, 5  ;;  %v4199_v44 = vrot.slane %v1458_v39, 9  ;;  %v1575_v35 = vrot.slane %v1459_v56, 5  ;;  %v1960_v43 = vld [vmem:[#allocation2 + $0x40] sm:$0xf] }
  0xeb   : > { %v1068_v3 = vsel %vm4785_vm11, %v1063_v7, %v1067_v30  ;;  %3814 = vrot.lane.b32.xlu1 %v4350_v37, %s4564_s15  ;;  %v1578_v15 = vrot.slane %v1460_v61, 5  ;;  %v2284_v5 = vshrl.u32 %v1983_v29, 16  ;;  %v2293_v62 = vshll.u32 %v1984_v27, 16  ;;  %2477 = vst.msk [vmem:[#allocation3 + $0x8] sm:$0xff] %vm2475_vm3, %v2430_v31  ;;  %v1961_v52 = vld [vmem:[#allocation2 + $0x44] sm:$0x1] }
  0xec   : > { %v4183_v12 = vcombine.low %v1058_v50, %v1068_v3  ;;  %v1632_v13 = vsel %vm4765_vm6, %v4207_v41, %v1631_v24  ;;  %v1633_v20 = vrot.slane %v1631_v24, 4  ;;  %v5345_v25 = vsel %vm4765_vm6, %v4199_v44, %v1575_v35  ;;  %2806 = vst.msk [vmem:[#allocation3 + $0x48] sm:$0xff] %vm2796_vm4, %v2767_v46  ;;  %v2528_v26 = vld [vmem:[#allocation2 + $0x9c] sm:$0xe]  ;;  %v2529_v39 = vld [vmem:[#allocation2 + $0xa0] sm:$0xf] }
  0xed   : > { %v1577_v48 = vrot.slane %v1575_v35, 4  ;;  %v2287_v41 = vshll.u32 %v1983_v29, 16  ;;  %v2297_v10 = vshrl.u32 %v1984_v27, 16  ;;  %v2303_v17 = vshll.u32 %v1985_v40, 16  ;;  %v4462_v56 = vld [vmem:[#allocation2 + $0x9c] sm:$0xff]  }
  0xee   : > { %v2751_v53 = vpop.permute.xlu0 %2750  ;;  %v1635_v57 = vsel %vm4765_vm6, %v1633_v20, %v1634_v16  ;;  %3798 = vrot.lane.b32.xlu0 %v4342_v23, %s4564_s15  ;;  %v2286_v54 = vrot.slane %v2284_v5, 4  ;;  %v2295_v4 = vrot.slane %v2293_v62, 5  ;;  %v2092_v9 = vshrl.u32 %v1959_v63, 16  ;;  %v2530_v30 = vld [vmem:[#allocation2 + $0xa4] sm:$0x1] }
  0xef   : > { %v4223_v58 = vcombine.low %v1632_v13, %v1635_v57  ;;  %v1579_v2 = vsel %vm4765_vm6, %v1577_v48, %v1578_v15  ;;  %2798 = vst.msk [vmem:[#allocation3 + $0x8] sm:$0xff] %vm2796_vm4, %v2751_v53  ;;  %1405 = vrot.lane.b32.xlu1 %v4191_v49, %s4560_s11  ;;  %v2289_v47 = vrot.slane %v2287_v41, 5  ;;  %v2299_v45 = vrot.slane %v2297_v10, 4  ;;  %v2504_v49 = vld [vmem:[#allocation2 + $0x3c] sm:$0xe] }
  0xf0   : > { %v4215_v55 = vcombine.low %v5345_v25, %v1579_v2  ;;  %v2305_v18 = vrot.slane %v2303_v17, 5  ;;  %v2095_v33 = vshll.u32 %v1959_v63, 16  ;;  %v2101_v37 = vshll.u32 %v1960_v43, 16  ;;  %v306_v29 = vld [vmem:[%s4763_s9 + $0x68] sm:$0xf] }
  0xf1   : > { %v2290_v19 = vor.u32 %v2289_v47, %v2286_v54  ;;  %v2105_v22 = vshrl.u32 %v1960_v43, 16  ;;  %v2111_v7 = vshll.u32 %v1961_v52, 16  ;;  %v2300_v28 = vor.u32 %v2299_v45, %v2295_v4  ;;  %v2505_v35 = vld [vmem:[#allocation2 + $0x40] sm:$0xf]  ;;  %v2506_v27 = vld [vmem:[#allocation2 + $0x44] sm:$0x1] }
  0xf2   : > { %1389 = vrot.lane.b32.xlu0 %v4183_v12, %s4560_s11  ;;  %v2094_v32 = vrot.slane %v2092_v9, 4  ;;  %v2097_v14 = vrot.slane %v2095_v33, 5  ;;  %vm2974_vm5 = vcmask 228544   ;;  %v2103_v31 = vrot.slane %v2101_v37, 5  ;;  %v4463_v12 = vld [vmem:[#allocation2 + $0x3c] sm:$0xff]  }
  0xf3   : > { %1729 = vrot.lane.b32.xlu1 %v4223_v58, %s4559_s10  ;;  %v2291_v61 = vrot.slane %v2290_v19, 4  ;;  %v2107_v38 = vrot.slane %v2105_v22, 4  ;;  %v2113_v23 = vrot.slane %v2111_v7, 5  ;;  %2983 = vst.msk [vmem:[#allocation3 + $0x40] sm:$0xff] %vm2974_vm5, %v5135_v59  ;;  %2975 = vst.msk [vmem:[#allocation3] sm:$0xff] %vm2974_vm5, %v5137_v60  ;;  %v2301_v50 = vrot.slane %v2300_v28, 4 }
  0xf4   : > { %v2098_v24 = vor.u32 %v2097_v14, %v2094_v32  ;;  %vm3519_vm7 = vcmask 261344   ;;  %vm3840_vm8 = vcmask 294144   ;;  %v4271_v59 = vrot.slane %v2528_v26, 9  ;;  %v307_v15 = vld [vmem:[%s4763_s9 + $0x6c] sm:$0xf] }
  0xf5   : > { %v2945_v3 = vpop.permute.xlu1 %2944  ;;  %v2296_v16 = vsel %vm4785_vm11, %v2291_v61, %v2295_v4  ;;  %v2108_v44 = vor.u32 %v2107_v38, %v2103_v31  ;;  %3528 = vst.msk [vmem:[#allocation3 + $0x40] sm:$0xff] %vm3519_vm7, %v5243_v42  ;;  %3520 = vst.msk [vmem:[#allocation3] sm:$0xff] %vm3519_vm7, %v5262_v11  ;;  %v2674_v60 = vrot.slane %v2529_v39, 5  ;;  %v2306_v13 = vsel %vm4785_vm11, %v2301_v50, %v2305_v18  ;;  %v291_v10 = vld [vmem:[%s4763_s9 + $0x2c] sm:$0xf] }
  0xf6   : > { %2984 = vst.msk [vmem:[#allocation3 + $0x48] sm:$0xff] %vm2974_vm5, %v2945_v3  ;;  %1713 = vrot.lane.b32.xlu0 %v4215_v55, %s4559_s10  ;;  %v2099_v20 = vrot.slane %v2098_v24, 4  ;;  %v2677_v42 = vrot.slane %v2530_v30, 5  ;;  %v4263_v11 = vrot.slane %v2504_v49, 9  ;;  %v4255_v40 = vcombine.low %v2296_v16, %v2306_v13  ;;  %v732_v45 = vld [vmem:[#allocation2 + $0xa8] sm:$0xf] }
  0xf7   : > { %3849 = vst.msk [vmem:[#allocation3 + $0x40] sm:$0xff] %vm3840_vm8, %v5189_v6  ;;  %3841 = vst.msk [vmem:[#allocation3] sm:$0xff] %vm3840_vm8, %v5185_v8  ;;  %1906 = vrot.lane.b32.xlu1 %v4462_v56, %s4561_s12  ;;  %v2109_v46 = vrot.slane %v2108_v44, 4  ;;  %v2675_v25 = vsel %vm4765_vm6, %v4271_v59, %v2674_v60  ;;  %v2676_v48 = vrot.slane %v2674_v60, 4  ;;  %v2618_v6 = vrot.slane %v2505_v35, 5 }
  0xf8   : > { %v2929_v53 = vpop.permute.xlu0 %2928  ;;  %v2104_v57 = vsel %vm4785_vm11, %v2099_v20, %v2103_v31  ;;  %v2621_v5 = vrot.slane %v2506_v27, 5  ;;  %v537_v41 = vshrl.u32 %v306_v29, 16  ;;  %v290_v8 = vld [vmem:[%s4763_s9 + $0x28] sm:$0xf]  ;;  %v540_v58 = vshll.u32 %v306_v29, 16 }
  0xf9   : > { %2976 = vst.msk [vmem:[#allocation3 + $0x8] sm:$0xff] %vm2974_vm5, %v2929_v53  ;;  %v2114_v62 = vsel %vm4785_vm11, %v2109_v46, %v2113_v23  ;;  %v2678_v63 = vsel %vm4765_vm6, %v2676_v48, %v2677_v42  ;;  %v545_v2 = vshrl.u32 %v307_v15, 16  ;;  %v2619_v52 = vsel %vm4765_vm6, %v4263_v11, %v2618_v6  ;;  %v736_v37 = vld [vmem:[#allocation2 + $0xb0] sm:$0x1]  ;;  %v937_v22 = vld [vmem:[#allocation2 + $0x9c] sm:$0xf] }
  0xfa   : > { %1890 = vrot.lane.b32.xlu0 %v4463_v12, %s4561_s12  ;;  %v4247_v17 = vcombine.low %v2104_v57, %v2114_v62  ;;  %v4287_v43 = vcombine.low %v2675_v25, %v2678_v63  ;;  %v2620_v55 = vrot.slane %v2618_v6, 4  ;;  %v539_v54 = vrot.slane %v537_v41, 7  ;;  %v676_v32 = vld [vmem:[#allocation2 + $0x48] sm:$0xf]  ;;  %v680_v30 = vld [vmem:[#allocation2 + $0x50] sm:$0x1] }
  0xfb   : > { %2451 = vrot.lane.b32.xlu1 %v4255_v40, %s4565_s16  ;;  %v547_v47 = vrot.slane %v545_v2, 7  ;;  %v548_v4 = vshll.u32 %v307_v15, 16  ;;  %v401_v18 = vshrl.u32 %v290_v8, 16  ;;  %v404_v33 = vshll.u32 %v290_v8, 16  ;;  %v938_v49 = vld [vmem:[#allocation2 + $0xa0] sm:$0xf] }
  0xfc   : > { %v2622_v9 = vsel %vm4765_vm6, %v2620_v55, %v2621_v5  ;;  %v409_v26 = vshrl.u32 %v291_v10, 16  ;;  %v412_v19 = vshll.u32 %v291_v10, 16  ;;  %v542_v39 = vor.u32 %v540_v58, %v539_v54  ;;  %v939_v16 = vld [vmem:[#allocation2 + $0xa4] sm:$0x1]  ;;  %v913_v59 = vld [vmem:[#allocation2 + $0x3c] sm:$0xf] }
  0xfd   : > { %v4279_v7 = vcombine.low %v2619_v52, %v2622_v9  ;;  %v543_v56 = vrot.slane %v539_v54, 4  ;;  %v550_v28 = vor.u32 %v548_v4, %v547_v47  ;;  %v552_v31 = vrot.slane %v547_v47, 4  ;;  %v914_v15 = vld [vmem:[#allocation2 + $0x40] sm:$0xf]  ;;  %v5426_v5 = vld [vmem:[#allocation2 + $0x44] sm:$0x1] }
  0xfe   : > { %v3866_v14 = vld [vmem:[#allocation3 + $0x40] sm:$0xff]  ;;  %2435 = vrot.lane.b32.xlu0 %v4247_v17, %s4565_s16  ;;  %v403_v38 = vrot.slane %v401_v18, 7  ;;  %v411_v23 = vrot.slane %v409_v26, 7  ;;  %vm3880_vm9 = vcmask 293888   ;;  %v733_v29 = vsel %vm4779_vm10, %v542_v39, %v732_v45  ;;  %v4483_v52 = vld [vmem:[#allocation2 + $0x30] sm:$0xff]  }
  0xff   : > { %v3858_v61 = vld [vmem:[#allocation3] sm:$0xff]  ;;  %2772 = vrot.lane.b32.xlu1 %v4287_v43, %s4563_s14  ;;  %v551_v24 = vsel %vm4799_vm12, %v543_v56, %v550_v28  ;;  %4383 = vmatprep.subr.msk.bf16.mxu0 %vm3880_vm9, %v3866_v14  ;;  %v1262_v44 = vshrl.u32 %v937_v22, 16  ;;  %734 = vst [vmem:[#allocation2 + $0xa8] sm:$0xf] %v733_v29  ;;  %v737_v13 = vsel %vm4823_vm13, %v552_v31, %v736_v37  ;;  %v1265_v42 = vshll.u32 %v937_v22, 16  ;;  %v4482_v43 = vld [vmem:[#allocation2 + $0x90] sm:$0xff]  }
 0x100   : > { %v3885_v3 = vsel %vm3880_vm9, %v3858_v61, 0  ;;  %735 = vst.msk [vmem:[#allocation2 + $0xac] sm:$0xf] %vm224_vm0, %v551_v24  ;;  %v406_v60 = vor.u32 %v404_v33, %v403_v38  ;;  %v407_v35 = vrot.slane %v403_v38, 4  ;;  %v414_v27 = vor.u32 %v412_v19, %v411_v23  ;;  %738 = vst [vmem:[#allocation2 + $0xb0] sm:$0x1] %v737_v13 }
 0x101   : > { %v3490_v50 = vpop.permute.xlu1 %3489  ;;  %v416_v12 = vrot.slane %v411_v23, 4  ;;  %4366 = vmatpush3.bf16.xpose.msra.mxu0 %v3885_v3  ;;  %v1264_v20 = vrot.slane %v1262_v44, 4  ;;  %v1271_v11 = vshll.u32 %v938_v49, 16  ;;  %v1275_v48 = vshrl.u32 %v938_v49, 16  ;;  %894 = vst.msk [vmem:[#allocation3 + $0x60] sm:$0xff] %vm881_vm14, %v4482_v43  ;;  %886 = vst.msk [vmem:[#allocation3 + $0x20] sm:$0xff] %vm881_vm14, %v4483_v52 }
 0x102   : > { %3529 = vst.msk [vmem:[#allocation3 + $0x48] sm:$0xff] %vm3519_vm7, %v3490_v50  ;;  %2756 = vrot.lane.b32.xlu0 %v4279_v7, %s4563_s14  ;;  %v415_v40 = vsel %vm4799_vm12, %v407_v35, %v414_v27  ;;  %v677_v46 = vsel %vm4779_vm10, %v406_v60, %v676_v32  ;;  %v1267_v57 = vrot.slane %v1265_v42, 5  ;;  %v1281_v6 = vshll.u32 %v939_v16, 16 }
 0x103   : > { %v681_v25 = vsel %vm4823_vm13, %v416_v12, %v680_v30  ;;  %678 = vst [vmem:[#allocation2 + $0x48] sm:$0xf] %v677_v46  ;;  %679 = vst.msk [vmem:[#allocation2 + $0x4c] sm:$0xf] %vm224_vm0, %v415_v40  ;;  %v1070_v41 = vshrl.u32 %v913_v59, 16  ;;  %v1073_v62 = vshll.u32 %v913_v59, 16 }
 0x104   : > { %682 = vst [vmem:[#allocation2 + $0x50] sm:$0x1] %v681_v25  ;;  %v1079_v63 = vshll.u32 %v914_v15, 16  ;;  %v1083_v58 = vshrl.u32 %v914_v15, 16  ;;  %v1268_v2 = vor.u32 %v1267_v57, %v1264_v20  ;;  %v5430_v10 = vrot.slane %v1271_v11, 5 }
 0x105   : > { %v3811_v53 = vpop.permute.xlu1 %3810  ;;  %v3474_v8 = vpop.permute.xlu0 %3473  ;;  %v5432_v17 = vrot.slane %v1275_v48, 4  ;;  %v5434_v55 = vrot.slane %v1281_v6, 5  ;;  %v5436_v54 = vrot.slane %v1070_v41, 4  ;;  %v5438_v47 = vrot.slane %v1073_v62, 5 }
 0x106   : > { %3850 = vst.msk [vmem:[#allocation3 + $0x48] sm:$0xff] %vm3840_vm8, %v3811_v53  ;;  %v1089_v4 = vshll.u32 %v5426_v5, 16  ;;  %v5441_v9 = vrot.slane %v1079_v63, 5  ;;  %v3027_v26 = vld [vmem:[#allocation2 + $0xa8] sm:$0xf]  ;;  %v5446_v37 = vrot.slane %v1268_v2, 4 }
 0x107   : > { %3521 = vst.msk [vmem:[#allocation3 + $0x8] sm:$0xff] %vm3519_vm7, %v3474_v8  ;;  %v4466_v18 = vld [vmem:[#allocation2 + $0xa8] sm:$0xff]   ;;  %v5448_v22 = vrot.slane %v1083_v58, 4  ;;  %v3029_v7 = vld [vmem:[#allocation2 + $0xb0] sm:$0x1]  ;;  %v3328_v39 = vshrl.u32 %v3027_v26, 16  ;;  %v1278_v31 = vor.u32 %v5432_v17, %v5430_v10  ;;  %v1076_v38 = vor.u32 %v5438_v47, %v5436_v54 }
 0x108   : > { %v3028_v19 = vld [vmem:[#allocation2 + $0xac] sm:$0xf]  ;;  %2950 = vrot.lane.b32.xlu1 %v4466_v18, %s4562_s13  ;;  %v3331_v56 = vshll.u32 %v3027_v26, 16  ;;  %v3572_v14 = vld [vmem:[#allocation2 + $0xa8] sm:$0xe]  ;;  %v3347_v61 = vshll.u32 %v3029_v7, 16  ;;  %v1274_v27 = vsel %vm4785_vm11, %v5446_v37, %v5430_v10 }
 0x109   : > { %v1402_v45 = vpop.permute.xlu1 %1401  ;;  %v3795_v33 = vpop.permute.xlu0 %3794  ;;  %v3337_v28 = vshll.u32 %v3028_v19, 16  ;;  %v3341_v32 = vshrl.u32 %v3028_v19, 16  ;;  %v3330_v49 = vrot.slane %v3328_v39, 4  ;;  %v1086_v12 = vor.u32 %v5448_v22, %v5441_v9  ;;  %v3573_v15 = vld [vmem:[#allocation2 + $0xac] sm:$0xf]  ;;  %v4486_v5 = vld [vmem:[#allocation2 + $0x9c] sm:$0xff]  }
 0x10a   : > { %1440 = vst.msk [vmem:[#allocation3 + $0x50] sm:$0xff] %vm1429_vm15, %v1402_v45  ;;  %v4467_v30 = vld [vmem:[#allocation2 + $0x48] sm:$0xff]   ;;  %v3333_v50 = vrot.slane %v3331_v56, 5  ;;  %v3349_v44 = vrot.slane %v3347_v61, 5  ;;  %v3574_v40 = vld [vmem:[#allocation2 + $0xb0] sm:$0x1] }
 0x10b   : > { %3842 = vst.msk [vmem:[#allocation3 + $0x8] sm:$0xff] %vm3840_vm8, %v3795_v33  ;;  %v3339_v24 = vrot.slane %v3337_v28, 5  ;;  %v3343_v29 = vrot.slane %v3341_v32, 4  ;;  %v3003_v3 = vld [vmem:[#allocation2 + $0x48] sm:$0xf]  ;;  %2934 = vrot.lane.b32.xlu0 %v4467_v30, %s4562_s13  ;;  %v4335_v53 = vrot.slane %v3572_v14, 9 }
 0x10c   : > { %v3004_v59 = vld [vmem:[#allocation2 + $0x4c] sm:$0xf]  ;;  %v3005_v60 = vld [vmem:[#allocation2 + $0x50] sm:$0x1]  ;;  %v3136_v35 = vshrl.u32 %v3003_v3, 16  ;;  %v3334_v13 = vor.u32 %v3333_v50, %v3330_v49  ;;  %v3139_v42 = vshll.u32 %v3003_v3, 16 }
 0x10d   : > { %v1726_v23 = vpop.permute.xlu1 %1725  ;;  %v1386_v16 = vpop.permute.xlu0 %1385  ;;  %v3344_v20 = vor.u32 %v3343_v29, %v3339_v24  ;;  %v3145_v11 = vshll.u32 %v3004_v59, 16  ;;  %v3149_v25 = vshrl.u32 %v3004_v59, 16  ;;  %v3155_v48 = vshll.u32 %v3005_v60, 16  ;;  %v3548_v57 = vld [vmem:[#allocation2 + $0x48] sm:$0xe]  ;;  %895 = vst.msk [vmem:[#allocation3 + $0x68] sm:$0xff] %vm881_vm14, %v4486_v5 }
 0x10e   : > { %1764 = vst.msk [vmem:[#allocation3 + $0x50] sm:$0xff] %vm1753_vm1, %v1726_v23  ;;  %v3138_v46 = vrot.slane %v3136_v35, 4  ;;  %v3335_v41 = vrot.slane %v3334_v13, 4  ;;  %v3141_v62 = vrot.slane %v3139_v42, 5  ;;  %v3549_v58 = vld [vmem:[#allocation2 + $0x4c] sm:$0xf] }
 0x10f   : > { %1432 = vst.msk [vmem:[#allocation3 + $0x10] sm:$0xff] %vm1429_vm15, %v1386_v16  ;;  %v3345_v8 = vrot.slane %v3344_v20, 4  ;;  %v3147_v63 = vrot.slane %v3145_v11, 5  ;;  %v3151_v17 = vrot.slane %v3149_v25, 4  ;;  %v3157_v43 = vrot.slane %v3155_v48, 5  ;;  %v3867_v16 = vld [vmem:[#allocation3 + $0x48] sm:$0xff] }
 0x110   : > { %v3718_v52 = vrot.slane %v3573_v15, 5  ;;  %v3721_v54 = vrot.slane %v3574_v40, 5  ;;  %v3550_v47 = vld [vmem:[#allocation2 + $0x50] sm:$0x1]  ;;  %v3340_v45 = vsel %vm4785_vm11, %v3335_v41, %v3339_v24  ;;  %v3142_v33 = vor.u32 %v3141_v62, %v3138_v46  ;;  %v1485_v61 = vld [vmem:[#allocation2 + $0x9c] sm:$0xe]  ;;  %4384 = vmatprep.subr.msk.bf16.mxu0 %vm3880_vm9, %v3867_v16 }
 0x111   : > { %v1903_v6 = vpop.permute.xlu1 %1902  ;;  %v1710_v2 = vpop.permute.xlu0 %1709  ;;  %v3350_v18 = vsel %vm4785_vm11, %v3345_v8, %v3349_v44  ;;  %v4327_v26 = vrot.slane %v3548_v57, 9  ;;  %v3152_v22 = vor.u32 %v3151_v17, %v3147_v63  ;;  %v3662_v32 = vrot.slane %v3549_v58, 5  ;;  %v1486_v3 = vld [vmem:[#allocation2 + $0xa0] sm:$0xf]  ;;  %v1487_v35 = vld [vmem:[#allocation2 + $0xa4] sm:$0x1] }
 0x112   : > { %1941 = vst.msk [vmem:[#allocation3 + $0x50] sm:$0xff] %vm1930_vm2, %v1903_v6  ;;  %v4319_v19 = vcombine.low %v3340_v45, %v3350_v18  ;;  %v3719_v7 = vsel %vm4765_vm6, %v4335_v53, %v3718_v52  ;;  %v3720_v39 = vrot.slane %v3718_v52, 4  ;;  %v3143_v28 = vrot.slane %v3142_v33, 4  ;;  %v1461_v13 = vld [vmem:[#allocation2 + $0x3c] sm:$0xe]  ;;  %v4468_v16 = vld [vmem:[#allocation2 + $0xa8] sm:$0xff]  }
 0x113   : > { %1756 = vst.msk [vmem:[#allocation3 + $0x10] sm:$0xff] %vm1753_vm1, %v1710_v2  ;;  %v3665_v14 = vrot.slane %v3550_v47, 5  ;;  %v1279_v30 = vrot.slane %v1278_v31, 4  ;;  %v3153_v49 = vrot.slane %v3152_v22, 4  ;;  %v1077_v24 = vrot.slane %v1076_v38, 4  ;;  %v4487_v58 = vld [vmem:[#allocation2 + $0x3c] sm:$0xff]  }
 0x114   : > { %3495 = vrot.lane.b32.xlu1 %v4319_v19, %s4566_s17  ;;  %v3722_v50 = vsel %vm4765_vm6, %v3720_v39, %v3721_v54  ;;  %v1087_v29 = vrot.slane %v1086_v12, 4  ;;  %v3148_v44 = vsel %vm4785_vm11, %v3143_v28, %v3147_v63  ;;  %v3663_v59 = vsel %vm4765_vm6, %v4327_v26, %v3662_v32  ;;  %v1462_v11 = vld [vmem:[#allocation2 + $0x40] sm:$0xf]  ;;  %v1463_v15 = vld [vmem:[#allocation2 + $0x44] sm:$0x1]  ;;  %887 = vst.msk [vmem:[#allocation3 + $0x28] sm:$0xff] %vm881_vm14, %v4487_v58 }
 0x115   : > { %v2448_v56 = vpop.permute.xlu1 %2447  ;;  %v1887_v23 = vpop.permute.xlu0 %1886  ;;  %v4351_v31 = vcombine.low %v3719_v7, %v3722_v50  ;;  %v3664_v60 = vrot.slane %v3662_v32, 4  ;;  %v3158_v38 = vsel %vm4785_vm11, %v3153_v49, %v3157_v43  ;;  %v1284_v12 = vsel %vm4785_vm11, %v1279_v30, %v5434_v55  ;;  %v1986_v53 = vld [vmem:[#allocation2 + $0xa8] sm:$0xf]  ;;  %v1987_v8 = vld [vmem:[#allocation2 + $0xac] sm:$0xf] }
 0x116   : > { %2486 = vst.msk [vmem:[#allocation3 + $0x50] sm:$0xff] %vm2475_vm3, %v2448_v56  ;;  %v1082_v20 = vsel %vm4785_vm11, %v1077_v24, %v5441_v9  ;;  %v1091_v42 = vrot.slane %v1089_v4, 5  ;;  %v4311_v46 = vcombine.low %v3148_v44, %v3158_v38  ;;  %v4192_v55 = vcombine.low %v1274_v27, %v1284_v12  ;;  %v1988_v63 = vld [vmem:[#allocation2 + $0xb0] sm:$0x1]  ;;  %v1962_v33 = vld [vmem:[#allocation2 + $0x48] sm:$0xf] }
 0x117   : > { %1933 = vst.msk [vmem:[#allocation3 + $0x10] sm:$0xff] %vm1930_vm2, %v1887_v23  ;;  %v3666_v25 = vsel %vm4765_vm6, %v3664_v60, %v3665_v14  ;;  %v4208_v48 = vrot.slane %v1485_v61, 9  ;;  %v1638_v6 = vrot.slane %v1486_v3, 5  ;;  %v1641_v41 = vrot.slane %v1487_v35, 5  ;;  %v1963_v56 = vld [vmem:[#allocation2 + $0x4c] sm:$0xf] }
 0x118   : > { %3816 = vrot.lane.b32.xlu1 %v4351_v31, %s4564_s15  ;;  %v4343_v4 = vcombine.low %v3663_v59, %v3666_v25  ;;  %v1092_v9 = vsel %vm4785_vm11, %v1087_v29, %v1091_v42  ;;  %3479 = vrot.lane.b32.xlu0 %v4311_v46, %s4566_s17  ;;  %v4200_v37 = vrot.slane %v1461_v13, 9  ;;  %v1582_v27 = vrot.slane %v1462_v11, 5  ;;  %v1964_v61 = vld [vmem:[#allocation2 + $0x50] sm:$0x1]  ;;  %v2531_v23 = vld [vmem:[#allocation2 + $0xa8] sm:$0xe] }
 0x119   : > { %v2769_v40 = vpop.permute.xlu1 %2768  ;;  %v2432_v57 = vpop.permute.xlu0 %2431  ;;  %v4184_v10 = vcombine.low %v1082_v20, %v1092_v9  ;;  %v1585_v62 = vrot.slane %v1463_v15, 5  ;;  %v1639_v2 = vsel %vm4765_vm6, %v4208_v48, %v1638_v6  ;;  %v1640_v17 = vrot.slane %v1638_v6, 4  ;;  %v2532_v3 = vld [vmem:[#allocation2 + $0xac] sm:$0xf]  ;;  %v2533_v35 = vld [vmem:[#allocation2 + $0xb0] sm:$0x1] }
 0x11a   : > { %2807 = vst.msk [vmem:[#allocation3 + $0x50] sm:$0xff] %vm2796_vm4, %v2769_v40  ;;  %v2308_v43 = vshrl.u32 %v1986_v53, 16  ;;  %v2311_v52 = vshll.u32 %v1986_v53, 16  ;;  %v5511_v54 = vsel %vm4765_vm6, %v4200_v37, %v1582_v27  ;;  %v1584_v47 = vrot.slane %v1582_v27, 4  ;;  %v2507_v11 = vld [vmem:[#allocation2 + $0x48] sm:$0xe] }
 0x11b   : > { %2478 = vst.msk [vmem:[#allocation3 + $0x10] sm:$0xff] %vm2475_vm3, %v2432_v57  ;;  %v2317_v45 = vshll.u32 %v1987_v8, 16  ;;  %v2321_v18 = vshrl.u32 %v1987_v8, 16  ;;  %v1642_v19 = vsel %vm4765_vm6, %v1640_v17, %v1641_v41  ;;  %v2327_v39 = vshll.u32 %v1988_v63, 16  ;;  %v308_v15 = vld [vmem:[%s4763_s9 + $0x70] sm:$0xf] }
 0x11c   : > { %1407 = vrot.lane.b32.xlu1 %v4192_v55, %s4560_s11  ;;  %v2310_v22 = vrot.slane %v2308_v43, 4  ;;  %v2313_v7 = vrot.slane %v2311_v52, 5  ;;  %3800 = vrot.lane.b32.xlu0 %v4343_v4, %s4564_s15  ;;  %v4224_v28 = vcombine.low %v1639_v2, %v1642_v19  ;;  %v1586_v32 = vsel %vm4765_vm6, %v1584_v47, %v1585_v62  ;;  %v2508_v48 = vld [vmem:[#allocation2 + $0x4c] sm:$0xf]  ;;  %v2509_v9 = vld [vmem:[#allocation2 + $0x50] sm:$0x1] }
 0x11d   : > { %v2753_v26 = vpop.permute.xlu0 %2752  ;;  %v2319_v14 = vrot.slane %v2317_v45, 5  ;;  %v2323_v30 = vrot.slane %v2321_v18, 4  ;;  %v4216_v49 = vcombine.low %v5511_v54, %v1586_v32  ;;  %v2329_v24 = vrot.slane %v2327_v39, 5  ;;  %v309_v2 = vld [vmem:[%s4763_s9 + $0x74] sm:$0xf]  ;;  %v4469_v17 = vld [vmem:[#allocation2 + $0x48] sm:$0xff]  }
 0x11e   : > { %2799 = vst.msk [vmem:[#allocation3 + $0x10] sm:$0xff] %vm2796_vm4, %v2753_v26  ;;  %v2314_v50 = vor.u32 %v2313_v7, %v2310_v22  ;;  %v2116_v29 = vshrl.u32 %v1962_v33, 16  ;;  %v2119_v31 = vshll.u32 %v1962_v33, 16  ;;  %v2125_v59 = vshll.u32 %v1963_v56, 16  ;;  %v292_v19 = vld [vmem:[%s4763_s9 + $0x30] sm:$0xf] }
 0x11f   : > { %v2324_v44 = vor.u32 %v2323_v30, %v2319_v14  ;;  %v2129_v60 = vshrl.u32 %v1963_v56, 16  ;;  %v2135_v20 = vshll.u32 %v1964_v61, 16  ;;  %v4272_v42 = vrot.slane %v2531_v23, 9  ;;  %v293_v22 = vld [vmem:[%s4763_s9 + $0x34] sm:$0xf] }
 0x120   : > { %v2947_v13 = vpop.permute.xlu1 %2946  ;;  %1731 = vrot.lane.b32.xlu1 %v4224_v28, %s4559_s10  ;;  %v2315_v38 = vrot.slane %v2314_v50, 4  ;;  %v2118_v12 = vrot.slane %v2116_v29, 4  ;;  %1391 = vrot.lane.b32.xlu0 %v4184_v10, %s4560_s11  ;;  %v2121_v46 = vrot.slane %v2119_v31, 5  ;;  %v2127_v25 = vrot.slane %v2125_v59, 5  ;;  %v739_v32 = vld [vmem:[#allocation2 + $0xb4] sm:$0xf] }
 0x121   : > { %2985 = vst.msk [vmem:[#allocation3 + $0x50] sm:$0xff] %vm2974_vm5, %v2947_v13  ;;  %v2325_v40 = vrot.slane %v2324_v44, 4  ;;  %v2131_v55 = vrot.slane %v2129_v60, 4  ;;  %v2137_v57 = vrot.slane %v2135_v20, 5  ;;  %v2681_v5 = vrot.slane %v2532_v3, 5 }
 0x122   : > { %v2320_v53 = vsel %vm4785_vm11, %v2315_v38, %v2319_v14  ;;  %v2684_v4 = vrot.slane %v2533_v35, 5  ;;  %v2122_v8 = vor.u32 %v2121_v46, %v2118_v12  ;;  %v4264_v10 = vrot.slane %v2507_v11, 9  ;;  %v3859_v14 = vld [vmem:[#allocation3 + $0x8] sm:$0xff]  ;;  %v940_v30 = vld [vmem:[#allocation2 + $0xa8] sm:$0xf] }
 0x123   : > { %v2931_v6 = vpop.permute.xlu0 %2930  ;;  %v2330_v41 = vsel %vm4785_vm11, %v2325_v40, %v2329_v24  ;;  %v2132_v37 = vor.u32 %v2131_v55, %v2127_v25  ;;  %v2682_v62 = vsel %vm4765_vm6, %v4272_v42, %v2681_v5  ;;  %v2683_v63 = vrot.slane %v2681_v5, 4  ;;  %v941_v24 = vld [vmem:[#allocation2 + $0xac] sm:$0xf]  ;;  %v743_v31 = vld [vmem:[#allocation2 + $0xbc] sm:$0x1] }
 0x124   : > { %2977 = vst.msk [vmem:[#allocation3 + $0x10] sm:$0xff] %vm2974_vm5, %v2931_v6  ;;  %1908 = vrot.lane.b32.xlu1 %v4468_v16, %s4561_s12  ;;  %v4256_v27 = vcombine.low %v2320_v53, %v2330_v41  ;;  %v2625_v58 = vrot.slane %v2508_v48, 5  ;;  %1715 = vrot.lane.b32.xlu0 %v4216_v49, %s4559_s10  ;;  %v2123_v43 = vrot.slane %v2122_v8, 4  ;;  %v2628_v54 = vrot.slane %v2509_v9, 5  ;;  %v683_v38 = vld [vmem:[#allocation2 + $0x54] sm:$0xf] }
 0x125   : > { %v2133_v52 = vrot.slane %v2132_v37, 4  ;;  %v554_v47 = vshrl.u32 %v308_v15, 16  ;;  %v2685_v45 = vsel %vm4765_vm6, %v2683_v63, %v2684_v4  ;;  %v557_v26 = vshll.u32 %v308_v15, 16  ;;  %v687_v11 = vld [vmem:[#allocation2 + $0x5c] sm:$0x1] }
 0x126   : > { %v5540_v18 = vsel %vm4765_vm6, %v4264_v10, %v2625_v58  ;;  %v2627_v33 = vrot.slane %v2625_v58, 4  ;;  %v2128_v7 = vsel %vm4785_vm11, %v2123_v43, %v2127_v25  ;;  %v4288_v56 = vcombine.low %v2682_v62, %v2685_v45  ;;  %v942_v48 = vld [vmem:[#allocation2 + $0xb0] sm:$0x1]  ;;  %v916_v6 = vld [vmem:[#allocation2 + $0x48] sm:$0xf] }
 0x127   : > { %v2138_v39 = vsel %vm4785_vm11, %v2133_v52, %v2137_v57  ;;  %v556_v28 = vrot.slane %v554_v47, 7  ;;  %v562_v49 = vshrl.u32 %v309_v2, 16  ;;  %v565_v50 = vshll.u32 %v309_v2, 16 }
 0x128   : > { %2453 = vrot.lane.b32.xlu1 %v4256_v27, %s4565_s16  ;;  %v4248_v61 = vcombine.low %v2128_v7, %v2138_v39  ;;  %v2629_v23 = vsel %vm4765_vm6, %v2627_v33, %v2628_v54  ;;  %1892 = vrot.lane.b32.xlu0 %v4469_v17, %s4561_s12  ;;  %v418_v44 = vshrl.u32 %v292_v19, 16  ;;  %v421_v60 = vshll.u32 %v292_v19, 16  ;;  %v917_v27 = vld [vmem:[#allocation2 + $0x4c] sm:$0xf] }
 0x129   : > { %v4280_v29 = vcombine.low %v5540_v18, %v2629_v23  ;;  %v559_v3 = vor.u32 %v557_v26, %v556_v28  ;;  %v560_v16 = vrot.slane %v556_v28, 4  ;;  %v564_v59 = vrot.slane %v562_v49, 7  ;;  %v5574_v26 = vld [vmem:[#allocation2 + $0x50] sm:$0x1] }
 0x12a   : > { %v426_v35 = vshrl.u32 %v293_v22, 16  ;;  %v429_v13 = vshll.u32 %v293_v22, 16  ;;  %v420_v42 = vrot.slane %v418_v44, 7  ;;  %v3888_v15 = vsel %vm3880_vm9, %v3859_v14, 0 }
 0x12b   : > { %v740_v20 = vsel %vm4779_vm10, %v559_v3, %v739_v32  ;;  %v1286_v40 = vshrl.u32 %v940_v30, 16  ;;  %v567_v46 = vor.u32 %v565_v50, %v564_v59  ;;  %v569_v25 = vrot.slane %v564_v59, 4  ;;  %4368 = vmatpush3.bf16.xpose.msra.mxu0 %v3888_v15 }
 0x12c   : > { %v3492_v12 = vpop.permute.xlu1 %3491  ;;  %2774 = vrot.lane.b32.xlu1 %v4288_v56, %s4563_s14  ;;  %741 = vst [vmem:[#allocation2 + $0xb4] sm:$0xf] %v740_v20  ;;  %v428_v55 = vrot.slane %v426_v35, 7  ;;  %v1289_v53 = vshll.u32 %v940_v30, 16  ;;  %2437 = vrot.lane.b32.xlu0 %v4248_v61, %s4565_s16  ;;  %v423_v57 = vor.u32 %v421_v60, %v420_v42  ;;  %v424_v5 = vrot.slane %v420_v42, 4 }
 0x12d   : > { %3530 = vst.msk [vmem:[#allocation3 + $0x50] sm:$0xff] %vm3519_vm7, %v3492_v12  ;;  %v1288_v4 = vrot.slane %v1286_v40, 4  ;;  %v1295_v9 = vshll.u32 %v941_v24, 16  ;;  %v568_v41 = vsel %vm4799_vm12, %v560_v16, %v567_v46  ;;  %v744_v10 = vsel %vm4823_vm13, %v569_v25, %v743_v31 }
 0x12e   : > { %v431_v8 = vor.u32 %v429_v13, %v428_v55  ;;  %v433_v37 = vrot.slane %v428_v55, 4  ;;  %742 = vst.msk [vmem:[#allocation2 + $0xb8] sm:$0xf] %vm224_vm0, %v568_v41  ;;  %v684_v63 = vsel %vm4779_vm10, %v423_v57, %v683_v38  ;;  %745 = vst [vmem:[#allocation2 + $0xbc] sm:$0x1] %v744_v10  ;;  %v1291_v58 = vrot.slane %v1289_v53, 5 }
 0x12f   : > { %v1297_v2 = vrot.slane %v1295_v9, 5  ;;  %v1299_v17 = vshrl.u32 %v941_v24, 16  ;;  %685 = vst [vmem:[#allocation2 + $0x54] sm:$0xf] %v684_v63  ;;  %v1305_v47 = vshll.u32 %v942_v48, 16  ;;  %v1094_v45 = vshrl.u32 %v916_v6, 16 }
 0x130   : > { %v3813_v62 = vpop.permute.xlu1 %3812  ;;  %v3476_v43 = vpop.permute.xlu0 %3475  ;;  %v432_v52 = vsel %vm4799_vm12, %v424_v5, %v431_v8  ;;  %v688_v54 = vsel %vm4823_vm13, %v433_v37, %v687_v11  ;;  %2758 = vrot.lane.b32.xlu0 %v4280_v29, %s4563_s14  ;;  %v1292_v18 = vor.u32 %v1291_v58, %v1288_v4  ;;  %v1097_v19 = vshll.u32 %v916_v6, 16 }
 0x131   : > { %3851 = vst.msk [vmem:[#allocation3 + $0x50] sm:$0xff] %vm3840_vm8, %v3813_v62  ;;  %689 = vst [vmem:[#allocation2 + $0x5c] sm:$0x1] %v688_v54  ;;  %v1301_v33 = vrot.slane %v1299_v17, 4  ;;  %v1103_v22 = vshll.u32 %v917_v27, 16  ;;  %v1107_v7 = vshrl.u32 %v917_v27, 16 }
 0x132   : > { %3522 = vst.msk [vmem:[#allocation3 + $0x10] sm:$0xff] %vm3519_vm7, %v3476_v43  ;;  %v1307_v32 = vrot.slane %v1305_v47, 5  ;;  %v1096_v14 = vrot.slane %v1094_v45, 4  ;;  %v1293_v49 = vrot.slane %v1292_v18, 4  ;;  %v1113_v50 = vshll.u32 %v5574_v26, 16 }
 0x133   : > { %686 = vst.msk [vmem:[#allocation2 + $0x58] sm:$0xf] %vm224_vm0, %v432_v52  ;;  %v3030_v56 = vld [vmem:[#allocation2 + $0xb4] sm:$0xf]  ;;  %v1302_v28 = vor.u32 %v1301_v33, %v1297_v2  ;;  %v1099_v3 = vrot.slane %v1097_v19, 5  ;;  %v5579_v16 = vrot.slane %v1103_v22, 5 }
 0x134   : > { %v1404_v39 = vpop.permute.xlu1 %1403  ;;  %v3797_v30 = vpop.permute.xlu0 %3796  ;;  %v3352_v61 = vshrl.u32 %v3030_v56, 16  ;;  %v3355_v23 = vshll.u32 %v3030_v56, 16  ;;  %v3575_v24 = vld [vmem:[#allocation2 + $0xb4] sm:$0xe]  ;;  %v5581_v44 = vrot.slane %v1107_v7, 4  ;;  %v1298_v35 = vsel %vm4785_vm11, %v1293_v49, %v1297_v2 }
 0x135   : > { %1441 = vst.msk [vmem:[#allocation3 + $0x58] sm:$0xff] %vm1429_vm15, %v1404_v39  ;;  %v1303_v29 = vrot.slane %v1302_v28, 4  ;;  %v4472_v31 = vld [vmem:[#allocation2 + $0xb4] sm:$0xff]   ;;  %v3032_v38 = vld [vmem:[#allocation2 + $0xbc] sm:$0x1]  ;;  %v1100_v11 = vor.u32 %v1099_v3, %v1096_v14  ;;  %v4336_v55 = vrot.slane %v3575_v24, 9 }
 0x136   : > { %3843 = vst.msk [vmem:[#allocation3 + $0x10] sm:$0xff] %vm3840_vm8, %v3797_v30  ;;  %v3031_v59 = vld [vmem:[#allocation2 + $0xb8] sm:$0xf]  ;;  %v3354_v60 = vrot.slane %v3352_v61, 4  ;;  %v3357_v12 = vrot.slane %v3355_v23, 5  ;;  %2952 = vrot.lane.b32.xlu1 %v4472_v31, %s4562_s13  ;;  %v3371_v25 = vshll.u32 %v3032_v38, 16  ;;  %v1110_v6 = vor.u32 %v5581_v44, %v5579_v16 }
 0x137   : > { %v3361_v20 = vshll.u32 %v3031_v59, 16  ;;  %v1308_v42 = vsel %vm4785_vm11, %v1303_v29, %v1307_v32  ;;  %v3365_v46 = vshrl.u32 %v3031_v59, 16  ;;  %v3006_v5 = vld [vmem:[#allocation2 + $0x54] sm:$0xf]  ;;  %v5592_v9 = vrot.slane %v1100_v11, 4 }
 0x138   : > { %v1728_v13 = vpop.permute.xlu1 %1727  ;;  %v1388_v15 = vpop.permute.xlu0 %1387  ;;  %v5589_v48 = vcombine.low %v1298_v35, %v1308_v42  ;;  %v3358_v53 = vor.u32 %v3357_v12, %v3354_v60  ;;  %v3373_v8 = vrot.slane %v3371_v25, 5  ;;  %v3008_v37 = vld [vmem:[#allocation2 + $0x5c] sm:$0x1]  ;;  %v3160_v10 = vshrl.u32 %v3006_v5, 16  ;;  %v3576_v43 = vld [vmem:[#allocation2 + $0xb8] sm:$0xf] }
 0x139   : > { %1765 = vst.msk [vmem:[#allocation3 + $0x58] sm:$0xff] %vm1753_vm1, %v1728_v13  ;;  %v3363_v57 = vrot.slane %v3361_v20, 5  ;;  %v3367_v41 = vrot.slane %v3365_v46, 4  ;;  %v3163_v27 = vshll.u32 %v3006_v5, 16  ;;  %v3179_v17 = vshll.u32 %v3008_v37, 16  ;;  %v3868_v28 = vld [vmem:[#allocation3 + $0x50] sm:$0xff] }
 0x13a   : > { %v4473_v40 = vld [vmem:[#allocation2 + $0x54] sm:$0xff]   ;;  %1433 = vst.msk [vmem:[#allocation3 + $0x18] sm:$0xff] %vm1429_vm15, %v1388_v15  ;;  %v3359_v63 = vrot.slane %v3358_v53, 4  ;;  %v3162_v47 = vrot.slane %v3160_v10, 4  ;;  %v3577_v18 = vld [vmem:[#allocation2 + $0xbc] sm:$0x1]  ;;  %4385 = vmatprep.subr.msk.bf16.mxu0 %vm3880_vm9, %v3868_v28  ;;  %v1106_v20 = vsel %vm4785_vm11, %v5592_v9, %v5579_v16 }
 0x13b   : > { %v3007_v4 = vld [vmem:[#allocation2 + $0x58] sm:$0xf]  ;;  %2936 = vrot.lane.b32.xlu0 %v4473_v40, %s4562_s13  ;;  %v3368_v54 = vor.u32 %v3367_v41, %v3363_v57  ;;  %v3165_v45 = vrot.slane %v3163_v27, 5  ;;  %v3725_v33 = vrot.slane %v3576_v43, 5  ;;  %v3181_v39 = vrot.slane %v3179_v17, 5 }
 0x13c   : > { %v1905_v62 = vpop.permute.xlu1 %1904  ;;  %v3169_v58 = vshll.u32 %v3007_v4, 16  ;;  %v3173_v2 = vshrl.u32 %v3007_v4, 16  ;;  %v1712_v52 = vpop.permute.xlu0 %1711  ;;  %v3364_v19 = vsel %vm4785_vm11, %v3359_v63, %v3363_v57  ;;  %v3551_v56 = vld [vmem:[#allocation2 + $0x54] sm:$0xe]  ;;  %v3552_v23 = vld [vmem:[#allocation2 + $0x58] sm:$0xf] }
 0x13d   : > { %1942 = vst.msk [vmem:[#allocation3 + $0x58] sm:$0xff] %vm1930_vm2, %v1905_v62  ;;  %v3369_v32 = vrot.slane %v3368_v54, 4  ;;  %v3166_v14 = vor.u32 %v3165_v45, %v3162_v47  ;;  %v3726_v30 = vsel %vm4765_vm6, %v4336_v55, %v3725_v33  ;;  %v3727_v61 = vrot.slane %v3725_v33, 4  ;;  %v3553_v49 = vld [vmem:[#allocation2 + $0x5c] sm:$0x1]  ;;  %v4488_v55 = vld [vmem:[#allocation2 + $0xa8] sm:$0xff]  }
 0x13e   : > { %1757 = vst.msk [vmem:[#allocation3 + $0x18] sm:$0xff] %vm1753_vm1, %v1712_v52  ;;  %v3171_v22 = vrot.slane %v3169_v58, 5  ;;  %v3175_v7 = vrot.slane %v3173_v2, 4  ;;  %v1488_v24 = vld [vmem:[#allocation2 + $0xa8] sm:$0xe]  ;;  %v3728_v31 = vrot.slane %v3577_v18, 5 }
 0x13f   : > { %v1489_v29 = vld [vmem:[#allocation2 + $0xac] sm:$0xf]  ;;  %v4328_v59 = vrot.slane %v3551_v56, 9  ;;  %v3669_v60 = vrot.slane %v3552_v23, 5  ;;  %v3374_v13 = vsel %vm4785_vm11, %v3369_v32, %v3373_v8  ;;  %v3167_v38 = vrot.slane %v3166_v14, 4  ;;  %896 = vst.msk [vmem:[#allocation3 + $0x70] sm:$0xff] %vm881_vm14, %v4488_v55 }
 0x140   : > { %v2450_v3 = vpop.permute.xlu1 %2449  ;;  %v3176_v44 = vor.u32 %v3175_v7, %v3171_v22  ;;  %v1889_v35 = vpop.permute.xlu0 %1888  ;;  %v3672_v12 = vrot.slane %v3553_v49, 5  ;;  %v4320_v42 = vcombine.low %v3364_v19, %v3374_v13  ;;  %v3729_v15 = vsel %vm4765_vm6, %v3727_v61, %v3728_v31  ;;  %v1490_v46 = vld [vmem:[#allocation2 + $0xb0] sm:$0x1]  ;;  %v1464_v25 = vld [vmem:[#allocation2 + $0x48] sm:$0xe] }
 0x141   : > { %2487 = vst.msk [vmem:[#allocation3 + $0x58] sm:$0xff] %vm2475_vm3, %v2450_v3  ;;  %v3670_v40 = vsel %vm4765_vm6, %v4328_v59, %v3669_v60  ;;  %v3172_v53 = vsel %vm4785_vm11, %v3167_v38, %v3171_v22  ;;  %v4352_v57 = vcombine.low %v3726_v30, %v3729_v15  ;;  %v3671_v5 = vrot.slane %v3669_v60, 4  ;;  %v1465_v16 = vld [vmem:[#allocation2 + $0x4c] sm:$0xf]  ;;  %v1466_v9 = vld [vmem:[#allocation2 + $0x50] sm:$0x1] }
 0x142   : > { %1934 = vst.msk [vmem:[#allocation3 + $0x18] sm:$0xff] %vm1930_vm2, %v1889_v35  ;;  %v3177_v11 = vrot.slane %v3176_v44, 4  ;;  %v1111_v4 = vrot.slane %v1110_v6, 4  ;;  %3497 = vrot.lane.b32.xlu1 %v4320_v42, %s4566_s17  ;;  %v1115_v37 = vrot.slane %v1113_v50, 5  ;;  %v4209_v10 = vrot.slane %v1488_v24, 9  ;;  %v4489_v6 = vld [vmem:[#allocation2 + $0x48] sm:$0xff]  }
 0x143   : > { %v1645_v27 = vrot.slane %v1489_v29, 5  ;;  %v1989_v62 = vld [vmem:[#allocation2 + $0xb4] sm:$0xf]  ;;  %v3673_v2 = vsel %vm4765_vm6, %v3671_v5, %v3672_v12  ;;  %v1648_v17 = vrot.slane %v1490_v46, 5  ;;  %v4201_v43 = vrot.slane %v1464_v25, 9  ;;  %888 = vst.msk [vmem:[#allocation3 + $0x30] sm:$0xff] %vm881_vm14, %v4489_v6 }
 0x144   : > { %v2771_v41 = vpop.permute.xlu1 %2770  ;;  %v3182_v8 = vsel %vm4785_vm11, %v3177_v11, %v3181_v39  ;;  %v2434_v63 = vpop.permute.xlu0 %2433  ;;  %v1990_v52 = vld [vmem:[#allocation2 + $0xb8] sm:$0xf]  ;;  %v4344_v26 = vcombine.low %v3670_v40, %v3673_v2  ;;  %v1116_v50 = vsel %vm4785_vm11, %v1111_v4, %v1115_v37  ;;  %v1991_v45 = vld [vmem:[#allocation2 + $0xbc] sm:$0x1]  ;;  %v1589_v33 = vrot.slane %v1465_v16, 5 }
 0x145   : > { %2808 = vst.msk [vmem:[#allocation3 + $0x58] sm:$0xff] %vm2796_vm4, %v2771_v41  ;;  %v4312_v58 = vcombine.low %v3172_v53, %v3182_v8  ;;  %v1646_v54 = vsel %vm4765_vm6, %v4209_v10, %v1645_v27  ;;  %v1647_v47 = vrot.slane %v1645_v27, 4  ;;  %v4185_v18 = vcombine.low %v1106_v20, %v1116_v50  ;;  %v1965_v7 = vld [vmem:[#allocation2 + $0x54] sm:$0xf]  ;;  %v1966_v14 = vld [vmem:[#allocation2 + $0x58] sm:$0xf] }
 0x146   : > { %2479 = vst.msk [vmem:[#allocation3 + $0x18] sm:$0xff] %vm2475_vm3, %v2434_v63  ;;  %v1592_v19 = vrot.slane %v1466_v9, 5  ;;  %v2332_v22 = vshrl.u32 %v1989_v62, 16  ;;  %3818 = vrot.lane.b32.xlu1 %v4352_v57, %s4564_s15  ;;  %v2335_v56 = vshll.u32 %v1989_v62, 16  ;;  %v2341_v28 = vshll.u32 %v1990_v52, 16 }
 0x147   : > { %3481 = vrot.lane.b32.xlu0 %v4312_v58, %s4566_s17  ;;  %v1649_v39 = vsel %vm4765_vm6, %v1647_v47, %v1648_v17  ;;  %v2345_v32 = vshrl.u32 %v1990_v52, 16  ;;  %v1590_v23 = vsel %vm4765_vm6, %v4201_v43, %v1589_v33  ;;  %v1591_v49 = vrot.slane %v1589_v33, 4  ;;  %v1967_v59 = vld [vmem:[#allocation2 + $0x5c] sm:$0x1]  ;;  %v2534_v12 = vld [vmem:[#allocation2 + $0xb4] sm:$0xe] }
 0x148   : > { %v2755_v30 = vpop.permute.xlu0 %2754  ;;  %v4225_v61 = vcombine.low %v1646_v54, %v1649_v39  ;;  %v2334_v24 = vrot.slane %v2332_v22, 4  ;;  %v2337_v29 = vrot.slane %v2335_v56, 5  ;;  %v2343_v3 = vrot.slane %v2341_v28, 5  ;;  %v2535_v40 = vld [vmem:[#allocation2 + $0xb8] sm:$0xf] }
 0x149   : > { %2800 = vst.msk [vmem:[#allocation3 + $0x18] sm:$0xff] %vm2796_vm4, %v2755_v30  ;;  %v2347_v44 = vrot.slane %v2345_v32, 4  ;;  %v2351_v31 = vshll.u32 %v1991_v45, 16  ;;  %v1593_v60 = vsel %vm4765_vm6, %v1591_v49, %v1592_v19  ;;  %v2140_v35 = vshrl.u32 %v1965_v7, 16  ;;  %v2536_v46 = vld [vmem:[#allocation2 + $0xbc] sm:$0x1] }
 0x14a   : > { %v2143_v13 = vshll.u32 %v1965_v7, 16  ;;  %v2149_v38 = vshll.u32 %v1966_v14, 16  ;;  %1409 = vrot.lane.b32.xlu1 %v5589_v48, %s4560_s11  ;;  %v4217_v20 = vcombine.low %v1590_v23, %v1593_v60  ;;  %v2338_v42 = vor.u32 %v2337_v29, %v2334_v24  ;;  %v2510_v5 = vld [vmem:[#allocation2 + $0x54] sm:$0xe]  ;;  %v310_v4 = vld [vmem:[%s4763_s9 + $0x78] sm:$0xf] }
 0x14b   : > { %3802 = vrot.lane.b32.xlu0 %v4344_v26, %s4564_s15  ;;  %v2348_v11 = vor.u32 %v2347_v44, %v2343_v3  ;;  %v2353_v15 = vrot.slane %v2351_v31, 5  ;;  %v2142_v25 = vrot.slane %v2140_v35, 4  ;;  %v2153_v57 = vshrl.u32 %v1966_v14, 16  ;;  %v2511_v37 = vld [vmem:[#allocation2 + $0x58] sm:$0xf] }
 0x14c   : > { %v2145_v55 = vrot.slane %v2143_v13, 5  ;;  %v2151_v53 = vrot.slane %v2149_v38, 5  ;;  %v2339_v16 = vrot.slane %v2338_v42, 4  ;;  %v2159_v41 = vshll.u32 %v1967_v59, 16  ;;  %v2512_v63 = vld [vmem:[#allocation2 + $0x5c] sm:$0x1] }
 0x14d   : > { %v2349_v9 = vrot.slane %v2348_v11, 4  ;;  %v4273_v8 = vrot.slane %v2534_v12, 9  ;;  %v2155_v10 = vrot.slane %v2153_v57, 4  ;;  %v2688_v27 = vrot.slane %v2535_v40, 5  ;;  %v2949_v6 = vpop.permute.xlu1 %2948  ;;  %v4474_v58 = vld [vmem:[#allocation2 + $0xb4] sm:$0xff]  }
 0x14e   : > { %v2146_v48 = vor.u32 %v2145_v55, %v2142_v25  ;;  %v2691_v62 = vrot.slane %v2536_v46, 5  ;;  %1733 = vrot.lane.b32.xlu1 %v4225_v61, %s4559_s10  ;;  %v2344_v2 = vsel %vm4785_vm11, %v2339_v16, %v2343_v3  ;;  %v2161_v43 = vrot.slane %v2159_v41, 5  ;;  %v311_v26 = vld [vmem:[%s4763_s9 + $0x7c] sm:$0xf]  ;;  %2986 = vst.msk [vmem:[#allocation3 + $0x58] sm:$0xff] %vm2974_vm5, %v2949_v6  ;;  %v4475_v39 = vld [vmem:[#allocation2 + $0x54] sm:$0xff]  }
 0x14f   : > { %1393 = vrot.lane.b32.xlu0 %v4185_v18, %s4560_s11  ;;  %v2354_v17 = vsel %vm4785_vm11, %v2349_v9, %v2353_v15  ;;  %v4265_v52 = vrot.slane %v2510_v5, 9  ;;  %v2156_v47 = vor.u32 %v2155_v10, %v2151_v53  ;;  %v5656_v45 = vsel %vm4765_vm6, %v4273_v8, %v2688_v27  ;;  %v2933_v18 = vpop.permute.xlu0 %2932  ;;  %v746_v30 = vld [vmem:[#allocation2 + $0xc0] sm:$0xf]  ;;  %v750_v60 = vld [vmem:[#allocation2 + $0xc8] sm:$0x1] }
 0x150   : > { %v4257_v50 = vcombine.low %v2344_v2, %v2354_v17  ;;  %v2147_v54 = vrot.slane %v2146_v48, 4  ;;  %v2690_v33 = vrot.slane %v2688_v27, 4  ;;  %v2632_v19 = vrot.slane %v2511_v37, 5  ;;  %2978 = vst.msk [vmem:[#allocation3 + $0x18] sm:$0xff] %vm2974_vm5, %v2933_v18  ;;  %v3009_v29 = vld [vmem:[#allocation2 + $0x60] sm:$0xf] }
 0x151   : > { %v2635_v22 = vrot.slane %v2512_v63, 5  ;;  %v571_v7 = vshrl.u32 %v310_v4, 16  ;;  %v2157_v28 = vrot.slane %v2156_v47, 4  ;;  %v574_v32 = vshll.u32 %v310_v4, 16  ;;  %v3010_v35 = vld [vmem:[#allocation2 + $0x64] sm:$0xf] }
 0x152   : > { %v2152_v56 = vsel %vm4785_vm11, %v2147_v54, %v2151_v53  ;;  %v579_v14 = vshrl.u32 %v311_v26, 16  ;;  %1910 = vrot.lane.b32.xlu1 %v4474_v58, %s4561_s12  ;;  %v2692_v61 = vsel %vm4765_vm6, %v2690_v33, %v2691_v62  ;;  %v5667_v23 = vsel %vm4765_vm6, %v4265_v52, %v2632_v19  ;;  %v3011_v42 = vld [vmem:[#allocation2 + $0x68] sm:$0x1]  ;;  %v5674_v11 = vld [vmem:[#allocation2 + $0x60] sm:$0xe] }
 0x153   : > { %1717 = vrot.lane.b32.xlu0 %v4217_v20, %s4559_s10  ;;  %v2634_v49 = vrot.slane %v2632_v19, 4  ;;  %v573_v24 = vrot.slane %v571_v7, 7  ;;  %v2162_v3 = vsel %vm4785_vm11, %v2157_v28, %v2161_v43  ;;  %v4289_v44 = vcombine.low %v5656_v45, %v2692_v61  ;;  %v3860_v55 = vld [vmem:[#allocation3 + $0x10] sm:$0xff]  ;;  %v3555_v53 = vld [vmem:[#allocation2 + $0x64] sm:$0xf] }
 0x154   : > { %v581_v31 = vrot.slane %v579_v14, 7  ;;  %v582_v59 = vshll.u32 %v311_v26, 16  ;;  %v4249_v13 = vcombine.low %v2152_v56, %v2162_v3  ;;  %v3184_v25 = vshrl.u32 %v3009_v29, 16  ;;  %v3556_v9 = vld [vmem:[#allocation2 + $0x68] sm:$0x1]  ;;  %v4479_v28 = vld [vmem:[#allocation2 + $0x60] sm:$0xff]  }
 0x155   : > { %v2636_v38 = vsel %vm4765_vm6, %v2634_v49, %v2635_v22  ;;  %v576_v12 = vor.u32 %v574_v32, %v573_v24  ;;  %v577_v20 = vrot.slane %v573_v24, 4  ;;  %v3187_v5 = vshll.u32 %v3009_v29, 16  ;;  %v943_v10 = vld [vmem:[#allocation2 + $0xb4] sm:$0xf]  ;;  %v944_v6 = vld [vmem:[#allocation2 + $0xb8] sm:$0xf] }
 0x156   : > { %v4281_v15 = vcombine.low %v5667_v23, %v2636_v38  ;;  %v584_v40 = vor.u32 %v582_v59, %v581_v31  ;;  %v586_v46 = vrot.slane %v581_v31, 4  ;;  %2455 = vrot.lane.b32.xlu1 %v4257_v50, %s4565_s16  ;;  %v3193_v4 = vshll.u32 %v3010_v35, 16  ;;  %v5691_v26 = vld [vmem:[#allocation2 + $0xbc] sm:$0x1] }
 0x157   : > { %1894 = vrot.lane.b32.xlu0 %v4475_v39, %s4561_s12  ;;  %v747_v57 = vsel %vm4779_vm10, %v576_v12, %v746_v30  ;;  %v3197_v16 = vshrl.u32 %v3010_v35, 16  ;;  %v3186_v37 = vrot.slane %v3184_v25, 4  ;;  %v3203_v48 = vshll.u32 %v3011_v42, 16 }
 0x158   : > { %v585_v41 = vsel %vm4799_vm12, %v577_v20, %v584_v40  ;;  %748 = vst [vmem:[#allocation2 + $0xc0] sm:$0xf] %v747_v57  ;;  %v751_v8 = vsel %vm4823_vm13, %v586_v46, %v750_v60  ;;  %v3189_v27 = vrot.slane %v3187_v5, 5  ;;  %v3195_v34 = vrot.slane %v3193_v4, 5  ;;  %v5717_v4 = vld [vmem:[#allocation2 + $0x58] sm:$0xf] }
 0x159   : > { %749 = vst.msk [vmem:[#allocation2 + $0xc4] sm:$0xf] %vm224_vm0, %v585_v41  ;;  %752 = vst [vmem:[#allocation2 + $0xc8] sm:$0x1] %v751_v8  ;;  %v3199_v62 = vrot.slane %v3197_v16, 4  ;;  %v3891_v63 = vsel %vm3880_vm9, %v3860_v55, 0  ;;  %v3494_v58 = vpop.permute.xlu1 %3493 }
 0x15a   : > { %v3205_v51 = vrot.slane %v3203_v48, 5  ;;  %4370 = vmatpush3.bf16.xpose.msra.mxu0 %v3891_v63  ;;  %v4329_v21 = vrot.slane %v5674_v11, 9  ;;  %v3676_v2 = vrot.slane %v3555_v53, 5  ;;  %v3679_v17 = vrot.slane %v3556_v9, 5  ;;  %3531 = vst.msk [vmem:[#allocation3 + $0x58] sm:$0xff] %vm3519_vm7, %v3494_v58  ;;  %2776 = vrot.lane.b32.xlu1 %v4289_v44, %s4563_s14 }
 0x15b   : > { %2439 = vrot.lane.b32.xlu0 %v4249_v13, %s4565_s16  ;;  %v3190_v43 = vor.u32 %v3189_v27, %v3186_v37  ;;  %v3200_v52 = vor.u32 %v3199_v62, %v3195_v34  ;;  %v1310_v50 = vshrl.u32 %v943_v10, 16  ;;  %v1313_v54 = vshll.u32 %v943_v10, 16 }
 0x15c   : > { %v3678_v47 = vrot.slane %v3676_v2, 4  ;;  %v1319_v45 = vshll.u32 %v944_v6, 16  ;;  %v1323_v18 = vshrl.u32 %v944_v6, 16  ;;  %v3478_v33 = vpop.permute.xlu0 %3477  ;;  %v1329_v30 = vshll.u32 %v5691_v26, 16  ;;  %v1491_v26 = vld [vmem:[#allocation2 + $0xb4] sm:$0xe] }
 0x15d   : > { %v3191_v19 = vrot.slane %v3190_v43, 4  ;;  %v3201_v22 = vrot.slane %v3200_v52, 4  ;;  %v1312_v7 = vrot.slane %v1310_v50, 4  ;;  %v1315_v39 = vrot.slane %v1313_v54, 5  ;;  %3523 = vst.msk [vmem:[#allocation3 + $0x18] sm:$0xff] %vm3519_vm7, %v3478_v33  ;;  %v3815_v56 = vpop.permute.xlu1 %3814 }
 0x15e   : > { %v5695_v32 = vrot.slane %v1319_v45, 5  ;;  %v1325_v14 = vrot.slane %v1323_v18, 4  ;;  %3852 = vst.msk [vmem:[#allocation3 + $0x58] sm:$0xff] %vm3840_vm8, %v3815_v56  ;;  %v5705_v29 = vsel %vm4765_vm6, %v4329_v21, %v3676_v2  ;;  %v5709_v3 = vsel %vm4765_vm6, %v3678_v47, %v3679_v17  ;;  %v1492_v33 = vld [vmem:[#allocation2 + $0xb8] sm:$0xf] }
 0x15f   : > { %2760 = vrot.lane.b32.xlu0 %v4281_v15, %s4563_s14  ;;  %v3033_v61 = vld [vmem:[#allocation2 + $0xc0] sm:$0xf]  ;;  %v3196_v23 = vsel %vm4785_vm11, %v3191_v19, %v3195_v34  ;;  %v3206_v49 = vsel %vm4785_vm11, %v3201_v22, %v3205_v51  ;;  %v1316_v60 = vor.u32 %v1315_v39, %v1312_v7  ;;  %v919_v15 = vld [vmem:[#allocation2 + $0x54] sm:$0xf]  ;;  %v4345_v5 = vcombine.low %v5705_v29, %v5709_v3  ;;  %v921_v51 = vld [vmem:[#allocation2 + $0x5c] sm:$0x1] }
 0x160   : > { %v3578_v24 = vld [vmem:[#allocation2 + $0xc0] sm:$0xe]  ;;  %v3034_v31 = vld [vmem:[#allocation2 + $0xc4] sm:$0xf]  ;;  %v3376_v59 = vshrl.u32 %v3033_v61, 16  ;;  %v1326_v35 = vor.u32 %v1325_v14, %v5695_v32  ;;  %v3799_v13 = vpop.permute.xlu0 %3798  ;;  %v3379_v12 = vshll.u32 %v3033_v61, 16  ;;  %v4313_v55 = vcombine.low %v3196_v23, %v3206_v49 }
 0x161   : > { %v4478_v44 = vld [vmem:[#allocation2 + $0xc0] sm:$0xff]   ;;  %v3035_v38 = vld [vmem:[#allocation2 + $0xc8] sm:$0x1]  ;;  %v3385_v20 = vshll.u32 %v3034_v31, 16  ;;  %v3389_v42 = vshrl.u32 %v3034_v31, 16  ;;  %v4337_v11 = vrot.slane %v3578_v24, 9  ;;  %v1406_v40 = vpop.permute.xlu1 %1405 }
 0x162   : > { %3844 = vst.msk [vmem:[#allocation3 + $0x18] sm:$0xff] %vm3840_vm8, %v3799_v13  ;;  %2954 = vrot.lane.b32.xlu1 %v4478_v44, %s4562_s13  ;;  %v3378_v46 = vrot.slane %v3376_v59, 4  ;;  %v3395_v25 = vshll.u32 %v3035_v38, 16  ;;  %v3579_v53 = vld [vmem:[#allocation2 + $0xc4] sm:$0xf]  ;;  %v3381_v16 = vrot.slane %v3379_v12, 5 }
 0x163   : > { %2938 = vrot.lane.b32.xlu0 %v4479_v28, %s4562_s13  ;;  %v3580_v57 = vld [vmem:[#allocation2 + $0xc8] sm:$0x1]  ;;  %1442 = vst.msk [vmem:[#allocation3 + $0x60] sm:$0xff] %vm1429_vm15, %v1406_v40  ;;  %v3387_v9 = vrot.slane %v3385_v20, 5  ;;  %v3391_v41 = vrot.slane %v3389_v42, 4  ;;  %v3732_v8 = vrot.slane %v3579_v53, 5 }
 0x164   : > { %v3397_v37 = vrot.slane %v3395_v25, 5  ;;  %v3735_v48 = vrot.slane %v3580_v57, 5  ;;  %v1317_v10 = vrot.slane %v1316_v60, 4  ;;  %v1327_v27 = vrot.slane %v1326_v35, 4  ;;  %v1390_v34 = vpop.permute.xlu0 %1389  ;;  %v4490_v19 = vld [vmem:[#allocation2 + $0xb4] sm:$0xff]  }
 0x165   : > { %v3382_v62 = vor.u32 %v3381_v16, %v3378_v46  ;;  %v3392_v63 = vor.u32 %v3391_v41, %v3387_v9  ;;  %v5722_v6 = vsel %vm4765_vm6, %v4337_v11, %v3732_v8  ;;  %v3734_v58 = vrot.slane %v3732_v8, 4  ;;  %1434 = vst.msk [vmem:[#allocation3 + $0x20] sm:$0xff] %vm1429_vm15, %v1390_v34  ;;  %v1730_v21 = vpop.permute.xlu1 %1729  ;;  %v3869_v50 = vld [vmem:[#allocation3 + $0x58] sm:$0xff]  ;;  %v1493_v28 = vld [vmem:[#allocation2 + $0xbc] sm:$0x1] }
 0x166   : > { %v1322_v2 = vsel %vm4785_vm11, %v1317_v10, %v5695_v32  ;;  %v1331_v17 = vrot.slane %v1329_v30, 5  ;;  %v1118_v43 = vshrl.u32 %v919_v15, 16  ;;  %v1121_v52 = vshll.u32 %v919_v15, 16  ;;  %1766 = vst.msk [vmem:[#allocation3 + $0x60] sm:$0xff] %vm1753_vm1, %v1730_v21  ;;  %4386 = vmatprep.subr.msk.bf16.mxu0 %vm3880_vm9, %v3869_v50  ;;  %v1467_v32 = vld [vmem:[#allocation2 + $0x54] sm:$0xe] }
 0x167   : > { %3483 = vrot.lane.b32.xlu0 %v4313_v55, %s4566_s17  ;;  %v3383_v54 = vrot.slane %v3382_v62, 4  ;;  %v3393_v47 = vrot.slane %v3392_v63, 4  ;;  %v3736_v45 = vsel %vm4765_vm6, %v3734_v58, %v3735_v48  ;;  %v1127_v18 = vshll.u32 %v5717_v4, 16  ;;  %v1468_v24 = vld [vmem:[#allocation2 + $0x58] sm:$0xf]  ;;  %897 = vst.msk [vmem:[#allocation3 + $0x78] sm:$0xff] %vm881_vm14, %v4490_v19 }
 0x168   : > { %v4353_v22 = vcombine.low %v5722_v6, %v3736_v45  ;;  %v1332_v7 = vsel %vm4785_vm11, %v1327_v27, %v1331_v17  ;;  %v1120_v39 = vrot.slane %v1118_v43, 4  ;;  %v1123_v56 = vrot.slane %v1121_v52, 5  ;;  %v1714_v14 = vpop.permute.xlu0 %1713  ;;  %v4491_v3 = vld [vmem:[#allocation2 + $0x54] sm:$0xff]   ;;  %v1469_v35 = vld [vmem:[#allocation2 + $0x5c] sm:$0x1] }
 0x169   : > { %v3388_v30 = vsel %vm4785_vm11, %v3383_v54, %v3387_v9  ;;  %v3398_v61 = vsel %vm4785_vm11, %v3393_v47, %v3397_v37  ;;  %v5741_v23 = vcombine.low %v1322_v2, %v1332_v7  ;;  %v5743_v49 = vrot.slane %v1127_v18, 5  ;;  %1758 = vst.msk [vmem:[#allocation3 + $0x20] sm:$0xff] %vm1753_vm1, %v1714_v14  ;;  %v1907_v29 = vpop.permute.xlu1 %1906  ;;  %v1992_v13 = vld [vmem:[#allocation2 + $0xc0] sm:$0xf]  ;;  %v1993_v25 = vld [vmem:[#allocation2 + $0xc4] sm:$0xf] }
 0x16a   : > { %v4321_v44 = vcombine.low %v3388_v30, %v3398_v61  ;;  %v1124_v31 = vor.u32 %v1123_v56, %v1120_v39  ;;  %v1131_v59 = vshrl.u32 %v5717_v4, 16  ;;  %v1137_v60 = vshll.u32 %v921_v51, 16  ;;  %1943 = vst.msk [vmem:[#allocation3 + $0x60] sm:$0xff] %vm1930_vm2, %v1907_v29  ;;  %v1994_v48 = vld [vmem:[#allocation2 + $0xc8] sm:$0x1] }
 0x16b   : > { %3804 = vrot.lane.b32.xlu0 %v4345_v5, %s4564_s15  ;;  %v4210_v38 = vrot.slane %v1491_v26, 9  ;;  %v1652_v12 = vrot.slane %v1492_v33, 5  ;;  %v1655_v20 = vrot.slane %v1493_v28, 5  ;;  %v4202_v42 = vrot.slane %v1467_v32, 9  ;;  %889 = vst.msk [vmem:[#allocation3 + $0x38] sm:$0xff] %vm881_vm14, %v4491_v3 }
 0x16c   : > { %3499 = vrot.lane.b32.xlu1 %v4321_v44, %s4566_s17  ;;  %v1125_v11 = vrot.slane %v1124_v31, 4  ;;  %v1133_v15 = vrot.slane %v1131_v59, 4  ;;  %v1139_v40 = vrot.slane %v1137_v60, 5  ;;  %v1596_v46 = vrot.slane %v1468_v24, 5  ;;  %v1891_v55 = vpop.permute.xlu0 %1890  ;;  %v1968_v63 = vld [vmem:[#allocation2 + $0x60] sm:$0xf] }
 0x16d   : > { %v5754_v53 = vsel %vm4765_vm6, %v4210_v38, %v1652_v12  ;;  %v1654_v57 = vrot.slane %v1652_v12, 4  ;;  %v1599_v5 = vrot.slane %v1469_v35, 5  ;;  %v2356_v4 = vshrl.u32 %v1992_v13, 16  ;;  %1935 = vst.msk [vmem:[#allocation3 + $0x20] sm:$0xff] %vm1930_vm2, %v1891_v55  ;;  %v2452_v16 = vpop.permute.xlu1 %2451  ;;  %v1969_v2 = vld [vmem:[#allocation2 + $0x64] sm:$0xf] }
 0x16e   : > { %v1130_v9 = vsel %vm4785_vm11, %v1125_v11, %v5743_v49  ;;  %v1134_v41 = vor.u32 %v1133_v15, %v5743_v49  ;;  %v5763_v8 = vsel %vm4765_vm6, %v4202_v42, %v1596_v46  ;;  %v1598_v37 = vrot.slane %v1596_v46, 4  ;;  %2488 = vst.msk [vmem:[#allocation3 + $0x60] sm:$0xff] %vm2475_vm3, %v2452_v16  ;;  %v1970_v54 = vld [vmem:[#allocation2 + $0x68] sm:$0x1]  ;;  %v2538_v32 = vld [vmem:[#allocation2 + $0xc4] sm:$0xf] }
 0x16f   : > { %v1656_v10 = vsel %vm4765_vm6, %v1654_v57, %v1655_v20  ;;  %v2358_v27 = vrot.slane %v2356_v4, 4  ;;  %v2359_v34 = vshll.u32 %v1992_v13, 16  ;;  %v2365_v62 = vshll.u32 %v1993_v25, 16  ;;  %v2513_v14 = vld [vmem:[#allocation2 + $0x60] sm:$0xe] }
 0x170   : > { %3820 = vrot.lane.b32.xlu1 %v4353_v22, %s4564_s15  ;;  %v1135_v6 = vrot.slane %v1134_v41, 4  ;;  %v4226_v58 = vcombine.low %v5754_v53, %v1656_v10  ;;  %v1600_v51 = vsel %vm4765_vm6, %v1598_v37, %v1599_v5  ;;  %v2369_v21 = vshrl.u32 %v1993_v25, 16  ;;  %v2436_v17 = vpop.permute.xlu0 %2435  ;;  %v2537_v22 = vld [vmem:[#allocation2 + $0xc0] sm:$0xe]  ;;  %v2539_v29 = vld [vmem:[#allocation2 + $0xc8] sm:$0x1] }
 0x171   : > { %v4218_v43 = vcombine.low %v5763_v8, %v1600_v51  ;;  %v2361_v52 = vrot.slane %v2359_v34, 5  ;;  %v2367_v26 = vrot.slane %v2365_v62, 5  ;;  %v2375_v50 = vshll.u32 %v1994_v48, 16  ;;  %2480 = vst.msk [vmem:[#allocation3 + $0x20] sm:$0xff] %vm2475_vm3, %v2436_v17  ;;  %v2773_v47 = vpop.permute.xlu1 %2772  ;;  %v2514_v35 = vld [vmem:[#allocation2 + $0x64] sm:$0xf] }
 0x172   : > { %v1140_v45 = vsel %vm4785_vm11, %v1135_v6, %v1139_v40  ;;  %v2371_v18 = vrot.slane %v2369_v21, 4  ;;  %v2164_v33 = vshrl.u32 %v1968_v63, 16  ;;  %v2167_v19 = vshll.u32 %v1968_v63, 16  ;;  %2809 = vst.msk [vmem:[#allocation3 + $0x60] sm:$0xff] %vm2796_vm4, %v2773_v47  ;;  %v3036_v46 = vld [vmem:[#allocation2 + $0xcc] sm:$0xf] }
 0x173   : > { %v4186_v7 = vcombine.low %v1130_v9, %v1140_v45  ;;  %v2362_v39 = vor.u32 %v2361_v52, %v2358_v27  ;;  %v2377_v56 = vrot.slane %v2375_v50, 5  ;;  %v2173_v28 = vshll.u32 %v1969_v2, 16  ;;  %v4480_v25 = vld [vmem:[#allocation2 + $0xc0] sm:$0xff]   ;;  %v3037_v4 = vld [vmem:[#allocation2 + $0xd0] sm:$0xf] }
 0x174   : > { %1411 = vrot.lane.b32.xlu1 %v5741_v23, %s4560_s11  ;;  %v2372_v30 = vor.u32 %v2371_v18, %v2367_v26  ;;  %v2166_v61 = vrot.slane %v2164_v33, 4  ;;  %v2169_v49 = vrot.slane %v2167_v19, 5  ;;  %v2177_v24 = vshrl.u32 %v1969_v2, 16  ;;  %v2757_v3 = vpop.permute.xlu0 %2756  ;;  %v2515_v23 = vld [vmem:[#allocation2 + $0x68] sm:$0x1]  ;;  %v4481_v16 = vld [vmem:[#allocation2 + $0x60] sm:$0xff]  }
 0x175   : > { %1395 = vrot.lane.b32.xlu0 %v4186_v7, %s4560_s11  ;;  %v2363_v44 = vrot.slane %v2362_v39, 4  ;;  %v2175_v31 = vrot.slane %v2173_v28, 5  ;;  %v2183_v59 = vshll.u32 %v1970_v54, 16  ;;  %v4274_v60 = vrot.slane %v2537_v22, 9  ;;  %2801 = vst.msk [vmem:[#allocation3 + $0x20] sm:$0xff] %vm2796_vm4, %v2757_v3 }
 0x176   : > { %v2373_v13 = vrot.slane %v2372_v30, 4  ;;  %v2170_v38 = vor.u32 %v2169_v49, %v2166_v61  ;;  %v2179_v12 = vrot.slane %v2177_v24, 4  ;;  %v2695_v20 = vrot.slane %v2538_v32, 5  ;;  %v3012_v21 = vld [vmem:[#allocation2 + $0x6c] sm:$0xf]  ;;  %v3861_v61 = vld [vmem:[#allocation3 + $0x18] sm:$0xff] }
 0x177   : > { %v2368_v42 = vsel %vm4785_vm11, %v2363_v44, %v2367_v26  ;;  %v2185_v11 = vrot.slane %v2183_v59, 5  ;;  %v2698_v15 = vrot.slane %v2539_v29, 5  ;;  %v4266_v40 = vrot.slane %v2513_v14, 9  ;;  %v3013_v50 = vld [vmem:[#allocation2 + $0x70] sm:$0xf] }
 0x178   : > { %1735 = vrot.lane.b32.xlu1 %v4226_v58, %s4559_s10  ;;  %v2378_v55 = vsel %vm4785_vm11, %v2373_v13, %v2377_v56  ;;  %v2171_v53 = vrot.slane %v2170_v38, 4  ;;  %v2180_v57 = vor.u32 %v2179_v12, %v2175_v31  ;;  %v5788_v5 = vsel %vm4765_vm6, %v4274_v60, %v2695_v20  ;;  %v3038_v58 = vld [vmem:[#allocation2 + $0xd4] sm:$0x1]  ;;  %v3581_v49 = vld [vmem:[#allocation2 + $0xcc] sm:$0xe] }
 0x179   : > { %1719 = vrot.lane.b32.xlu0 %v4218_v43, %s4559_s10  ;;  %v4258_v9 = vcombine.low %v2368_v42, %v2378_v55  ;;  %v2697_v41 = vrot.slane %v2695_v20, 4  ;;  %v2639_v8 = vrot.slane %v2514_v35, 5  ;;  %v2642_v37 = vrot.slane %v2515_v23, 5  ;;  %v3014_v33 = vld [vmem:[#allocation2 + $0x74] sm:$0x1]  ;;  %v4484_v55 = vld [vmem:[#allocation2 + $0xcc] sm:$0xff]  }
 0x17a   : > { %v2176_v48 = vsel %vm4785_vm11, %v2171_v53, %v2175_v31  ;;  %v2181_v10 = vrot.slane %v2180_v57, 4  ;;  %v3400_v27 = vshrl.u32 %v3036_v46, 16  ;;  %v3403_v34 = vshll.u32 %v3036_v46, 16  ;;  %v2951_v2 = vpop.permute.xlu1 %2950  ;;  %v3582_v31 = vld [vmem:[#allocation2 + $0xd0] sm:$0xf]  ;;  %s4567_s10 = smov [#allocation4]  }
 0x17b   : > { %v2699_v62 = vsel %vm4765_vm6, %v2697_v41, %v2698_v15  ;;  %v2640_v63 = vsel %vm4765_vm6, %v4266_v40, %v2639_v8  ;;  %v2641_v6 = vrot.slane %v2639_v8, 4  ;;  %v3409_v51 = vshll.u32 %v3037_v4, 16  ;;  %2987 = vst.msk [vmem:[#allocation3 + $0x60] sm:$0xff] %vm2974_vm5, %v2951_v2  ;;  %v3558_v38 = vld [vmem:[#allocation2 + $0x70] sm:$0xf]  ;;  %s4498_s11 = sshll.u32 %s4567_s10, 4  ;;  %s4499_s11 = int_to_ptr.vmem [resolvable:$false] %s4498_s11 }
 0x17c   : > { %1912 = vrot.lane.b32.xlu1 %v4480_v25, %s4561_s12  ;;  %v2186_v17 = vsel %vm4785_vm11, %v2181_v10, %v2185_v11  ;;  %v4290_v43 = vcombine.low %v5788_v5, %v2699_v62  ;;  %v3402_v52 = vrot.slane %v3400_v27, 4  ;;  %v3405_v26 = vrot.slane %v3403_v34, 5  ;;  %v3583_v23 = vld [vmem:[#allocation2 + $0xd4] sm:$0x1]  ;;  %v3557_v46 = vld [vmem:[#allocation2 + $0x6c] sm:$0xe] }
 0x17d   : > { %1896 = vrot.lane.b32.xlu0 %v4481_v16, %s4561_s12  ;;  %v4250_v54 = vcombine.low %v2176_v48, %v2186_v17  ;;  %v2643_v47 = vsel %vm4765_vm6, %v2641_v6, %v2642_v37  ;;  %v3411_v45 = vrot.slane %v3409_v51, 5  ;;  %v3413_v18 = vshrl.u32 %v3037_v4, 16  ;;  %v2935_v56 = vpop.permute.xlu0 %2934  ;;  %v3559_v25 = vld [vmem:[#allocation2 + $0x74] sm:$0x1]  ;;  %v4485_v4 = vld [vmem:[#allocation2 + $0x6c] sm:$0xff]   ;;  %s4500_s12 = scalar_lea.vmem %s4499_s11, 1536 }
 0x17e   : > { %v4282_v19 = vcombine.low %v2640_v63, %v2643_v47  ;;  %v3406_v22 = vor.u32 %v3405_v26, %v3402_v52  ;;  %v3419_v7 = vshll.u32 %v3038_v58, 16  ;;  %v3208_v39 = vshrl.u32 %v3012_v21, 16  ;;  %2979 = vst.msk [vmem:[#allocation3 + $0x20] sm:$0xff] %vm2974_vm5, %v2935_v56 }
 0x17f   : > { %v3415_v28 = vrot.slane %v3413_v18, 4  ;;  %v3211_v32 = vshll.u32 %v3012_v21, 16  ;;  %v3217_v14 = vshll.u32 %v3013_v50, 16  ;;  %v3221_v30 = vshrl.u32 %v3013_v50, 16  ;;  %v5837_v50 = vld [vmem:[%s5977_s1] sm:$0xf] }
 0x180   : > { %2457 = vrot.lane.b32.xlu1 %v4258_v9, %s4565_s16  ;;  %v3407_v24 = vrot.slane %v3406_v22, 4  ;;  %v3421_v29 = vrot.slane %v3419_v7, 5  ;;  %v3210_v3 = vrot.slane %v3208_v39, 4  ;;  %v3227_v44 = vshll.u32 %v3014_v33, 16  ;;  %4381 = vmatprep.mubr.msk.bf16.mxu0 %vm3880_vm9, %v5837_v50  ;;  %v3874_v33 = vld [vmem:[%s5978_s2] sm:$0xff]  ;;  %v3986_v22 = vld [vmem:[%s5980_s4 + $0x10] sm:$0xff] }
 0x181   : > { %2441 = vrot.lane.b32.xlu0 %v4250_v54, %s4565_s16  ;;  %v3416_v59 = vor.u32 %v3415_v28, %v3411_v45  ;;  %v3213_v60 = vrot.slane %v3211_v32, 5  ;;  %v3219_v35 = vrot.slane %v3217_v14, 5  ;;  %v3223_v13 = vrot.slane %v3221_v30, 4 }
 0x182   : > { %v3229_v12 = vrot.slane %v3227_v44, 5  ;;  %v3894_v20 = vsel %vm3880_vm9, %v3861_v61, 0  ;;  %v3739_v40 = vrot.slane %v3582_v31, 5  ;;  %v3412_v53 = vsel %vm4785_vm11, %v3407_v24, %v3411_v45 }
 0x183   : > { %v3417_v42 = vrot.slane %v3416_v59, 4  ;;  %v3214_v11 = vor.u32 %v3213_v60, %v3210_v3  ;;  %v3224_v15 = vor.u32 %v3223_v13, %v3219_v35  ;;  %4372 = vmatpush3.bf16.xpose.msra.mxu0 %v3894_v20  ;;  %v4338_v57 = vrot.slane %v3581_v49, 9 }
 0x184   : > { %2778 = vrot.lane.b32.xlu1 %v4290_v43, %s4563_s14  ;;  %v3683_v5 = vrot.slane %v3558_v38, 5  ;;  %v3742_v8 = vrot.slane %v3583_v23, 5  ;;  %v3741_v37 = vrot.slane %v3739_v40, 4  ;;  %v4330_v48 = vrot.slane %v3557_v46, 9 }
 0x185   : > { %2762 = vrot.lane.b32.xlu0 %v4282_v19, %s4563_s14  ;;  %v3422_v16 = vsel %vm4785_vm11, %v3417_v42, %v3421_v29  ;;  %v3215_v9 = vrot.slane %v3214_v11, 4  ;;  %v3225_v41 = vrot.slane %v3224_v15, 4  ;;  %v3686_v27 = vrot.slane %v3559_v25, 5 }
 0x186   : > { %v3685_v10 = vrot.slane %v3683_v5, 4  ;;  %v3496_v34 = vpop.permute.xlu1 %3495  ;;  %v4322_v6 = vcombine.low %v3412_v53, %v3422_v16  ;;  %v3740_v51 = vsel %vm4765_vm6, %v4338_v57, %v3739_v40  ;;  %v3743_v21 = vsel %vm4765_vm6, %v3741_v37, %v3742_v8 }
 0x187   : > { %v3220_v62 = vsel %vm4785_vm11, %v3215_v9, %v3219_v35  ;;  %v3230_v63 = vsel %vm4785_vm11, %v3225_v41, %v3229_v12  ;;  %3532 = vst.msk [vmem:[#allocation3 + $0x60] sm:$0xff] %vm3519_vm7, %v3496_v34  ;;  %v3684_v2 = vsel %vm4765_vm6, %v4330_v48, %v3683_v5  ;;  %v4354_v52 = vcombine.low %v3740_v51, %v3743_v21 }
 0x188   : > { %2956 = vrot.lane.b32.xlu1 %v4484_v55, %s4562_s13  ;;  %v4314_v58 = vcombine.low %v3220_v62, %v3230_v63  ;;  %v3687_v36 = vsel %vm4765_vm6, %v3685_v10, %v3686_v27  ;;  %vm4017_vm10 = vcmask 1043456   ;;  %vm4010_vm11 = vcmask 64512  }
 0x189   : > { %2940 = vrot.lane.b32.xlu0 %v4485_v4, %s4562_s13  ;;  %v4346_v26 = vcombine.low %v3684_v2, %v3687_v36 }
 0x18a   : > { %v3817_v17 = vpop.permute.xlu1 %3816  ;;  %v3480_v43 = vpop.permute.xlu0 %3479 }
 0x18b   : > { %3853 = vst.msk [vmem:[#allocation3 + $0x60] sm:$0xff] %vm3840_vm8, %v3817_v17 }
 0x18c   : > { %3501 = vrot.lane.b32.xlu1 %v4322_v6, %s4566_s17  ;;  %3524 = vst.msk [vmem:[#allocation3 + $0x20] sm:$0xff] %vm3519_vm7, %v3480_v43 }
 0x18d   : > { %3485 = vrot.lane.b32.xlu0 %v4314_v58, %s4566_s17  ;;  %s215_s17 = sand.u32 1, %s4548_s19  }
 0x18e   : > { %v1408_v54 = vpop.permute.xlu1 %1407  ;;  %v3801_v1 = vpop.permute.xlu0 %3800  ;;  %s4391_s23 = smul.u32 48, %s215_s17  ;;  %s5934_s22 = scalar_lea.sflag [#allocation5], %s215_s17 }
 0x18f   : > { %1443 = vst.msk [vmem:[#allocation3 + $0x68] sm:$0xff] %vm1429_vm15, %v1408_v54 }
 0x190   : > { %3822 = vrot.lane.b32.xlu1 %v4354_v52, %s4564_s15  ;;  %3845 = vst.msk [vmem:[#allocation3 + $0x20] sm:$0xff] %vm3840_vm8, %v3801_v1  ;;  %v3984_v1 = vld [vmem:[%s5980_s4] sm:$0xff]  ;;  %s217_s25 = scalar_lea.vmem [#allocation4], %s4391_s23 }
 0x191   : > { %3806 = vrot.lane.b32.xlu0 %v4346_v26, %s4564_s15  ;;  %s4095_s26 = sshll.u32 %s217_s25, 4  ;;  %s5925_s26 = int_to_ptr.vmem [resolvable:$true] %s4095_s26 }
 0x192   : > { %v1732_v47 = vpop.permute.xlu1 %1731  ;;  %v3870_v45 = vld [vmem:[#allocation3 + $0x60] sm:$0xff]  ;;  %v1392_v18 = vpop.permute.xlu0 %1391  ;;  %s4494_s9 = scalar_lea.vmem %s5925_s26, 768  ;;  %p4501_p0 = scmp.lt.s32.totalorder %s5925_s26, %s4499_s11 }
 0x193   : > { %1767 = vst.msk [vmem:[#allocation3 + $0x68] sm:$0xff] %vm1753_vm1, %v1732_v47  ;;  %4387 = vmatprep.subr.msk.bf16.mxu0 %vm3880_vm9, %v3870_v45  ;;  %v3985_v47 = vld [vmem:[%s5980_s4 + $0x8] sm:$0xff]  ;;  %p4495_p11 = scmp.ne.s32.totalorder %s5925_s26, %s4494_s9  ;;  %p4502_p1 = scmp.lt.s32.totalorder %s4500_s12, %s4494_s9 }
 0x194   : > { %1435 = vst.msk [vmem:[#allocation3 + $0x28] sm:$0xff] %vm1429_vm15, %v1392_v18  ;;  %3989 = vperm.xlu1 %4443, %v3984_v1  }
 0x195   : > { %3877 = vperm.xlu0 %4442, %v3874_v33   ;;  %p4496_p12 = pnand %p4495_p11, %p4637_p5  ;;  %p4503_p2 = por %p4502_p1, %p4501_p0 }
 0x196   : > { %v1909_v19 = vpop.permute.xlu1 %1908  ;;  %v1716_v7 = vpop.permute.xlu0 %1715 }
 0x197   : > { %v3862_v39 = vld [vmem:[#allocation3 + $0x20] sm:$0xff]  ;;  %1944 = vst.msk [vmem:[#allocation3 + $0x68] sm:$0xff] %vm1930_vm2, %v1909_v19  ;;  %p4497_p13 = pneg %p4496_p12 }
 0x198   : > { %1759 = vst.msk [vmem:[#allocation3 + $0x28] sm:$0xff] %vm1753_vm1, %v1716_v7  ;;  %v3897_v56 = vsel %vm3880_vm9, %v3862_v39, 0  ;;  %3994 = vperm.xlu1 %4443, %v3985_v47  }
 0x199   : > { %4374 = vmatpush3.bf16.xpose.msra.mxu0 %v3897_v56  ;;  %3999 = vperm.xlu0 %4442, %v3986_v22   ;;  %p4504_p3 = pnand %p4503_p2, %p4497_p13 }
 0x19a   : > { %v2454_v28 = vpop.permute.xlu1 %2453  ;;  %v1893_v32 = vpop.permute.xlu0 %1892 }
 0x19b   : > { %2489 = vst.msk [vmem:[#allocation3 + $0x68] sm:$0xff] %vm2475_vm3, %v2454_v28 }
 0x19c   : > { %1936 = vst.msk [vmem:[#allocation3 + $0x28] sm:$0xff] %vm1930_vm2, %v1893_v32 }
 0x19e   : > { %v2775_v14 = vpop.permute.xlu1 %2774  ;;  %v2438_v30 = vpop.permute.xlu0 %2437 }
 0x19f   : > { %2810 = vst.msk [vmem:[#allocation3 + $0x68] sm:$0xff] %vm2796_vm4, %v2775_v14 }
 0x1a0   : > { %2481 = vst.msk [vmem:[#allocation3 + $0x28] sm:$0xff] %vm2475_vm3, %v2438_v30 }
 0x1a2   : > { %v2759_v61 = vpop.permute.xlu0 %2758 }
 0x1a3   : > { %2802 = vst.msk [vmem:[#allocation3 + $0x28] sm:$0xff] %vm2796_vm4, %v2759_v61 }
 0x1a8   : > { %v2953_v49 = vpop.permute.xlu1 %2952 }
 0x1a9   : > { %2988 = vst.msk [vmem:[#allocation3 + $0x68] sm:$0xff] %vm2974_vm5, %v2953_v49  ;;  %v4492_v49 = vld [vmem:[%s5979_s3] sm:$0xff]  }
 0x1ad   : > { %v2937_v24 = vpop.permute.xlu0 %2936 }
 0x1ae   : > { %2980 = vst.msk [vmem:[#allocation3 + $0x28] sm:$0xff] %vm2974_vm5, %v2937_v24  ;;  %v4493_v24 = vld [vmem:[%s5979_s3 + $0x8] ss:$0 sps:$4 sm:$0xff]  }
 0x1b4   : > { %v3498_v29 = vpop.permute.xlu1 %3497 }
 0x1b5   : > { %3533 = vst.msk [vmem:[#allocation3 + $0x68] sm:$0xff] %vm3519_vm7, %v3498_v29 }
 0x1b8   : > { %v3819_v44 = vpop.permute.xlu1 %3818 }
 0x1b9   : > { %v3482_v3 = vpop.permute.xlu0 %3481  ;;  %3854 = vst.msk [vmem:[#allocation3 + $0x68] sm:$0xff] %vm3840_vm8, %v3819_v44 }
 0x1ba   : > { %3525 = vst.msk [vmem:[#allocation3 + $0x28] sm:$0xff] %vm3519_vm7, %v3482_v3 }
 0x1bc   : > { %v1410_v59 = vpop.permute.xlu1 %1409 }
 0x1bd   : > { %v3803_v31 = vpop.permute.xlu0 %3802  ;;  %1444 = vst.msk [vmem:[#allocation3 + $0x70] sm:$0xff] %vm1429_vm15, %v1410_v59 }
 0x1be   : > { %3846 = vst.msk [vmem:[#allocation3 + $0x28] sm:$0xff] %vm3840_vm8, %v3803_v31 }
 0x1c0   : > { %v1734_v35 = vpop.permute.xlu1 %1733  ;;  %v3871_v13 = vld [vmem:[#allocation3 + $0x68] sm:$0xff] }
 0x1c1   : > { %v1394_v60 = vpop.permute.xlu0 %1393  ;;  %1768 = vst.msk [vmem:[#allocation3 + $0x70] sm:$0xff] %vm1753_vm1, %v1734_v35  ;;  %4388 = vmatprep.subr.msk.bf16.mxu0 %vm3880_vm9, %v3871_v13 }
 0x1c2   : > { %1436 = vst.msk [vmem:[#allocation3 + $0x30] sm:$0xff] %vm1429_vm15, %v1394_v60 }
 0x1c4   : > { %v1911_v23 = vpop.permute.xlu1 %1910 }
 0x1c5   : > { %v1718_v38 = vpop.permute.xlu0 %1717  ;;  %v3863_v12 = vld [vmem:[#allocation3 + $0x28] sm:$0xff]  ;;  %1945 = vst.msk [vmem:[#allocation3 + $0x70] sm:$0xff] %vm1930_vm2, %v1911_v23 }
 0x1c6   : > { %1760 = vst.msk [vmem:[#allocation3 + $0x30] sm:$0xff] %vm1753_vm1, %v1718_v38  ;;  %v3900_v20 = vsel %vm3880_vm9, %v3863_v12, 0 }
 0x1c7   : > { %4376 = vmatpush3.bf16.xpose.msra.mxu0 %v3900_v20 }
 0x1c8   : > { %v2456_v11 = vpop.permute.xlu1 %2455 }
 0x1c9   : > { %v1895_v42 = vpop.permute.xlu0 %1894  ;;  %2490 = vst.msk [vmem:[#allocation3 + $0x70] sm:$0xff] %vm2475_vm3, %v2456_v11 }
 0x1ca   : > { %1937 = vst.msk [vmem:[#allocation3 + $0x30] sm:$0xff] %vm1930_vm2, %v1895_v42 }
 0x1cc   : > { %v2777_v40 = vpop.permute.xlu1 %2776 }
 0x1cd   : > { %v2440_v15 = vpop.permute.xlu0 %2439  ;;  %2811 = vst.msk [vmem:[#allocation3 + $0x70] sm:$0xff] %vm2796_vm4, %v2777_v40 }
 0x1ce   : > { %2482 = vst.msk [vmem:[#allocation3 + $0x30] sm:$0xff] %vm2475_vm3, %v2440_v15 }
 0x1d1   : > { %v2761_v46 = vpop.permute.xlu0 %2760 }
 0x1d2   : > { %2803 = vst.msk [vmem:[#allocation3 + $0x30] sm:$0xff] %vm2796_vm4, %v2761_v46 }
 0x1d4   : > { %v2955_v25 = vpop.permute.xlu1 %2954 }
 0x1d5   : > { %v2939_v55 = vpop.permute.xlu0 %2938  ;;  %2989 = vst.msk [vmem:[#allocation3 + $0x70] sm:$0xff] %vm2974_vm5, %v2955_v25 }
 0x1d6   : > { %2981 = vst.msk [vmem:[#allocation3 + $0x30] sm:$0xff] %vm2974_vm5, %v2939_v55 }
 0x1d9   : > { %v3484_v53 = vpop.permute.xlu0 %3483 }
 0x1da   : > { %3526 = vst.msk [vmem:[#allocation3 + $0x30] sm:$0xff] %vm3519_vm7, %v3484_v53 }
 0x1dd   : > { %v3805_v57 = vpop.permute.xlu0 %3804 }
 0x1de   : > { %3847 = vst.msk [vmem:[#allocation3 + $0x30] sm:$0xff] %vm3840_vm8, %v3805_v57  ;;  %v3500_v5 = vpop.permute.xlu1 %3499 }
 0x1df   : > { %3534 = vst.msk [vmem:[#allocation3 + $0x70] sm:$0xff] %vm3519_vm7, %v3500_v5 }
 0x1e2   : > { %v3821_v4 = vpop.permute.xlu1 %3820 }
 0x1e3   : > { %3855 = vst.msk [vmem:[#allocation3 + $0x70] sm:$0xff] %vm3840_vm8, %v3821_v4 }
 0x1e5   : > { %v3864_v9 = vld [vmem:[#allocation3 + $0x30] sm:$0xff] }
 0x1e6   : > { %v1412_v16 = vpop.permute.xlu1 %1411  ;;  %v3903_v8 = vsel %vm3880_vm9, %v3864_v9, 0 }
 0x1e7   : > { %1445 = vst.msk [vmem:[#allocation3 + $0x78] sm:$0xff] %vm1429_vm15, %v1412_v16  ;;  %v1396_v41 = vpop.permute.xlu0 %1395 }
 0x1e8   : > { %1437 = vst.msk [vmem:[#allocation3 + $0x38] sm:$0xff] %vm1429_vm15, %v1396_v41 }
 0x1ea   : > { %v1736_v37 = vpop.permute.xlu1 %1735  ;;  %v3872_v48 = vld [vmem:[#allocation3 + $0x70] sm:$0xff] }
 0x1eb   : > { %1769 = vst.msk [vmem:[#allocation3 + $0x78] sm:$0xff] %vm1753_vm1, %v1736_v37  ;;  %v1720_v10 = vpop.permute.xlu0 %1719  ;;  %4389 = vmatprep.subr.msk.bf16.mxu0 %vm3880_vm9, %v3872_v48 }
 0x1ec   : > { %1761 = vst.msk [vmem:[#allocation3 + $0x38] sm:$0xff] %vm1753_vm1, %v1720_v10  ;;  %4378 = vmatpush3.bf16.xpose.msra.mxu0 %v3903_v8 }
 0x1ee   : > { %v1913_v27 = vpop.permute.xlu1 %1912 }
 0x1ef   : > { %1946 = vst.msk [vmem:[#allocation3 + $0x78] sm:$0xff] %vm1930_vm2, %v1913_v27  ;;  %v1897_v34 = vpop.permute.xlu0 %1896 }
 0x1f0   : > { %1938 = vst.msk [vmem:[#allocation3 + $0x38] sm:$0xff] %vm1930_vm2, %v1897_v34 }
 0x1f2   : > { %v2458_v62 = vpop.permute.xlu1 %2457 }
 0x1f3   : > { %2491 = vst.msk [vmem:[#allocation3 + $0x78] sm:$0xff] %vm2475_vm3, %v2458_v62  ;;  %v2442_v63 = vpop.permute.xlu0 %2441 }
 0x1f4   : > { %2483 = vst.msk [vmem:[#allocation3 + $0x38] sm:$0xff] %vm2475_vm3, %v2442_v63 }
 0x1f6   : > { %v2779_v6 = vpop.permute.xlu1 %2778 }
 0x1f7   : > { %2812 = vst.msk [vmem:[#allocation3 + $0x78] sm:$0xff] %vm2796_vm4, %v2779_v6  ;;  %v2763_v58 = vpop.permute.xlu0 %2762 }
 0x1f8   : > { %2804 = vst.msk [vmem:[#allocation3 + $0x38] sm:$0xff] %vm2796_vm4, %v2763_v58 }
 0x1fa   : > { %v2957_v51 = vpop.permute.xlu1 %2956 }
 0x1fb   : > { %2990 = vst.msk [vmem:[#allocation3 + $0x78] sm:$0xff] %vm2974_vm5, %v2957_v51  ;;  %v2941_v21 = vpop.permute.xlu0 %2940 }
 0x1fc   : > { %2982 = vst.msk [vmem:[#allocation3 + $0x38] sm:$0xff] %vm2974_vm5, %v2941_v21 }
 0x1fe   : > { %v3502_v2 = vpop.permute.xlu1 %3501 }
 0x1ff   : > { %3535 = vst.msk [vmem:[#allocation3 + $0x78] sm:$0xff] %vm3519_vm7, %v3502_v2  ;;  %v3486_v36 = vpop.permute.xlu0 %3485 }
 0x200   : > { %3527 = vst.msk [vmem:[#allocation3 + $0x38] sm:$0xff] %vm3519_vm7, %v3486_v36 }
 0x202   : > { %v3823_v17 = vpop.permute.xlu1 %3822 }
 0x203   : > { %3856 = vst.msk [vmem:[#allocation3 + $0x78] sm:$0xff] %vm3840_vm8, %v3823_v17  ;;  %v3807_v43 = vpop.permute.xlu0 %3806 }
 0x204   : > { %3848 = vst.msk [vmem:[#allocation3 + $0x38] sm:$0xff] %vm3840_vm8, %v3807_v43 }
 0x20a   : > { %v3873_v52 = vld [vmem:[#allocation3 + $0x78] sm:$0xff] }
 0x20b   : > { %4390 = vmatprep.subr.msk.bf16.mxu0 %vm3880_vm9, %v3873_v52  ;;  %v3865_v26 = vld [vmem:[#allocation3 + $0x38] sm:$0xff] }
 0x20c   : > { %v3906_v54 = vsel %vm3880_vm9, %v3865_v26, 0 }
 0x20d   : > { %4380 = vmatpush3.bf16.xpose.msra.mxu0 %v3906_v54 }
 0x213   : > { %v3990_v29 = vpop.permute.xlu1 %3989 }
 0x214   : > { %4382 = vmatmul.mubr.msk.bf16.vlgmr.msra.gmra.mrb[0].mxu0 %vm3880_vm9, %v5837_v50  ;;  %v3878_v45 = vpop.permute.xlu0 %3877 }
 0x217   : > { %v3995_v44 = vpop.permute.xlu1 %3994 }
 0x218   : > { %v4000_v12 = vpop.permute.xlu0 %3999 }
 0x2e7   : > { %v3966_v18 = vpop.f32.mrb[0].mxu0 }
 0x2e8   : > { %v3967_v33 = vadd.f32 %v3966_v18, %v3878_v45  ;;  %v3968_v19 = vpop.f32.mrb[1].mxu0 }
 0x2e9   : > { %v3969_v22 = vadd.f32 %v3968_v19, %v3878_v45  ;;  %v3970_v7 = vpop.f32.mrb[2].mxu0 }
 0x2ea   : > { %v3975_v39 = vmul.f32 0.1, %v3967_v33  ;;  %v3971_v56 = vpop.f32.mrb[3].mxu0  ;;  %vm3973_vm0 = vcmp.gt.f32.partialorder %v3967_v33, 0.0 }
 0x2eb   : > { %v3976_v50 = vmul.f32 0.1, %v3969_v22  ;;  %vm3974_vm6 = vcmp.gt.f32.partialorder %v3969_v22, 0.0 }
 0x2ec   : > { %v3977_v28 = vsel %vm3973_vm0, %v3967_v33, %v3975_v39 }
 0x2ed   : > { %v3978_v32 = vsel %vm3974_vm6, %v3969_v22, %v3976_v50  ;;  %v3982_v14 = vpack.c.bf16 %v3977_v28, %v3977_v28 }
 0x2ee   : > { %v3983_v30 = vpack.c.bf16 %v3978_v32, %v3978_v32 }
 0x2ef   : > { %v4019_v61 = vsel %vm4017_vm10, %v3982_v14, 0 }
 0x2f0   : > { %4358 = vmatprep.subr.msk.bf16.mxu1 %vm4017_vm10, %v3983_v30 }
 0x2f1   : > { %4025 = vmatpush1.bf16.msra.mxu1 %v4019_v61 }
 0x2f4   : > { %4359 = vmatmul.mubr.msk.bf16.vlgmr.msra.gmra.mrb[0].mxu1 %vm4010_vm11, %v4492_v49 }
 0x2f5   : > { %4066 = vmatprep.mubr.bf16.mxu1 %v4558_v0 }
 0x2fc   : > { %4360 = vmatmul.mubr.msk.bf16.gmra.mrb[4].mxu1 %vm4010_vm11, %v4493_v24 }
 0x3c7   : > { %v4058_v3 = vpop.f32.mrb[0].mxu1 }
 0x3c8   : > { %v4059_v31 = vadd.f32 %v4058_v3, %v3990_v29  ;;  %v4060_v59 = vpop.f32.mrb[1].mxu1 }
 0x3c9   : > { %v4061_v60 = vadd.f32 %v4060_v59, %v3990_v29  ;;  %v4062_v35 = vpop.f32.mrb[2].mxu1 }
 0x3ca   : > { %4075 = vst [vmem:[%s217_s25] sm:$0xff] %v4059_v31  ;;  %v4063_v13 = vadd.f32 %v4062_v35, %v3995_v44  ;;  %v4064_v0 = vpop.f32.mrb[3].mxu1 }
 0x3cb   : > { %4076 = vst [vmem:[%s217_s25 + $0x8] sm:$0xff] %v4061_v60  ;;  %v4065_v38 = vadd.f32 %v4064_v0, %v3995_v44 }
 0x3cc   : > { %4077 = vst [vmem:[%s217_s25 + $0x10] sm:$0xff] %v4063_v13 }
 0x3cd   : > { %4078 = vst [vmem:[%s217_s25 + $0x18] sm:$0xff] %v4065_v38 }
 0x3cf   : > { %v4068_v20 = vpop.f32.mrb[4].mxu1 }
 0x3d0   : > { %v4069_v23 = vadd.f32 %v4068_v20, %v4000_v12  ;;  %v4070_v42 = vpop.f32.mrb[5].mxu1 }
 0x3d1   : > { %v4071_v11 = vadd.f32 %v4070_v42, %v4000_v12  ;;  %v4072_v15 = vpop.f32.mrb[6].mxu1 }
 0x3d2   : > { %4079 = vst [vmem:[%s217_s25 + $0x20] sm:$0xff] %v4069_v23  ;;  %v4073_v40 = vpop.f32.mrb[7].mxu1 }
 0x3d3   : > { %4080 = vst [vmem:[%s217_s25 + $0x28] sm:$0xff] %v4071_v11 }
 0x3d4   : > { %4507 = shalt.err (!%p4504_p3)
}
 0x3d5   : > { %s4508_s13 = scalar_lea.hbm %s5930_s8, 768  ;;  %s4512_s17 = scalar_lea.hbm %s5981_s5, 1536 }
 0x3d6   : > { %p4509_p4 = scmp.ne.s32.totalorder %s5930_s8, %s4508_s13  ;;  %p4513_p9 = scmp.lt.u32.totalorder %s5930_s8, %s5981_s5 }
 0x3d7   : > { %p4514_p10 = scmp.lt.u32.totalorder %s4512_s17, %s4508_s13  ;;  %p4516_p12 = scmp.lt.u32.totalorder %s4508_s13, %s5930_s8 }
 0x3d8   : > { %p4510_p7 = pnand %p4509_p4, %p4637_p5 }
 0x3d9   : > { %p4515_p11 = por %p4514_p10, %p4513_p9 }
 0x3da   : > { %p4511_p8 = pneg %p4510_p7 }
 0x3db   : > { %p4517_p13 = por %p4516_p12, %p4515_p11 }
 0x3dd   : > { %p4518_p0 = pnand %p4517_p13, %p4511_p8 }
 0x3df   : > { %4521 = shalt.err (!%p4518_p0)
}
 0x3e0   : > { %s4568_s30 = smov 256  }
 0x3e1   : > { %4393 = dma.vmem_to_hbm [thread:$0]  (%p4637_p5), %s5925_s26, 768, %s5930_s8, %s5934_s22, %s4568_s30, %s4568_s30, %s4565_s16  }
 0x3e2 PF: > { %p4399_p1 = scmp.ge.s32.totalorder %s4556_s21, 2  ;;  %s4110_s6 = sand.u32 1, %s4544_s18  }
 0x3e3   : > { %s4111_s7 = scalar_lea.sflag [#allocation5], %s4110_s6 }
 0x3e4   : > { %p4396_p2 = pnand %p4399_p1, %p4641_p6 }
 0x3e6   : > { %4539 = dma.done.wait (!%p4396_p2), %s4111_s7, 768  }
 0x3e7   : > { %4541 = vsyncadd (!%p4396_p2), %s4111_s7, 4294966528  ;;  %p15_p3 = scmp.ge.s32.totalorder %s4624_s24, 4   ;;  %s5994_s18 = smov %s4548_s19 }
 0x3e8   : > { %s5995_s19 = smov %s4552_s20  ;;  %s5996_s20 = smov %s4635_s27 }
 0x3e9   : > { %s5997_s21 = smov %s4624_s24  ;;  %17 = sbr.rel (!%p15_p3) target bundleno = 3 (0x3), region = 77 }
 0x3f0   :  { %4116 = vsyncpa [#allocation5], 1 }
 0x3f1   :  { %4118 = vsyncpa [#allocation5 + $0x1], 1 }

</bundles_post_ra>
